<compile_context>
chip_gen: v7x
topology: tpu7x:2x2x1
jax: 0.10.0
libtpu: 0.0.40
codegen_flags: <defaults>
</compile_context>

<pallas_src>
import functools

import jax
import jax.numpy as jnp
from jax import lax
from jax.experimental import pallas as pl
from jax.experimental.pallas import tpu as pltpu


def _block_kernel(x_ref, w1_ref, b1_ref, dww_ref, w2_ref, b2_ref,
                  o_ref, pad_ref, sh_ref, *, Nb, H, W, KH, KW, P):
    """Nb batch elements per grid step, channels-first flat-spatial layout.

    x_ref   : (Nb, Cin, HW)        f32   input block (lane dim = HW)
    w1_ref  : (Cmid, Cin)          bf16  pwconv1 weight, BN scale folded in
    b1_ref  : (Cmid, 1)            f32   pwconv1 bias, BN folded in
    dww_ref : (Nb*Cmid, KH*KW)     f32   depthwise weights (batch-replicated)
    w2_ref  : (Cout, Cmid)         bf16  pwconv2 weight, gamma folded in
    b2_ref  : (Cout, 1)            f32   pwconv2 bias, dw-bias & gamma folded
    o_ref   : (Nb, Cout, HW)       f32
    pad_ref : VMEM (Nb*Cmid, Hp*Wp)      f32  zero-padded depthwise input
    sh_ref  : VMEM (KW, Nb*Cmid, Lfull)  f32  KW lane-shifted copies of pad_ref
    """
    Wp = W + 2 * P
    HW = H * W
    L = (H - 1) * Wp + W              # flat window length covering all outputs
    Lfull = (KH - 1) * Wp + L         # row filters are evaluated over this span
    Cmid = w1_ref.shape[0]

    # ---- pwconv1 (1x1 conv == matmul) + folded BN, per batch ----------------
    # MXU is idle in this block; Nb small matmuls of width HW are negligible.
    hs = []
    for b in range(Nb):
        xb = x_ref[b]                                           # (Cin, HW) f32
        h = jnp.dot(w1_ref[...], xb.astype(jnp.bfloat16),
                    preferred_element_type=jnp.float32) + b1_ref[...]
        hs.append(h)                                            # (Cmid, HW) f32
    # Stack batch on the sublane axis for the depthwise path.
    h_all = hs[0] if Nb == 1 else jnp.concatenate(hs, axis=0)   # (Nb*Cmid, HW)

    # ---- scatter into the flat zero-padded buffer (row pitch Wp) ------------
    # One masked store per image row, shared across all Nb batches.  The
    # buffer is only a handful of vregs, so per-step re-zeroing is cheap and
    # keeps correctness when the "parallel" batch axis is sharded across TCs.
    pad_ref[...] = jnp.zeros(pad_ref.shape, pad_ref.dtype)
    for r in range(H):
        base = (r + P) * Wp + P
        pad_ref[:, base:base + W] = h_all[:, r * W:(r + 1) * W]

    # ---- build the KW lane-shifted copies once (KW shift chains, not KH*KW) -
    padv = pad_ref[...]                                         # (Nb*Cmid, Hp*Wp)
    for kw in range(KW):
        sh_ref[kw] = padv[:, kw:kw + Lfull]

    # ---- depthwise KHxKW conv: row filters are plain f32 vmul/vadd ----------
    # Per kh: sum the KW pre-shifted copies weighted per-channel, then a single
    # row-alignment slice (offset kh*Wp) before accumulating.
    dwv = dww_ref[...]                                          # (Nb*Cmid, KH*KW)
    acc = None
    for kh in range(KH):
        row = None
        for kw in range(KW):
            t = kh * KW + kw
            term = sh_ref[kw] * dwv[:, t:t + 1]                 # (Nb*Cmid, Lfull)
            row = term if row is None else row + term
        row = row[:, kh * Wp:kh * Wp + L]                       # align row kh
        acc = row if acc is None else acc + row                 # (Nb*Cmid, L)

    # ---- gather valid pixels as a value (no a2 scratch round-trip) ----------
    a2_all = jnp.concatenate([acc[:, r * Wp:r * Wp + W] for r in range(H)],
                             axis=1)                            # (Nb*Cmid, HW)

    # ---- pwconv2 (+ folded dw-bias, bias, gamma), residual, ReLU ------------
    for b in range(Nb):
        a2 = a2_all[b * Cmid:(b + 1) * Cmid, :]                 # (Cmid, HW)
        y = jnp.dot(w2_ref[...], a2.astype(jnp.bfloat16),
                    preferred_element_type=jnp.float32) + b2_ref[...]
        y = y + x_ref[b]                                        # Cout == Cin
        o_ref[b] = jnp.maximum(y, 0.0).astype(o_ref.dtype)      # lane-dense store


def robust_resnet_dw_block(x_nchw, params):
    """Wrapper: NCHW in / NCHW out, parameters in PyTorch shapes."""
    N, Cin, H, W = x_nchw.shape
    w1 = params["pwconv1_w"]            # (Cmid, Cin, 1, 1)
    Cmid = w1.shape[0]
    dw_w = params["conv_dw_w"]          # (Cmid, 1, KH, KW)
    KH, KW = int(dw_w.shape[2]), int(dw_w.shape[3])
    P = int(params["padding"])
    w2 = params["pwconv2_w"]            # (Cout, Cmid, 1, 1)
    Cout = w2.shape[0]

    # Validity of this implementation (stride=1 module default, 'same' padding,
    # residual add).  Outside these the flat-window depthwise would silently
    # read neighbouring rows, so fail loudly instead.
    assert Cout == Cin, "residual add requires int(mlp_ratio*dim) == indim"
    assert KH == KW and KH % 2 == 1, "square odd kernel required"
    assert P == (KH - 1) // 2, "flat-window depthwise requires 'same' padding"
    # TODO(synk): stride != 1 and downsample/drop_path != identity not implemented.

    HW = H * W
    Hp, Wp = H + 2 * P, W + 2 * P
    L = (H - 1) * Wp + W
    Lfull = (KH - 1) * Wp + L

    # ---- choose Nb: batch elements per grid step ---------------------------
    # Fills the depthwise sublanes (Nb*Cmid rows) and amortizes per-step
    # overhead.  Cap keeps the shifted-copy scratch small; on v7x one may
    # prefer an even grid length so both TensorCores get work.
    cap = 8
    Nb = 1
    for c in range(1, min(N, cap) + 1):
        if N % c == 0:
            Nb = c
    grid = (N // Nb,)

    # ---- host-side folding: BN -> pwconv1; dw-bias & gamma -> pwconv2 ------
    eps = float(params.get("bn_eps", 1e-5))   # nn.BatchNorm2d default
    bn_scale = params["bn_w"] / jnp.sqrt(params["bn_var"] + eps)
    bn_shift = params["bn_b"] - params["bn_mean"] * bn_scale
    gamma = params["gamma"]

    w1_2d = w1[:, :, 0, 0]                                  # (Cmid, Cin)
    w2_2d = w2[:, :, 0, 0]                                  # (Cout, Cmid)
    w1_k = (w1_2d * bn_scale[:, None]).astype(jnp.bfloat16)
    b1_k = (params["pwconv1_b"] * bn_scale + bn_shift
            ).reshape(Cmid, 1).astype(jnp.float32)
    b2_fold = jnp.dot(w2_2d, params["conv_dw_b"],
                      precision=lax.Precision.HIGHEST) + params["pwconv2_b"]
    w2_k = (w2_2d * gamma[:, None]).astype(jnp.bfloat16)
    b2_k = (b2_fold * gamma).reshape(Cout, 1).astype(jnp.float32)
    # Depthwise weights, replicated per batch element in the step (sublane
    # stacking order is [b*Cmid + c]).
    dw2d = dw_w[:, 0, :, :].reshape(Cmid, KH * KW).astype(jnp.float32)
    dww_k = jnp.tile(dw2d, (Nb, 1))                         # (Nb*Cmid, KH*KW)

    # Channels-first flat-spatial layout == a free reshape of NCHW.
    # (For HBM-bound production shapes this could be bf16; kept f32 here so
    # the residual path stays exact vs the f32 reference.)
    x = x_nchw.reshape(N, Cin, HW).astype(jnp.float32)

    kernel = functools.partial(_block_kernel, Nb=Nb, H=H, W=W,
                               KH=KH, KW=KW, P=P)

    out = pl.pallas_call(
        kernel,
        out_shape=jax.ShapeDtypeStruct((N, Cout, HW), jnp.float32),
        grid=grid,
        in_specs=[
            pl.BlockSpec((Nb, Cin, HW), lambda n: (n, 0, 0)),
            pl.BlockSpec((Cmid, Cin), lambda n: (0, 0)),
            pl.BlockSpec((Cmid, 1), lambda n: (0, 0)),
            pl.BlockSpec((Nb * Cmid, KH * KW), lambda n: (0, 0)),
            pl.BlockSpec((Cout, Cmid), lambda n: (0, 0)),
            pl.BlockSpec((Cout, 1), lambda n: (0, 0)),
        ],
        out_specs=pl.BlockSpec((Nb, Cout, HW), lambda n: (n, 0, 0)),
        scratch_shapes=[
            pltpu.VMEM((Nb * Cmid, Hp * Wp), jnp.float32),   # padded dw input
            pltpu.VMEM((KW, Nb * Cmid, Lfull), jnp.float32),  # shifted copies
        ],
        compiler_params=pltpu.CompilerParams(
            dimension_semantics=("parallel",),
            vmem_limit_bytes=32 * 1024 * 1024),
    )(x, w1_k, b1_k, dww_k, w2_k, b2_k)

    return out.reshape(N, Cout, H, W)                       # NCHW, no transpose


def _reference(x, p):
    """Pure-JAX NCHW reference (mirrors the PyTorch forward, BN in eval mode)."""
    dn = ("NCHW", "OIHW", "NCHW")
    hp = lax.Precision.HIGHEST
    y = lax.conv_general_dilated(x, p["pwconv1_w"], (1, 1), "VALID",
                                 dimension_numbers=dn, precision=hp)
    y = y + p["pwconv1_b"].reshape(1, -1, 1, 1)
    eps = float(p.get("bn_eps", 1e-5))
    s = p["bn_w"] / jnp.sqrt(p["bn_var"] + eps)
    b = p["bn_b"] - p["bn_mean"] * s
    y = y * s.reshape(1, -1, 1, 1) + b.reshape(1, -1, 1, 1)
    P = int(p["padding"])
    y = lax.conv_general_dilated(y, p["conv_dw_w"], (1, 1), ((P, P), (P, P)),
                                 dimension_numbers=dn,
                                 feature_group_count=p["conv_dw_w"].shape[0],
                                 precision=hp)
    y = y + p["conv_dw_b"].reshape(1, -1, 1, 1)
    y = lax.conv_general_dilated(y, p["pwconv2_w"], (1, 1), "VALID",
                                 dimension_numbers=dn, precision=hp)
    y = y + p["pwconv2_b"].reshape(1, -1, 1, 1)
    y = y * p["gamma"].reshape(1, -1, 1, 1)
    y = y + x
    return jnp.maximum(y, 0.0)


if __name__ == "__main__":
    key = jax.random.PRNGKey(0)
    # Small shapes consistent with the module: indim == int(mlp_ratio*dim) so
    # the residual add is valid (stride=1, downsample=None).
    N, indim, H, W = 2, 16, 16, 16
    dim = 4
    mlp_ratio = 4.0
    Cout = int(mlp_ratio * dim)          # 16 == indim
    KH = KW = 11
    padding = 5

    ks = jax.random.split(key, 12)
    params = {
        "pwconv1_w": 0.1 * jax.random.normal(ks[0], (dim, indim, 1, 1), jnp.float32),
        "pwconv1_b": 0.05 * jax.random.normal(ks[1], (dim,), jnp.float32),
        "bn_w": jax.random.uniform(ks[2], (dim,), jnp.float32, 0.5, 1.5),
        "bn_b": 0.05 * jax.random.normal(ks[3], (dim,), jnp.float32),
        "bn_mean": 0.05 * jax.random.normal(ks[4], (dim,), jnp.float32),
        "bn_var": jax.random.uniform(ks[5], (dim,), jnp.float32, 0.5, 1.5),
        "bn_eps": 1e-5,
        "conv_dw_w": 0.05 * jax.random.normal(ks[6], (dim, 1, KH, KW), jnp.float32),
        "conv_dw_b": 0.05 * jax.random.normal(ks[7], (dim,), jnp.float32),
        "pwconv2_w": 0.1 * jax.random.normal(ks[8], (Cout, dim, 1, 1), jnp.float32),
        "pwconv2_b": 0.05 * jax.random.normal(ks[9], (Cout,), jnp.float32),
        # gamma is a learnable layer-scale Parameter; initialized randomly here
        # (module default init is 1e-6) so the conv branch is non-negligible.
        "gamma": jax.random.uniform(ks[10], (Cout,), jnp.float32, 0.5, 1.5),
        "padding": padding,
    }
    # TODO(synk): BatchNorm2d is implemented in inference mode (running stats);
    # training-mode batch-statistics reduction is not implemented.

    x = jax.random.normal(ks[11], (N, indim, H, W), jnp.float32)

    out = jax.block_until_ready(robust_resnet_dw_block(x, params))
    ref = _reference(x, params)
    assert out.shape == (N, Cout, H, W), out.shape
    err = float(jnp.max(jnp.abs(out - ref)))
    assert err < 1e-2, f"max abs err {err}"
    print("KERNEL_OK")
</pallas_src>

<mosaic_0001>
module attributes {stable_mosaic.version = 11 : i64} {
  func.func @_block_kernel(%arg0: i32, %arg1: memref<2x16x256xf32, #tpu.memory_space<vmem>>, %arg2: memref<4x16xbf16, #tpu.memory_space<vmem>>, %arg3: memref<4x1xf32, #tpu.memory_space<vmem>>, %arg4: memref<8x121xf32, #tpu.memory_space<vmem>>, %arg5: memref<16x4xbf16, #tpu.memory_space<vmem>>, %arg6: memref<16x1xf32, #tpu.memory_space<vmem>>, %arg7: memref<2x16x256xf32, #tpu.memory_space<vmem>>, %arg8: memref<8x676xf32, #tpu.memory_space<vmem>>, %arg9: memref<11x8x666xf32, #tpu.memory_space<vmem>>) attributes {dimension_semantics = [#tpu.dimension_semantics<parallel>], iteration_bounds = array<i64: 1>, scalar_prefetch = 0 : i64, scratch_operands = 2 : i64, tpu.core_type = #tpu.core_type<tc>, window_params = [{transform_indices = @transform_0, window_bounds = array<i64: 2, 16, 256>}, {pipeline_mode = #tpu.pipeline_mode<synchronous>, transform_indices = @transform_1, window_bounds = array<i64: 4, 16>}, {pipeline_mode = #tpu.pipeline_mode<synchronous>, transform_indices = @transform_2, window_bounds = array<i64: 4, 1>}, {pipeline_mode = #tpu.pipeline_mode<synchronous>, transform_indices = @transform_3, window_bounds = array<i64: 8, 121>}, {pipeline_mode = #tpu.pipeline_mode<synchronous>, transform_indices = @transform_4, window_bounds = array<i64: 16, 4>}, {pipeline_mode = #tpu.pipeline_mode<synchronous>, transform_indices = @transform_5, window_bounds = array<i64: 16, 1>}, {transform_indices = @transform_6, window_bounds = array<i64: 2, 16, 256>}]} {
    %c0 = arith.constant 0 : index
    %c0_0 = arith.constant 0 : index
    %c0_1 = arith.constant 0 : index
    %0 = vector.load %arg1[%c0, %c0_0, %c0_1] : memref<2x16x256xf32, #tpu.memory_space<vmem>>, vector<1x16x256xf32>
    %1 = vector.shape_cast %0 : vector<1x16x256xf32> to vector<16x256xf32>
    %c0_2 = arith.constant 0 : index
    %c0_3 = arith.constant 0 : index
    %2 = vector.load %arg2[%c0_2, %c0_3] : memref<4x16xbf16, #tpu.memory_space<vmem>>, vector<4x16xbf16>
    %3 = arith.truncf %1 : vector<16x256xf32> to vector<16x256xbf16>
    %cst = arith.constant dense<0.000000e+00> : vector<4x256xf32>
    %4 = tpu.matmul %2, %3, %cst {dimension_numbers = #tpu.dot_dimension_numbers<[1], [0], [0], [1], [0, 0, 1, 1], [], []>} : vector<4x16xbf16>, vector<16x256xbf16>, vector<4x256xf32> -> vector<4x256xf32>
    %c0_4 = arith.constant 0 : index
    %c0_5 = arith.constant 0 : index
    %5 = vector.load %arg3[%c0_4, %c0_5] : memref<4x1xf32, #tpu.memory_space<vmem>>, vector<4x1xf32>
    %6 = vector.broadcast %5 : vector<4x1xf32> to vector<4x256xf32>
    %7 = arith.addf %4, %6 : vector<4x256xf32>
    %c1 = arith.constant 1 : index
    %c0_6 = arith.constant 0 : index
    %c0_7 = arith.constant 0 : index
    %8 = vector.load %arg1[%c1, %c0_6, %c0_7] : memref<2x16x256xf32, #tpu.memory_space<vmem>>, vector<1x16x256xf32>
    %9 = vector.shape_cast %8 : vector<1x16x256xf32> to vector<16x256xf32>
    %c0_8 = arith.constant 0 : index
    %c0_9 = arith.constant 0 : index
    %10 = vector.load %arg2[%c0_8, %c0_9] : memref<4x16xbf16, #tpu.memory_space<vmem>>, vector<4x16xbf16>
    %11 = arith.truncf %9 : vector<16x256xf32> to vector<16x256xbf16>
    %cst_10 = arith.constant dense<0.000000e+00> : vector<4x256xf32>
    %12 = tpu.matmul %10, %11, %cst_10 {dimension_numbers = #tpu.dot_dimension_numbers<[1], [0], [0], [1], [0, 0, 1, 1], [], []>} : vector<4x16xbf16>, vector<16x256xbf16>, vector<4x256xf32> -> vector<4x256xf32>
    %c0_11 = arith.constant 0 : index
    %c0_12 = arith.constant 0 : index
    %13 = vector.load %arg3[%c0_11, %c0_12] : memref<4x1xf32, #tpu.memory_space<vmem>>, vector<4x1xf32>
    %14 = vector.broadcast %13 : vector<4x1xf32> to vector<4x256xf32>
    %15 = arith.addf %12, %14 : vector<4x256xf32>
    %16 = tpu.concatenate %7, %15 in 0 : vector<4x256xf32>, vector<4x256xf32> -> vector<8x256xf32>
    %cst_13 = arith.constant 0.000000e+00 : f32
    %17 = vector.broadcast %cst_13 : f32 to vector<8x676xf32>
    %c0_14 = arith.constant 0 : index
    %c0_15 = arith.constant 0 : index
    %18 = vector.load %arg8[%c0_14, %c0_15] : memref<8x676xf32, #tpu.memory_space<vmem>>, vector<8x676xf32>
    tpu.vector_store %arg8[%c0_14, %c0_15], %17 {strides = array<i32>} : memref<8x676xf32, #tpu.memory_space<vmem>>, vector<8x676xf32>,
    %19 = vector.extract_strided_slice %16 {offsets = [0, 0], sizes = [8, 16], strides = [1, 1]} : vector<8x256xf32> to vector<8x16xf32>
    %c0_16 = arith.constant 0 : index
    %c135 = arith.constant 135 : index
    %20 = vector.load %arg8[%c0_16, %c135] : memref<8x676xf32, #tpu.memory_space<vmem>>, vector<8x16xf32>
    tpu.vector_store %arg8[%c0_16, %c135], %19 {strides = array<i32>} : memref<8x676xf32, #tpu.memory_space<vmem>>, vector<8x16xf32>,
    %21 = vector.extract_strided_slice %16 {offsets = [0, 16], sizes = [8, 16], strides = [1, 1]} : vector<8x256xf32> to vector<8x16xf32>
    %c0_17 = arith.constant 0 : index
    %c161 = arith.constant 161 : index
    %22 = vector.load %arg8[%c0_17, %c161] : memref<8x676xf32, #tpu.memory_space<vmem>>, vector<8x16xf32>
    tpu.vector_store %arg8[%c0_17, %c161], %21 {strides = array<i32>} : memref<8x676xf32, #tpu.memory_space<vmem>>, vector<8x16xf32>,
    %23 = vector.extract_strided_slice %16 {offsets = [0, 32], sizes = [8, 16], strides = [1, 1]} : vector<8x256xf32> to vector<8x16xf32>
    %c0_18 = arith.constant 0 : index
    %c187 = arith.constant 187 : index
    %24 = vector.load %arg8[%c0_18, %c187] : memref<8x676xf32, #tpu.memory_space<vmem>>, vector<8x16xf32>
    tpu.vector_store %arg8[%c0_18, %c187], %23 {strides = array<i32>} : memref<8x676xf32, #tpu.memory_space<vmem>>, vector<8x16xf32>,
    %25 = vector.extract_strided_slice %16 {offsets = [0, 48], sizes = [8, 16], strides = [1, 1]} : vector<8x256xf32> to vector<8x16xf32>
    %c0_19 = arith.constant 0 : index
    %c213 = arith.constant 213 : index
    %26 = vector.load %arg8[%c0_19, %c213] : memref<8x676xf32, #tpu.memory_space<vmem>>, vector<8x16xf32>
    tpu.vector_store %arg8[%c0_19, %c213], %25 {strides = array<i32>} : memref<8x676xf32, #tpu.memory_space<vmem>>, vector<8x16xf32>,
    %27 = vector.extract_strided_slice %16 {offsets = [0, 64], sizes = [8, 16], strides = [1, 1]} : vector<8x256xf32> to vector<8x16xf32>
    %c0_20 = arith.constant 0 : index
    %c239 = arith.constant 239 : index
    %28 = vector.load %arg8[%c0_20, %c239] : memref<8x676xf32, #tpu.memory_space<vmem>>, vector<8x16xf32>
    tpu.vector_store %arg8[%c0_20, %c239], %27 {strides = array<i32>} : memref<8x676xf32, #tpu.memory_space<vmem>>, vector<8x16xf32>,
    %29 = vector.extract_strided_slice %16 {offsets = [0, 80], sizes = [8, 16], strides = [1, 1]} : vector<8x256xf32> to vector<8x16xf32>
    %c0_21 = arith.constant 0 : index
    %c265 = arith.constant 265 : index
    %30 = vector.load %arg8[%c0_21, %c265] : memref<8x676xf32, #tpu.memory_space<vmem>>, vector<8x16xf32>
    tpu.vector_store %arg8[%c0_21, %c265], %29 {strides = array<i32>} : memref<8x676xf32, #tpu.memory_space<vmem>>, vector<8x16xf32>,
    %31 = vector.extract_strided_slice %16 {offsets = [0, 96], sizes = [8, 16], strides = [1, 1]} : vector<8x256xf32> to vector<8x16xf32>
    %c0_22 = arith.constant 0 : index
    %c291 = arith.constant 291 : index
    %32 = vector.load %arg8[%c0_22, %c291] : memref<8x676xf32, #tpu.memory_space<vmem>>, vector<8x16xf32>
    tpu.vector_store %arg8[%c0_22, %c291], %31 {strides = array<i32>} : memref<8x676xf32, #tpu.memory_space<vmem>>, vector<8x16xf32>,
    %33 = vector.extract_strided_slice %16 {offsets = [0, 112], sizes = [8, 16], strides = [1, 1]} : vector<8x256xf32> to vector<8x16xf32>
    %c0_23 = arith.constant 0 : index
    %c317 = arith.constant 317 : index
    %34 = vector.load %arg8[%c0_23, %c317] : memref<8x676xf32, #tpu.memory_space<vmem>>, vector<8x16xf32>
    tpu.vector_store %arg8[%c0_23, %c317], %33 {strides = array<i32>} : memref<8x676xf32, #tpu.memory_space<vmem>>, vector<8x16xf32>,
    %35 = vector.extract_strided_slice %16 {offsets = [0, 128], sizes = [8, 16], strides = [1, 1]} : vector<8x256xf32> to vector<8x16xf32>
    %c0_24 = arith.constant 0 : index
    %c343 = arith.constant 343 : index
    %36 = vector.load %arg8[%c0_24, %c343] : memref<8x676xf32, #tpu.memory_space<vmem>>, vector<8x16xf32>
    tpu.vector_store %arg8[%c0_24, %c343], %35 {strides = array<i32>} : memref<8x676xf32, #tpu.memory_space<vmem>>, vector<8x16xf32>,
    %37 = vector.extract_strided_slice %16 {offsets = [0, 144], sizes = [8, 16], strides = [1, 1]} : vector<8x256xf32> to vector<8x16xf32>
    %c0_25 = arith.constant 0 : index
    %c369 = arith.constant 369 : index
    %38 = vector.load %arg8[%c0_25, %c369] : memref<8x676xf32, #tpu.memory_space<vmem>>, vector<8x16xf32>
    tpu.vector_store %arg8[%c0_25, %c369], %37 {strides = array<i32>} : memref<8x676xf32, #tpu.memory_space<vmem>>, vector<8x16xf32>,
    %39 = vector.extract_strided_slice %16 {offsets = [0, 160], sizes = [8, 16], strides = [1, 1]} : vector<8x256xf32> to vector<8x16xf32>
    %c0_26 = arith.constant 0 : index
    %c395 = arith.constant 395 : index
    %40 = vector.load %arg8[%c0_26, %c395] : memref<8x676xf32, #tpu.memory_space<vmem>>, vector<8x16xf32>
    tpu.vector_store %arg8[%c0_26, %c395], %39 {strides = array<i32>} : memref<8x676xf32, #tpu.memory_space<vmem>>, vector<8x16xf32>,
    %41 = vector.extract_strided_slice %16 {offsets = [0, 176], sizes = [8, 16], strides = [1, 1]} : vector<8x256xf32> to vector<8x16xf32>
    %c0_27 = arith.constant 0 : index
    %c421 = arith.constant 421 : index
    %42 = vector.load %arg8[%c0_27, %c421] : memref<8x676xf32, #tpu.memory_space<vmem>>, vector<8x16xf32>
    tpu.vector_store %arg8[%c0_27, %c421], %41 {strides = array<i32>} : memref<8x676xf32, #tpu.memory_space<vmem>>, vector<8x16xf32>,
    %43 = vector.extract_strided_slice %16 {offsets = [0, 192], sizes = [8, 16], strides = [1, 1]} : vector<8x256xf32> to vector<8x16xf32>
    %c0_28 = arith.constant 0 : index
    %c447 = arith.constant 447 : index
    %44 = vector.load %arg8[%c0_28, %c447] : memref<8x676xf32, #tpu.memory_space<vmem>>, vector<8x16xf32>
    tpu.vector_store %arg8[%c0_28, %c447], %43 {strides = array<i32>} : memref<8x676xf32, #tpu.memory_space<vmem>>, vector<8x16xf32>,
    %45 = vector.extract_strided_slice %16 {offsets = [0, 208], sizes = [8, 16], strides = [1, 1]} : vector<8x256xf32> to vector<8x16xf32>
    %c0_29 = arith.constant 0 : index
    %c473 = arith.constant 473 : index
    %46 = vector.load %arg8[%c0_29, %c473] : memref<8x676xf32, #tpu.memory_space<vmem>>, vector<8x16xf32>
    tpu.vector_store %arg8[%c0_29, %c473], %45 {strides = array<i32>} : memref<8x676xf32, #tpu.memory_space<vmem>>, vector<8x16xf32>,
    %47 = vector.extract_strided_slice %16 {offsets = [0, 224], sizes = [8, 16], strides = [1, 1]} : vector<8x256xf32> to vector<8x16xf32>
    %c0_30 = arith.constant 0 : index
    %c499 = arith.constant 499 : index
    %48 = vector.load %arg8[%c0_30, %c499] : memref<8x676xf32, #tpu.memory_space<vmem>>, vector<8x16xf32>
    tpu.vector_store %arg8[%c0_30, %c499], %47 {strides = array<i32>} : memref<8x676xf32, #tpu.memory_space<vmem>>, vector<8x16xf32>,
    %49 = vector.extract_strided_slice %16 {offsets = [0, 240], sizes = [8, 16], strides = [1, 1]} : vector<8x256xf32> to vector<8x16xf32>
    %c0_31 = arith.constant 0 : index
    %c525 = arith.constant 525 : index
    %50 = vector.load %arg8[%c0_31, %c525] : memref<8x676xf32, #tpu.memory_space<vmem>>, vector<8x16xf32>
    tpu.vector_store %arg8[%c0_31, %c525], %49 {strides = array<i32>} : memref<8x676xf32, #tpu.memory_space<vmem>>, vector<8x16xf32>,
    %c0_32 = arith.constant 0 : index
    %c0_33 = arith.constant 0 : index
    %51 = vector.load %arg8[%c0_32, %c0_33] : memref<8x676xf32, #tpu.memory_space<vmem>>, vector<8x676xf32>
    %52 = vector.extract_strided_slice %51 {offsets = [0, 0], sizes = [8, 666], strides = [1, 1]} : vector<8x676xf32> to vector<8x666xf32>
    %c0_34 = arith.constant 0 : index
    %c0_35 = arith.constant 0 : index
    %c0_36 = arith.constant 0 : index
    %53 = vector.load %arg9[%c0_34, %c0_35, %c0_36] : memref<11x8x666xf32, #tpu.memory_space<vmem>>, vector<1x8x666xf32>
    %54 = vector.shape_cast %53 : vector<1x8x666xf32> to vector<8x666xf32>
    %55 = vector.shape_cast %52 : vector<8x666xf32> to vector<1x8x666xf32>
    tpu.vector_store %arg9[%c0_34, %c0_35, %c0_36], %55 {strides = array<i32>} : memref<11x8x666xf32, #tpu.memory_space<vmem>>, vector<1x8x666xf32>,
    %56 = vector.extract_strided_slice %51 {offsets = [0, 1], sizes = [8, 666], strides = [1, 1]} : vector<8x676xf32> to vector<8x666xf32>
    %c1_37 = arith.constant 1 : index
    %c0_38 = arith.constant 0 : index
    %c0_39 = arith.constant 0 : index
    %57 = vector.load %arg9[%c1_37, %c0_38, %c0_39] : memref<11x8x666xf32, #tpu.memory_space<vmem>>, vector<1x8x666xf32>
    %58 = vector.shape_cast %57 : vector<1x8x666xf32> to vector<8x666xf32>
    %59 = vector.shape_cast %56 : vector<8x666xf32> to vector<1x8x666xf32>
    tpu.vector_store %arg9[%c1_37, %c0_38, %c0_39], %59 {strides = array<i32>} : memref<11x8x666xf32, #tpu.memory_space<vmem>>, vector<1x8x666xf32>,
    %60 = vector.extract_strided_slice %51 {offsets = [0, 2], sizes = [8, 666], strides = [1, 1]} : vector<8x676xf32> to vector<8x666xf32>
    %c2 = arith.constant 2 : index
    %c0_40 = arith.constant 0 : index
    %c0_41 = arith.constant 0 : index
    %61 = vector.load %arg9[%c2, %c0_40, %c0_41] : memref<11x8x666xf32, #tpu.memory_space<vmem>>, vector<1x8x666xf32>
    %62 = vector.shape_cast %61 : vector<1x8x666xf32> to vector<8x666xf32>
    %63 = vector.shape_cast %60 : vector<8x666xf32> to vector<1x8x666xf32>
    tpu.vector_store %arg9[%c2, %c0_40, %c0_41], %63 {strides = array<i32>} : memref<11x8x666xf32, #tpu.memory_space<vmem>>, vector<1x8x666xf32>,
    %64 = vector.extract_strided_slice %51 {offsets = [0, 3], sizes = [8, 666], strides = [1, 1]} : vector<8x676xf32> to vector<8x666xf32>
    %c3 = arith.constant 3 : index
    %c0_42 = arith.constant 0 : index
    %c0_43 = arith.constant 0 : index
    %65 = vector.load %arg9[%c3, %c0_42, %c0_43] : memref<11x8x666xf32, #tpu.memory_space<vmem>>, vector<1x8x666xf32>
    %66 = vector.shape_cast %65 : vector<1x8x666xf32> to vector<8x666xf32>
    %67 = vector.shape_cast %64 : vector<8x666xf32> to vector<1x8x666xf32>
    tpu.vector_store %arg9[%c3, %c0_42, %c0_43], %67 {strides = array<i32>} : memref<11x8x666xf32, #tpu.memory_space<vmem>>, vector<1x8x666xf32>,
    %68 = vector.extract_strided_slice %51 {offsets = [0, 4], sizes = [8, 666], strides = [1, 1]} : vector<8x676xf32> to vector<8x666xf32>
    %c4 = arith.constant 4 : index
    %c0_44 = arith.constant 0 : index
    %c0_45 = arith.constant 0 : index
    %69 = vector.load %arg9[%c4, %c0_44, %c0_45] : memref<11x8x666xf32, #tpu.memory_space<vmem>>, vector<1x8x666xf32>
    %70 = vector.shape_cast %69 : vector<1x8x666xf32> to vector<8x666xf32>
    %71 = vector.shape_cast %68 : vector<8x666xf32> to vector<1x8x666xf32>
    tpu.vector_store %arg9[%c4, %c0_44, %c0_45], %71 {strides = array<i32>} : memref<11x8x666xf32, #tpu.memory_space<vmem>>, vector<1x8x666xf32>,
    %72 = vector.extract_strided_slice %51 {offsets = [0, 5], sizes = [8, 666], strides = [1, 1]} : vector<8x676xf32> to vector<8x666xf32>
    %c5 = arith.constant 5 : index
    %c0_46 = arith.constant 0 : index
    %c0_47 = arith.constant 0 : index
    %73 = vector.load %arg9[%c5, %c0_46, %c0_47] : memref<11x8x666xf32, #tpu.memory_space<vmem>>, vector<1x8x666xf32>
    %74 = vector.shape_cast %73 : vector<1x8x666xf32> to vector<8x666xf32>
    %75 = vector.shape_cast %72 : vector<8x666xf32> to vector<1x8x666xf32>
    tpu.vector_store %arg9[%c5, %c0_46, %c0_47], %75 {strides = array<i32>} : memref<11x8x666xf32, #tpu.memory_space<vmem>>, vector<1x8x666xf32>,
    %76 = vector.extract_strided_slice %51 {offsets = [0, 6], sizes = [8, 666], strides = [1, 1]} : vector<8x676xf32> to vector<8x666xf32>
    %c6 = arith.constant 6 : index
    %c0_48 = arith.constant 0 : index
    %c0_49 = arith.constant 0 : index
    %77 = vector.load %arg9[%c6, %c0_48, %c0_49] : memref<11x8x666xf32, #tpu.memory_space<vmem>>, vector<1x8x666xf32>
    %78 = vector.shape_cast %77 : vector<1x8x666xf32> to vector<8x666xf32>
    %79 = vector.shape_cast %76 : vector<8x666xf32> to vector<1x8x666xf32>
    tpu.vector_store %arg9[%c6, %c0_48, %c0_49], %79 {strides = array<i32>} : memref<11x8x666xf32, #tpu.memory_space<vmem>>, vector<1x8x666xf32>,
    %80 = vector.extract_strided_slice %51 {offsets = [0, 7], sizes = [8, 666], strides = [1, 1]} : vector<8x676xf32> to vector<8x666xf32>
    %c7 = arith.constant 7 : index
    %c0_50 = arith.constant 0 : index
    %c0_51 = arith.constant 0 : index
    %81 = vector.load %arg9[%c7, %c0_50, %c0_51] : memref<11x8x666xf32, #tpu.memory_space<vmem>>, vector<1x8x666xf32>
    %82 = vector.shape_cast %81 : vector<1x8x666xf32> to vector<8x666xf32>
    %83 = vector.shape_cast %80 : vector<8x666xf32> to vector<1x8x666xf32>
    tpu.vector_store %arg9[%c7, %c0_50, %c0_51], %83 {strides = array<i32>} : memref<11x8x666xf32, #tpu.memory_space<vmem>>, vector<1x8x666xf32>,
    %84 = vector.extract_strided_slice %51 {offsets = [0, 8], sizes = [8, 666], strides = [1, 1]} : vector<8x676xf32> to vector<8x666xf32>
    %c8 = arith.constant 8 : index
    %c0_52 = arith.constant 0 : index
    %c0_53 = arith.constant 0 : index
    %85 = vector.load %arg9[%c8, %c0_52, %c0_53] : memref<11x8x666xf32, #tpu.memory_space<vmem>>, vector<1x8x666xf32>
    %86 = vector.shape_cast %85 : vector<1x8x666xf32> to vector<8x666xf32>
    %87 = vector.shape_cast %84 : vector<8x666xf32> to vector<1x8x666xf32>
    tpu.vector_store %arg9[%c8, %c0_52, %c0_53], %87 {strides = array<i32>} : memref<11x8x666xf32, #tpu.memory_space<vmem>>, vector<1x8x666xf32>,
    %88 = vector.extract_strided_slice %51 {offsets = [0, 9], sizes = [8, 666], strides = [1, 1]} : vector<8x676xf32> to vector<8x666xf32>
    %c9 = arith.constant 9 : index
    %c0_54 = arith.constant 0 : index
    %c0_55 = arith.constant 0 : index
    %89 = vector.load %arg9[%c9, %c0_54, %c0_55] : memref<11x8x666xf32, #tpu.memory_space<vmem>>, vector<1x8x666xf32>
    %90 = vector.shape_cast %89 : vector<1x8x666xf32> to vector<8x666xf32>
    %91 = vector.shape_cast %88 : vector<8x666xf32> to vector<1x8x666xf32>
    tpu.vector_store %arg9[%c9, %c0_54, %c0_55], %91 {strides = array<i32>} : memref<11x8x666xf32, #tpu.memory_space<vmem>>, vector<1x8x666xf32>,
    %92 = vector.extract_strided_slice %51 {offsets = [0, 10], sizes = [8, 666], strides = [1, 1]} : vector<8x676xf32> to vector<8x666xf32>
    %c10 = arith.constant 10 : index
    %c0_56 = arith.constant 0 : index
    %c0_57 = arith.constant 0 : index
    %93 = vector.load %arg9[%c10, %c0_56, %c0_57] : memref<11x8x666xf32, #tpu.memory_space<vmem>>, vector<1x8x666xf32>
    %94 = vector.shape_cast %93 : vector<1x8x666xf32> to vector<8x666xf32>
    %95 = vector.shape_cast %92 : vector<8x666xf32> to vector<1x8x666xf32>
    tpu.vector_store %arg9[%c10, %c0_56, %c0_57], %95 {strides = array<i32>} : memref<11x8x666xf32, #tpu.memory_space<vmem>>, vector<1x8x666xf32>,
    %c0_58 = arith.constant 0 : index
    %c0_59 = arith.constant 0 : index
    %96 = vector.load %arg4[%c0_58, %c0_59] : memref<8x121xf32, #tpu.memory_space<vmem>>, vector<8x121xf32>
    %c0_60 = arith.constant 0 : index
    %c0_61 = arith.constant 0 : index
    %c0_62 = arith.constant 0 : index
    %97 = vector.load %arg9[%c0_60, %c0_61, %c0_62] : memref<11x8x666xf32, #tpu.memory_space<vmem>>, vector<1x8x666xf32>
    %98 = vector.shape_cast %97 : vector<1x8x666xf32> to vector<8x666xf32>
    %99 = vector.extract_strided_slice %96 {offsets = [0, 0], sizes = [8, 1], strides = [1, 1]} : vector<8x121xf32> to vector<8x1xf32>
    %100 = vector.broadcast %99 : vector<8x1xf32> to vector<8x666xf32>
    %101 = arith.mulf %98, %100 : vector<8x666xf32>
    %c1_63 = arith.constant 1 : index
    %c0_64 = arith.constant 0 : index
    %c0_65 = arith.constant 0 : index
    %102 = vector.load %arg9[%c1_63, %c0_64, %c0_65] : memref<11x8x666xf32, #tpu.memory_space<vmem>>, vector<1x8x666xf32>
    %103 = vector.shape_cast %102 : vector<1x8x666xf32> to vector<8x666xf32>
    %104 = vector.extract_strided_slice %96 {offsets = [0, 1], sizes = [8, 1], strides = [1, 1]} : vector<8x121xf32> to vector<8x1xf32>
    %105 = vector.broadcast %104 : vector<8x1xf32> to vector<8x666xf32>
    %106 = arith.mulf %103, %105 : vector<8x666xf32>
    %107 = arith.addf %101, %106 : vector<8x666xf32>
    %c2_66 = arith.constant 2 : index
    %c0_67 = arith.constant 0 : index
    %c0_68 = arith.constant 0 : index
    %108 = vector.load %arg9[%c2_66, %c0_67, %c0_68] : memref<11x8x666xf32, #tpu.memory_space<vmem>>, vector<1x8x666xf32>
    %109 = vector.shape_cast %108 : vector<1x8x666xf32> to vector<8x666xf32>
    %110 = vector.extract_strided_slice %96 {offsets = [0, 2], sizes = [8, 1], strides = [1, 1]} : vector<8x121xf32> to vector<8x1xf32>
    %111 = vector.broadcast %110 : vector<8x1xf32> to vector<8x666xf32>
    %112 = arith.mulf %109, %111 : vector<8x666xf32>
    %113 = arith.addf %107, %112 : vector<8x666xf32>
    %c3_69 = arith.constant 3 : index
    %c0_70 = arith.constant 0 : index
    %c0_71 = arith.constant 0 : index
    %114 = vector.load %arg9[%c3_69, %c0_70, %c0_71] : memref<11x8x666xf32, #tpu.memory_space<vmem>>, vector<1x8x666xf32>
    %115 = vector.shape_cast %114 : vector<1x8x666xf32> to vector<8x666xf32>
    %116 = vector.extract_strided_slice %96 {offsets = [0, 3], sizes = [8, 1], strides = [1, 1]} : vector<8x121xf32> to vector<8x1xf32>
    %117 = vector.broadcast %116 : vector<8x1xf32> to vector<8x666xf32>
    %118 = arith.mulf %115, %117 : vector<8x666xf32>
    %119 = arith.addf %113, %118 : vector<8x666xf32>
    %c4_72 = arith.constant 4 : index
    %c0_73 = arith.constant 0 : index
    %c0_74 = arith.constant 0 : index
    %120 = vector.load %arg9[%c4_72, %c0_73, %c0_74] : memref<11x8x666xf32, #tpu.memory_space<vmem>>, vector<1x8x666xf32>
    %121 = vector.shape_cast %120 : vector<1x8x666xf32> to vector<8x666xf32>
    %122 = vector.extract_strided_slice %96 {offsets = [0, 4], sizes = [8, 1], strides = [1, 1]} : vector<8x121xf32> to vector<8x1xf32>
    %123 = vector.broadcast %122 : vector<8x1xf32> to vector<8x666xf32>
    %124 = arith.mulf %121, %123 : vector<8x666xf32>
    %125 = arith.addf %119, %124 : vector<8x666xf32>
    %c5_75 = arith.constant 5 : index
    %c0_76 = arith.constant 0 : index
    %c0_77 = arith.constant 0 : index
    %126 = vector.load %arg9[%c5_75, %c0_76, %c0_77] : memref<11x8x666xf32, #tpu.memory_space<vmem>>, vector<1x8x666xf32>
    %127 = vector.shape_cast %126 : vector<1x8x666xf32> to vector<8x666xf32>
    %128 = vector.extract_strided_slice %96 {offsets = [0, 5], sizes = [8, 1], strides = [1, 1]} : vector<8x121xf32> to vector<8x1xf32>
    %129 = vector.broadcast %128 : vector<8x1xf32> to vector<8x666xf32>
    %130 = arith.mulf %127, %129 : vector<8x666xf32>
    %131 = arith.addf %125, %130 : vector<8x666xf32>
    %c6_78 = arith.constant 6 : index
    %c0_79 = arith.constant 0 : index
    %c0_80 = arith.constant 0 : index
    %132 = vector.load %arg9[%c6_78, %c0_79, %c0_80] : memref<11x8x666xf32, #tpu.memory_space<vmem>>, vector<1x8x666xf32>
    %133 = vector.shape_cast %132 : vector<1x8x666xf32> to vector<8x666xf32>
    %134 = vector.extract_strided_slice %96 {offsets = [0, 6], sizes = [8, 1], strides = [1, 1]} : vector<8x121xf32> to vector<8x1xf32>
    %135 = vector.broadcast %134 : vector<8x1xf32> to vector<8x666xf32>
    %136 = arith.mulf %133, %135 : vector<8x666xf32>
    %137 = arith.addf %131, %136 : vector<8x666xf32>
    %c7_81 = arith.constant 7 : index
    %c0_82 = arith.constant 0 : index
    %c0_83 = arith.constant 0 : index
    %138 = vector.load %arg9[%c7_81, %c0_82, %c0_83] : memref<11x8x666xf32, #tpu.memory_space<vmem>>, vector<1x8x666xf32>
    %139 = vector.shape_cast %138 : vector<1x8x666xf32> to vector<8x666xf32>
    %140 = vector.extract_strided_slice %96 {offsets = [0, 7], sizes = [8, 1], strides = [1, 1]} : vector<8x121xf32> to vector<8x1xf32>
    %141 = vector.broadcast %140 : vector<8x1xf32> to vector<8x666xf32>
    %142 = arith.mulf %139, %141 : vector<8x666xf32>
    %143 = arith.addf %137, %142 : vector<8x666xf32>
    %c8_84 = arith.constant 8 : index
    %c0_85 = arith.constant 0 : index
    %c0_86 = arith.constant 0 : index
    %144 = vector.load %arg9[%c8_84, %c0_85, %c0_86] : memref<11x8x666xf32, #tpu.memory_space<vmem>>, vector<1x8x666xf32>
    %145 = vector.shape_cast %144 : vector<1x8x666xf32> to vector<8x666xf32>
    %146 = vector.extract_strided_slice %96 {offsets = [0, 8], sizes = [8, 1], strides = [1, 1]} : vector<8x121xf32> to vector<8x1xf32>
    %147 = vector.broadcast %146 : vector<8x1xf32> to vector<8x666xf32>
    %148 = arith.mulf %145, %147 : vector<8x666xf32>
    %149 = arith.addf %143, %148 : vector<8x666xf32>
    %c9_87 = arith.constant 9 : index
    %c0_88 = arith.constant 0 : index
    %c0_89 = arith.constant 0 : index
    %150 = vector.load %arg9[%c9_87, %c0_88, %c0_89] : memref<11x8x666xf32, #tpu.memory_space<vmem>>, vector<1x8x666xf32>
    %151 = vector.shape_cast %150 : vector<1x8x666xf32> to vector<8x666xf32>
    %152 = vector.extract_strided_slice %96 {offsets = [0, 9], sizes = [8, 1], strides = [1, 1]} : vector<8x121xf32> to vector<8x1xf32>
    %153 = vector.broadcast %152 : vector<8x1xf32> to vector<8x666xf32>
    %154 = arith.mulf %151, %153 : vector<8x666xf32>
    %155 = arith.addf %149, %154 : vector<8x666xf32>
    %c10_90 = arith.constant 10 : index
    %c0_91 = arith.constant 0 : index
    %c0_92 = arith.constant 0 : index
    %156 = vector.load %arg9[%c10_90, %c0_91, %c0_92] : memref<11x8x666xf32, #tpu.memory_space<vmem>>, vector<1x8x666xf32>
    %157 = vector.shape_cast %156 : vector<1x8x666xf32> to vector<8x666xf32>
    %158 = vector.extract_strided_slice %96 {offsets = [0, 10], sizes = [8, 1], strides = [1, 1]} : vector<8x121xf32> to vector<8x1xf32>
    %159 = vector.broadcast %158 : vector<8x1xf32> to vector<8x666xf32>
    %160 = arith.mulf %157, %159 : vector<8x666xf32>
    %161 = arith.addf %155, %160 : vector<8x666xf32>
    %162 = vector.extract_strided_slice %161 {offsets = [0, 0], sizes = [8, 406], strides = [1, 1]} : vector<8x666xf32> to vector<8x406xf32>
    %c0_93 = arith.constant 0 : index
    %c0_94 = arith.constant 0 : index
    %c0_95 = arith.constant 0 : index
    %163 = vector.load %arg9[%c0_93, %c0_94, %c0_95] : memref<11x8x666xf32, #tpu.memory_space<vmem>>, vector<1x8x666xf32>
    %164 = vector.shape_cast %163 : vector<1x8x666xf32> to vector<8x666xf32>
    %165 = vector.extract_strided_slice %96 {offsets = [0, 11], sizes = [8, 1], strides = [1, 1]} : vector<8x121xf32> to vector<8x1xf32>
    %166 = vector.broadcast %165 : vector<8x1xf32> to vector<8x666xf32>
    %167 = arith.mulf %164, %166 : vector<8x666xf32>
    %c1_96 = arith.constant 1 : index
    %c0_97 = arith.constant 0 : index
    %c0_98 = arith.constant 0 : index
    %168 = vector.load %arg9[%c1_96, %c0_97, %c0_98] : memref<11x8x666xf32, #tpu.memory_space<vmem>>, vector<1x8x666xf32>
    %169 = vector.shape_cast %168 : vector<1x8x666xf32> to vector<8x666xf32>
    %170 = vector.extract_strided_slice %96 {offsets = [0, 12], sizes = [8, 1], strides = [1, 1]} : vector<8x121xf32> to vector<8x1xf32>
    %171 = vector.broadcast %170 : vector<8x1xf32> to vector<8x666xf32>
    %172 = arith.mulf %169, %171 : vector<8x666xf32>
    %173 = arith.addf %167, %172 : vector<8x666xf32>
    %c2_99 = arith.constant 2 : index
    %c0_100 = arith.constant 0 : index
    %c0_101 = arith.constant 0 : index
    %174 = vector.load %arg9[%c2_99, %c0_100, %c0_101] : memref<11x8x666xf32, #tpu.memory_space<vmem>>, vector<1x8x666xf32>
    %175 = vector.shape_cast %174 : vector<1x8x666xf32> to vector<8x666xf32>
    %176 = vector.extract_strided_slice %96 {offsets = [0, 13], sizes = [8, 1], strides = [1, 1]} : vector<8x121xf32> to vector<8x1xf32>
    %177 = vector.broadcast %176 : vector<8x1xf32> to vector<8x666xf32>
    %178 = arith.mulf %175, %177 : vector<8x666xf32>
    %179 = arith.addf %173, %178 : vector<8x666xf32>
    %c3_102 = arith.constant 3 : index
    %c0_103 = arith.constant 0 : index
    %c0_104 = arith.constant 0 : index
    %180 = vector.load %arg9[%c3_102, %c0_103, %c0_104] : memref<11x8x666xf32, #tpu.memory_space<vmem>>, vector<1x8x666xf32>
    %181 = vector.shape_cast %180 : vector<1x8x666xf32> to vector<8x666xf32>
    %182 = vector.extract_strided_slice %96 {offsets = [0, 14], sizes = [8, 1], strides = [1, 1]} : vector<8x121xf32> to vector<8x1xf32>
    %183 = vector.broadcast %182 : vector<8x1xf32> to vector<8x666xf32>
    %184 = arith.mulf %181, %183 : vector<8x666xf32>
    %185 = arith.addf %179, %184 : vector<8x666xf32>
    %c4_105 = arith.constant 4 : index
    %c0_106 = arith.constant 0 : index
    %c0_107 = arith.constant 0 : index
    %186 = vector.load %arg9[%c4_105, %c0_106, %c0_107] : memref<11x8x666xf32, #tpu.memory_space<vmem>>, vector<1x8x666xf32>
    %187 = vector.shape_cast %186 : vector<1x8x666xf32> to vector<8x666xf32>
    %188 = vector.extract_strided_slice %96 {offsets = [0, 15], sizes = [8, 1], strides = [1, 1]} : vector<8x121xf32> to vector<8x1xf32>
    %189 = vector.broadcast %188 : vector<8x1xf32> to vector<8x666xf32>
    %190 = arith.mulf %187, %189 : vector<8x666xf32>
    %191 = arith.addf %185, %190 : vector<8x666xf32>
    %c5_108 = arith.constant 5 : index
    %c0_109 = arith.constant 0 : index
    %c0_110 = arith.constant 0 : index
    %192 = vector.load %arg9[%c5_108, %c0_109, %c0_110] : memref<11x8x666xf32, #tpu.memory_space<vmem>>, vector<1x8x666xf32>
    %193 = vector.shape_cast %192 : vector<1x8x666xf32> to vector<8x666xf32>
    %194 = vector.extract_strided_slice %96 {offsets = [0, 16], sizes = [8, 1], strides = [1, 1]} : vector<8x121xf32> to vector<8x1xf32>
    %195 = vector.broadcast %194 : vector<8x1xf32> to vector<8x666xf32>
    %196 = arith.mulf %193, %195 : vector<8x666xf32>
    %197 = arith.addf %191, %196 : vector<8x666xf32>
    %c6_111 = arith.constant 6 : index
    %c0_112 = arith.constant 0 : index
    %c0_113 = arith.constant 0 : index
    %198 = vector.load %arg9[%c6_111, %c0_112, %c0_113] : memref<11x8x666xf32, #tpu.memory_space<vmem>>, vector<1x8x666xf32>
    %199 = vector.shape_cast %198 : vector<1x8x666xf32> to vector<8x666xf32>
    %200 = vector.extract_strided_slice %96 {offsets = [0, 17], sizes = [8, 1], strides = [1, 1]} : vector<8x121xf32> to vector<8x1xf32>
    %201 = vector.broadcast %200 : vector<8x1xf32> to vector<8x666xf32>
    %202 = arith.mulf %199, %201 : vector<8x666xf32>
    %203 = arith.addf %197, %202 : vector<8x666xf32>
    %c7_114 = arith.constant 7 : index
    %c0_115 = arith.constant 0 : index
    %c0_116 = arith.constant 0 : index
    %204 = vector.load %arg9[%c7_114, %c0_115, %c0_116] : memref<11x8x666xf32, #tpu.memory_space<vmem>>, vector<1x8x666xf32>
    %205 = vector.shape_cast %204 : vector<1x8x666xf32> to vector<8x666xf32>
    %206 = vector.extract_strided_slice %96 {offsets = [0, 18], sizes = [8, 1], strides = [1, 1]} : vector<8x121xf32> to vector<8x1xf32>
    %207 = vector.broadcast %206 : vector<8x1xf32> to vector<8x666xf32>
    %208 = arith.mulf %205, %207 : vector<8x666xf32>
    %209 = arith.addf %203, %208 : vector<8x666xf32>
    %c8_117 = arith.constant 8 : index
    %c0_118 = arith.constant 0 : index
    %c0_119 = arith.constant 0 : index
    %210 = vector.load %arg9[%c8_117, %c0_118, %c0_119] : memref<11x8x666xf32, #tpu.memory_space<vmem>>, vector<1x8x666xf32>
    %211 = vector.shape_cast %210 : vector<1x8x666xf32> to vector<8x666xf32>
    %212 = vector.extract_strided_slice %96 {offsets = [0, 19], sizes = [8, 1], strides = [1, 1]} : vector<8x121xf32> to vector<8x1xf32>
    %213 = vector.broadcast %212 : vector<8x1xf32> to vector<8x666xf32>
    %214 = arith.mulf %211, %213 : vector<8x666xf32>
    %215 = arith.addf %209, %214 : vector<8x666xf32>
    %c9_120 = arith.constant 9 : index
    %c0_121 = arith.constant 0 : index
    %c0_122 = arith.constant 0 : index
    %216 = vector.load %arg9[%c9_120, %c0_121, %c0_122] : memref<11x8x666xf32, #tpu.memory_space<vmem>>, vector<1x8x666xf32>
    %217 = vector.shape_cast %216 : vector<1x8x666xf32> to vector<8x666xf32>
    %218 = vector.extract_strided_slice %96 {offsets = [0, 20], sizes = [8, 1], strides = [1, 1]} : vector<8x121xf32> to vector<8x1xf32>
    %219 = vector.broadcast %218 : vector<8x1xf32> to vector<8x666xf32>
    %220 = arith.mulf %217, %219 : vector<8x666xf32>
    %221 = arith.addf %215, %220 : vector<8x666xf32>
    %c10_123 = arith.constant 10 : index
    %c0_124 = arith.constant 0 : index
    %c0_125 = arith.constant 0 : index
    %222 = vector.load %arg9[%c10_123, %c0_124, %c0_125] : memref<11x8x666xf32, #tpu.memory_space<vmem>>, vector<1x8x666xf32>
    %223 = vector.shape_cast %222 : vector<1x8x666xf32> to vector<8x666xf32>
    %224 = vector.extract_strided_slice %96 {offsets = [0, 21], sizes = [8, 1], strides = [1, 1]} : vector<8x121xf32> to vector<8x1xf32>
    %225 = vector.broadcast %224 : vector<8x1xf32> to vector<8x666xf32>
    %226 = arith.mulf %223, %225 : vector<8x666xf32>
    %227 = arith.addf %221, %226 : vector<8x666xf32>
    %228 = vector.extract_strided_slice %227 {offsets = [0, 26], sizes = [8, 406], strides = [1, 1]} : vector<8x666xf32> to vector<8x406xf32>
    %229 = arith.addf %162, %228 : vector<8x406xf32>
    %c0_126 = arith.constant 0 : index
    %c0_127 = arith.constant 0 : index
    %c0_128 = arith.constant 0 : index
    %230 = vector.load %arg9[%c0_126, %c0_127, %c0_128] : memref<11x8x666xf32, #tpu.memory_space<vmem>>, vector<1x8x666xf32>
    %231 = vector.shape_cast %230 : vector<1x8x666xf32> to vector<8x666xf32>
    %232 = vector.extract_strided_slice %96 {offsets = [0, 22], sizes = [8, 1], strides = [1, 1]} : vector<8x121xf32> to vector<8x1xf32>
    %233 = vector.broadcast %232 : vector<8x1xf32> to vector<8x666xf32>
    %234 = arith.mulf %231, %233 : vector<8x666xf32>
    %c1_129 = arith.constant 1 : index
    %c0_130 = arith.constant 0 : index
    %c0_131 = arith.constant 0 : index
    %235 = vector.load %arg9[%c1_129, %c0_130, %c0_131] : memref<11x8x666xf32, #tpu.memory_space<vmem>>, vector<1x8x666xf32>
    %236 = vector.shape_cast %235 : vector<1x8x666xf32> to vector<8x666xf32>
    %237 = vector.extract_strided_slice %96 {offsets = [0, 23], sizes = [8, 1], strides = [1, 1]} : vector<8x121xf32> to vector<8x1xf32>
    %238 = vector.broadcast %237 : vector<8x1xf32> to vector<8x666xf32>
    %239 = arith.mulf %236, %238 : vector<8x666xf32>
    %240 = arith.addf %234, %239 : vector<8x666xf32>
    %c2_132 = arith.constant 2 : index
    %c0_133 = arith.constant 0 : index
    %c0_134 = arith.constant 0 : index
    %241 = vector.load %arg9[%c2_132, %c0_133, %c0_134] : memref<11x8x666xf32, #tpu.memory_space<vmem>>, vector<1x8x666xf32>
    %242 = vector.shape_cast %241 : vector<1x8x666xf32> to vector<8x666xf32>
    %243 = vector.extract_strided_slice %96 {offsets = [0, 24], sizes = [8, 1], strides = [1, 1]} : vector<8x121xf32> to vector<8x1xf32>
    %244 = vector.broadcast %243 : vector<8x1xf32> to vector<8x666xf32>
    %245 = arith.mulf %242, %244 : vector<8x666xf32>
    %246 = arith.addf %240, %245 : vector<8x666xf32>
    %c3_135 = arith.constant 3 : index
    %c0_136 = arith.constant 0 : index
    %c0_137 = arith.constant 0 : index
    %247 = vector.load %arg9[%c3_135, %c0_136, %c0_137] : memref<11x8x666xf32, #tpu.memory_space<vmem>>, vector<1x8x666xf32>
    %248 = vector.shape_cast %247 : vector<1x8x666xf32> to vector<8x666xf32>
    %249 = vector.extract_strided_slice %96 {offsets = [0, 25], sizes = [8, 1], strides = [1, 1]} : vector<8x121xf32> to vector<8x1xf32>
    %250 = vector.broadcast %249 : vector<8x1xf32> to vector<8x666xf32>
    %251 = arith.mulf %248, %250 : vector<8x666xf32>
    %252 = arith.addf %246, %251 : vector<8x666xf32>
    %c4_138 = arith.constant 4 : index
    %c0_139 = arith.constant 0 : index
    %c0_140 = arith.constant 0 : index
    %253 = vector.load %arg9[%c4_138, %c0_139, %c0_140] : memref<11x8x666xf32, #tpu.memory_space<vmem>>, vector<1x8x666xf32>
    %254 = vector.shape_cast %253 : vector<1x8x666xf32> to vector<8x666xf32>
    %255 = vector.extract_strided_slice %96 {offsets = [0, 26], sizes = [8, 1], strides = [1, 1]} : vector<8x121xf32> to vector<8x1xf32>
    %256 = vector.broadcast %255 : vector<8x1xf32> to vector<8x666xf32>
    %257 = arith.mulf %254, %256 : vector<8x666xf32>
    %258 = arith.addf %252, %257 : vector<8x666xf32>
    %c5_141 = arith.constant 5 : index
    %c0_142 = arith.constant 0 : index
    %c0_143 = arith.constant 0 : index
    %259 = vector.load %arg9[%c5_141, %c0_142, %c0_143] : memref<11x8x666xf32, #tpu.memory_space<vmem>>, vector<1x8x666xf32>
    %260 = vector.shape_cast %259 : vector<1x8x666xf32> to vector<8x666xf32>
    %261 = vector.extract_strided_slice %96 {offsets = [0, 27], sizes = [8, 1], strides = [1, 1]} : vector<8x121xf32> to vector<8x1xf32>
    %262 = vector.broadcast %261 : vector<8x1xf32> to vector<8x666xf32>
    %263 = arith.mulf %260, %262 : vector<8x666xf32>
    %264 = arith.addf %258, %263 : vector<8x666xf32>
    %c6_144 = arith.constant 6 : index
    %c0_145 = arith.constant 0 : index
    %c0_146 = arith.constant 0 : index
    %265 = vector.load %arg9[%c6_144, %c0_145, %c0_146] : memref<11x8x666xf32, #tpu.memory_space<vmem>>, vector<1x8x666xf32>
    %266 = vector.shape_cast %265 : vector<1x8x666xf32> to vector<8x666xf32>
    %267 = vector.extract_strided_slice %96 {offsets = [0, 28], sizes = [8, 1], strides = [1, 1]} : vector<8x121xf32> to vector<8x1xf32>
    %268 = vector.broadcast %267 : vector<8x1xf32> to vector<8x666xf32>
    %269 = arith.mulf %266, %268 : vector<8x666xf32>
    %270 = arith.addf %264, %269 : vector<8x666xf32>
    %c7_147 = arith.constant 7 : index
    %c0_148 = arith.constant 0 : index
    %c0_149 = arith.constant 0 : index
    %271 = vector.load %arg9[%c7_147, %c0_148, %c0_149] : memref<11x8x666xf32, #tpu.memory_space<vmem>>, vector<1x8x666xf32>
    %272 = vector.shape_cast %271 : vector<1x8x666xf32> to vector<8x666xf32>
    %273 = vector.extract_strided_slice %96 {offsets = [0, 29], sizes = [8, 1], strides = [1, 1]} : vector<8x121xf32> to vector<8x1xf32>
    %274 = vector.broadcast %273 : vector<8x1xf32> to vector<8x666xf32>
    %275 = arith.mulf %272, %274 : vector<8x666xf32>
    %276 = arith.addf %270, %275 : vector<8x666xf32>
    %c8_150 = arith.constant 8 : index
    %c0_151 = arith.constant 0 : index
    %c0_152 = arith.constant 0 : index
    %277 = vector.load %arg9[%c8_150, %c0_151, %c0_152] : memref<11x8x666xf32, #tpu.memory_space<vmem>>, vector<1x8x666xf32>
    %278 = vector.shape_cast %277 : vector<1x8x666xf32> to vector<8x666xf32>
    %279 = vector.extract_strided_slice %96 {offsets = [0, 30], sizes = [8, 1], strides = [1, 1]} : vector<8x121xf32> to vector<8x1xf32>
    %280 = vector.broadcast %279 : vector<8x1xf32> to vector<8x666xf32>
    %281 = arith.mulf %278, %280 : vector<8x666xf32>
    %282 = arith.addf %276, %281 : vector<8x666xf32>
    %c9_153 = arith.constant 9 : index
    %c0_154 = arith.constant 0 : index
    %c0_155 = arith.constant 0 : index
    %283 = vector.load %arg9[%c9_153, %c0_154, %c0_155] : memref<11x8x666xf32, #tpu.memory_space<vmem>>, vector<1x8x666xf32>
    %284 = vector.shape_cast %283 : vector<1x8x666xf32> to vector<8x666xf32>
    %285 = vector.extract_strided_slice %96 {offsets = [0, 31], sizes = [8, 1], strides = [1, 1]} : vector<8x121xf32> to vector<8x1xf32>
    %286 = vector.broadcast %285 : vector<8x1xf32> to vector<8x666xf32>
    %287 = arith.mulf %284, %286 : vector<8x666xf32>
    %288 = arith.addf %282, %287 : vector<8x666xf32>
    %c10_156 = arith.constant 10 : index
    %c0_157 = arith.constant 0 : index
    %c0_158 = arith.constant 0 : index
    %289 = vector.load %arg9[%c10_156, %c0_157, %c0_158] : memref<11x8x666xf32, #tpu.memory_space<vmem>>, vector<1x8x666xf32>
    %290 = vector.shape_cast %289 : vector<1x8x666xf32> to vector<8x666xf32>
    %291 = vector.extract_strided_slice %96 {offsets = [0, 32], sizes = [8, 1], strides = [1, 1]} : vector<8x121xf32> to vector<8x1xf32>
    %292 = vector.broadcast %291 : vector<8x1xf32> to vector<8x666xf32>
    %293 = arith.mulf %290, %292 : vector<8x666xf32>
    %294 = arith.addf %288, %293 : vector<8x666xf32>
    %295 = vector.extract_strided_slice %294 {offsets = [0, 52], sizes = [8, 406], strides = [1, 1]} : vector<8x666xf32> to vector<8x406xf32>
    %296 = arith.addf %229, %295 : vector<8x406xf32>
    %c0_159 = arith.constant 0 : index
    %c0_160 = arith.constant 0 : index
    %c0_161 = arith.constant 0 : index
    %297 = vector.load %arg9[%c0_159, %c0_160, %c0_161] : memref<11x8x666xf32, #tpu.memory_space<vmem>>, vector<1x8x666xf32>
    %298 = vector.shape_cast %297 : vector<1x8x666xf32> to vector<8x666xf32>
    %299 = vector.extract_strided_slice %96 {offsets = [0, 33], sizes = [8, 1], strides = [1, 1]} : vector<8x121xf32> to vector<8x1xf32>
    %300 = vector.broadcast %299 : vector<8x1xf32> to vector<8x666xf32>
    %301 = arith.mulf %298, %300 : vector<8x666xf32>
    %c1_162 = arith.constant 1 : index
    %c0_163 = arith.constant 0 : index
    %c0_164 = arith.constant 0 : index
    %302 = vector.load %arg9[%c1_162, %c0_163, %c0_164] : memref<11x8x666xf32, #tpu.memory_space<vmem>>, vector<1x8x666xf32>
    %303 = vector.shape_cast %302 : vector<1x8x666xf32> to vector<8x666xf32>
    %304 = vector.extract_strided_slice %96 {offsets = [0, 34], sizes = [8, 1], strides = [1, 1]} : vector<8x121xf32> to vector<8x1xf32>
    %305 = vector.broadcast %304 : vector<8x1xf32> to vector<8x666xf32>
    %306 = arith.mulf %303, %305 : vector<8x666xf32>
    %307 = arith.addf %301, %306 : vector<8x666xf32>
    %c2_165 = arith.constant 2 : index
    %c0_166 = arith.constant 0 : index
    %c0_167 = arith.constant 0 : index
    %308 = vector.load %arg9[%c2_165, %c0_166, %c0_167] : memref<11x8x666xf32, #tpu.memory_space<vmem>>, vector<1x8x666xf32>
    %309 = vector.shape_cast %308 : vector<1x8x666xf32> to vector<8x666xf32>
    %310 = vector.extract_strided_slice %96 {offsets = [0, 35], sizes = [8, 1], strides = [1, 1]} : vector<8x121xf32> to vector<8x1xf32>
    %311 = vector.broadcast %310 : vector<8x1xf32> to vector<8x666xf32>
    %312 = arith.mulf %309, %311 : vector<8x666xf32>
    %313 = arith.addf %307, %312 : vector<8x666xf32>
    %c3_168 = arith.constant 3 : index
    %c0_169 = arith.constant 0 : index
    %c0_170 = arith.constant 0 : index
    %314 = vector.load %arg9[%c3_168, %c0_169, %c0_170] : memref<11x8x666xf32, #tpu.memory_space<vmem>>, vector<1x8x666xf32>
    %315 = vector.shape_cast %314 : vector<1x8x666xf32> to vector<8x666xf32>
    %316 = vector.extract_strided_slice %96 {offsets = [0, 36], sizes = [8, 1], strides = [1, 1]} : vector<8x121xf32> to vector<8x1xf32>
    %317 = vector.broadcast %316 : vector<8x1xf32> to vector<8x666xf32>
    %318 = arith.mulf %315, %317 : vector<8x666xf32>
    %319 = arith.addf %313, %318 : vector<8x666xf32>
    %c4_171 = arith.constant 4 : index
    %c0_172 = arith.constant 0 : index
    %c0_173 = arith.constant 0 : index
    %320 = vector.load %arg9[%c4_171, %c0_172, %c0_173] : memref<11x8x666xf32, #tpu.memory_space<vmem>>, vector<1x8x666xf32>
    %321 = vector.shape_cast %320 : vector<1x8x666xf32> to vector<8x666xf32>
    %322 = vector.extract_strided_slice %96 {offsets = [0, 37], sizes = [8, 1], strides = [1, 1]} : vector<8x121xf32> to vector<8x1xf32>
    %323 = vector.broadcast %322 : vector<8x1xf32> to vector<8x666xf32>
    %324 = arith.mulf %321, %323 : vector<8x666xf32>
    %325 = arith.addf %319, %324 : vector<8x666xf32>
    %c5_174 = arith.constant 5 : index
    %c0_175 = arith.constant 0 : index
    %c0_176 = arith.constant 0 : index
    %326 = vector.load %arg9[%c5_174, %c0_175, %c0_176] : memref<11x8x666xf32, #tpu.memory_space<vmem>>, vector<1x8x666xf32>
    %327 = vector.shape_cast %326 : vector<1x8x666xf32> to vector<8x666xf32>
    %328 = vector.extract_strided_slice %96 {offsets = [0, 38], sizes = [8, 1], strides = [1, 1]} : vector<8x121xf32> to vector<8x1xf32>
    %329 = vector.broadcast %328 : vector<8x1xf32> to vector<8x666xf32>
    %330 = arith.mulf %327, %329 : vector<8x666xf32>
    %331 = arith.addf %325, %330 : vector<8x666xf32>
    %c6_177 = arith.constant 6 : index
    %c0_178 = arith.constant 0 : index
    %c0_179 = arith.constant 0 : index
    %332 = vector.load %arg9[%c6_177, %c0_178, %c0_179] : memref<11x8x666xf32, #tpu.memory_space<vmem>>, vector<1x8x666xf32>
    %333 = vector.shape_cast %332 : vector<1x8x666xf32> to vector<8x666xf32>
    %334 = vector.extract_strided_slice %96 {offsets = [0, 39], sizes = [8, 1], strides = [1, 1]} : vector<8x121xf32> to vector<8x1xf32>
    %335 = vector.broadcast %334 : vector<8x1xf32> to vector<8x666xf32>
    %336 = arith.mulf %333, %335 : vector<8x666xf32>
    %337 = arith.addf %331, %336 : vector<8x666xf32>
    %c7_180 = arith.constant 7 : index
    %c0_181 = arith.constant 0 : index
    %c0_182 = arith.constant 0 : index
    %338 = vector.load %arg9[%c7_180, %c0_181, %c0_182] : memref<11x8x666xf32, #tpu.memory_space<vmem>>, vector<1x8x666xf32>
    %339 = vector.shape_cast %338 : vector<1x8x666xf32> to vector<8x666xf32>
    %340 = vector.extract_strided_slice %96 {offsets = [0, 40], sizes = [8, 1], strides = [1, 1]} : vector<8x121xf32> to vector<8x1xf32>
    %341 = vector.broadcast %340 : vector<8x1xf32> to vector<8x666xf32>
    %342 = arith.mulf %339, %341 : vector<8x666xf32>
    %343 = arith.addf %337, %342 : vector<8x666xf32>
    %c8_183 = arith.constant 8 : index
    %c0_184 = arith.constant 0 : index
    %c0_185 = arith.constant 0 : index
    %344 = vector.load %arg9[%c8_183, %c0_184, %c0_185] : memref<11x8x666xf32, #tpu.memory_space<vmem>>, vector<1x8x666xf32>
    %345 = vector.shape_cast %344 : vector<1x8x666xf32> to vector<8x666xf32>
    %346 = vector.extract_strided_slice %96 {offsets = [0, 41], sizes = [8, 1], strides = [1, 1]} : vector<8x121xf32> to vector<8x1xf32>
    %347 = vector.broadcast %346 : vector<8x1xf32> to vector<8x666xf32>
    %348 = arith.mulf %345, %347 : vector<8x666xf32>
    %349 = arith.addf %343, %348 : vector<8x666xf32>
    %c9_186 = arith.constant 9 : index
    %c0_187 = arith.constant 0 : index
    %c0_188 = arith.constant 0 : index
    %350 = vector.load %arg9[%c9_186, %c0_187, %c0_188] : memref<11x8x666xf32, #tpu.memory_space<vmem>>, vector<1x8x666xf32>
    %351 = vector.shape_cast %350 : vector<1x8x666xf32> to vector<8x666xf32>
    %352 = vector.extract_strided_slice %96 {offsets = [0, 42], sizes = [8, 1], strides = [1, 1]} : vector<8x121xf32> to vector<8x1xf32>
    %353 = vector.broadcast %352 : vector<8x1xf32> to vector<8x666xf32>
    %354 = arith.mulf %351, %353 : vector<8x666xf32>
    %355 = arith.addf %349, %354 : vector<8x666xf32>
    %c10_189 = arith.constant 10 : index
    %c0_190 = arith.constant 0 : index
    %c0_191 = arith.constant 0 : index
    %356 = vector.load %arg9[%c10_189, %c0_190, %c0_191] : memref<11x8x666xf32, #tpu.memory_space<vmem>>, vector<1x8x666xf32>
    %357 = vector.shape_cast %356 : vector<1x8x666xf32> to vector<8x666xf32>
    %358 = vector.extract_strided_slice %96 {offsets = [0, 43], sizes = [8, 1], strides = [1, 1]} : vector<8x121xf32> to vector<8x1xf32>
    %359 = vector.broadcast %358 : vector<8x1xf32> to vector<8x666xf32>
    %360 = arith.mulf %357, %359 : vector<8x666xf32>
    %361 = arith.addf %355, %360 : vector<8x666xf32>
    %362 = vector.extract_strided_slice %361 {offsets = [0, 78], sizes = [8, 406], strides = [1, 1]} : vector<8x666xf32> to vector<8x406xf32>
    %363 = arith.addf %296, %362 : vector<8x406xf32>
    %c0_192 = arith.constant 0 : index
    %c0_193 = arith.constant 0 : index
    %c0_194 = arith.constant 0 : index
    %364 = vector.load %arg9[%c0_192, %c0_193, %c0_194] : memref<11x8x666xf32, #tpu.memory_space<vmem>>, vector<1x8x666xf32>
    %365 = vector.shape_cast %364 : vector<1x8x666xf32> to vector<8x666xf32>
    %366 = vector.extract_strided_slice %96 {offsets = [0, 44], sizes = [8, 1], strides = [1, 1]} : vector<8x121xf32> to vector<8x1xf32>
    %367 = vector.broadcast %366 : vector<8x1xf32> to vector<8x666xf32>
    %368 = arith.mulf %365, %367 : vector<8x666xf32>
    %c1_195 = arith.constant 1 : index
    %c0_196 = arith.constant 0 : index
    %c0_197 = arith.constant 0 : index
    %369 = vector.load %arg9[%c1_195, %c0_196, %c0_197] : memref<11x8x666xf32, #tpu.memory_space<vmem>>, vector<1x8x666xf32>
    %370 = vector.shape_cast %369 : vector<1x8x666xf32> to vector<8x666xf32>
    %371 = vector.extract_strided_slice %96 {offsets = [0, 45], sizes = [8, 1], strides = [1, 1]} : vector<8x121xf32> to vector<8x1xf32>
    %372 = vector.broadcast %371 : vector<8x1xf32> to vector<8x666xf32>
    %373 = arith.mulf %370, %372 : vector<8x666xf32>
    %374 = arith.addf %368, %373 : vector<8x666xf32>
    %c2_198 = arith.constant 2 : index
    %c0_199 = arith.constant 0 : index
    %c0_200 = arith.constant 0 : index
    %375 = vector.load %arg9[%c2_198, %c0_199, %c0_200] : memref<11x8x666xf32, #tpu.memory_space<vmem>>, vector<1x8x666xf32>
    %376 = vector.shape_cast %375 : vector<1x8x666xf32> to vector<8x666xf32>
    %377 = vector.extract_strided_slice %96 {offsets = [0, 46], sizes = [8, 1], strides = [1, 1]} : vector<8x121xf32> to vector<8x1xf32>
    %378 = vector.broadcast %377 : vector<8x1xf32> to vector<8x666xf32>
    %379 = arith.mulf %376, %378 : vector<8x666xf32>
    %380 = arith.addf %374, %379 : vector<8x666xf32>
    %c3_201 = arith.constant 3 : index
    %c0_202 = arith.constant 0 : index
    %c0_203 = arith.constant 0 : index
    %381 = vector.load %arg9[%c3_201, %c0_202, %c0_203] : memref<11x8x666xf32, #tpu.memory_space<vmem>>, vector<1x8x666xf32>
    %382 = vector.shape_cast %381 : vector<1x8x666xf32> to vector<8x666xf32>
    %383 = vector.extract_strided_slice %96 {offsets = [0, 47], sizes = [8, 1], strides = [1, 1]} : vector<8x121xf32> to vector<8x1xf32>
    %384 = vector.broadcast %383 : vector<8x1xf32> to vector<8x666xf32>
    %385 = arith.mulf %382, %384 : vector<8x666xf32>
    %386 = arith.addf %380, %385 : vector<8x666xf32>
    %c4_204 = arith.constant 4 : index
    %c0_205 = arith.constant 0 : index
    %c0_206 = arith.constant 0 : index
    %387 = vector.load %arg9[%c4_204, %c0_205, %c0_206] : memref<11x8x666xf32, #tpu.memory_space<vmem>>, vector<1x8x666xf32>
    %388 = vector.shape_cast %387 : vector<1x8x666xf32> to vector<8x666xf32>
    %389 = vector.extract_strided_slice %96 {offsets = [0, 48], sizes = [8, 1], strides = [1, 1]} : vector<8x121xf32> to vector<8x1xf32>
    %390 = vector.broadcast %389 : vector<8x1xf32> to vector<8x666xf32>
    %391 = arith.mulf %388, %390 : vector<8x666xf32>
    %392 = arith.addf %386, %391 : vector<8x666xf32>
    %c5_207 = arith.constant 5 : index
    %c0_208 = arith.constant 0 : index
    %c0_209 = arith.constant 0 : index
    %393 = vector.load %arg9[%c5_207, %c0_208, %c0_209] : memref<11x8x666xf32, #tpu.memory_space<vmem>>, vector<1x8x666xf32>
    %394 = vector.shape_cast %393 : vector<1x8x666xf32> to vector<8x666xf32>
    %395 = vector.extract_strided_slice %96 {offsets = [0, 49], sizes = [8, 1], strides = [1, 1]} : vector<8x121xf32> to vector<8x1xf32>
    %396 = vector.broadcast %395 : vector<8x1xf32> to vector<8x666xf32>
    %397 = arith.mulf %394, %396 : vector<8x666xf32>
    %398 = arith.addf %392, %397 : vector<8x666xf32>
    %c6_210 = arith.constant 6 : index
    %c0_211 = arith.constant 0 : index
    %c0_212 = arith.constant 0 : index
    %399 = vector.load %arg9[%c6_210, %c0_211, %c0_212] : memref<11x8x666xf32, #tpu.memory_space<vmem>>, vector<1x8x666xf32>
    %400 = vector.shape_cast %399 : vector<1x8x666xf32> to vector<8x666xf32>
    %401 = vector.extract_strided_slice %96 {offsets = [0, 50], sizes = [8, 1], strides = [1, 1]} : vector<8x121xf32> to vector<8x1xf32>
    %402 = vector.broadcast %401 : vector<8x1xf32> to vector<8x666xf32>
    %403 = arith.mulf %400, %402 : vector<8x666xf32>
    %404 = arith.addf %398, %403 : vector<8x666xf32>
    %c7_213 = arith.constant 7 : index
    %c0_214 = arith.constant 0 : index
    %c0_215 = arith.constant 0 : index
    %405 = vector.load %arg9[%c7_213, %c0_214, %c0_215] : memref<11x8x666xf32, #tpu.memory_space<vmem>>, vector<1x8x666xf32>
    %406 = vector.shape_cast %405 : vector<1x8x666xf32> to vector<8x666xf32>
    %407 = vector.extract_strided_slice %96 {offsets = [0, 51], sizes = [8, 1], strides = [1, 1]} : vector<8x121xf32> to vector<8x1xf32>
    %408 = vector.broadcast %407 : vector<8x1xf32> to vector<8x666xf32>
    %409 = arith.mulf %406, %408 : vector<8x666xf32>
    %410 = arith.addf %404, %409 : vector<8x666xf32>
    %c8_216 = arith.constant 8 : index
    %c0_217 = arith.constant 0 : index
    %c0_218 = arith.constant 0 : index
    %411 = vector.load %arg9[%c8_216, %c0_217, %c0_218] : memref<11x8x666xf32, #tpu.memory_space<vmem>>, vector<1x8x666xf32>
    %412 = vector.shape_cast %411 : vector<1x8x666xf32> to vector<8x666xf32>
    %413 = vector.extract_strided_slice %96 {offsets = [0, 52], sizes = [8, 1], strides = [1, 1]} : vector<8x121xf32> to vector<8x1xf32>
    %414 = vector.broadcast %413 : vector<8x1xf32> to vector<8x666xf32>
    %415 = arith.mulf %412, %414 : vector<8x666xf32>
    %416 = arith.addf %410, %415 : vector<8x666xf32>
    %c9_219 = arith.constant 9 : index
    %c0_220 = arith.constant 0 : index
    %c0_221 = arith.constant 0 : index
    %417 = vector.load %arg9[%c9_219, %c0_220, %c0_221] : memref<11x8x666xf32, #tpu.memory_space<vmem>>, vector<1x8x666xf32>
    %418 = vector.shape_cast %417 : vector<1x8x666xf32> to vector<8x666xf32>
    %419 = vector.extract_strided_slice %96 {offsets = [0, 53], sizes = [8, 1], strides = [1, 1]} : vector<8x121xf32> to vector<8x1xf32>
    %420 = vector.broadcast %419 : vector<8x1xf32> to vector<8x666xf32>
    %421 = arith.mulf %418, %420 : vector<8x666xf32>
    %422 = arith.addf %416, %421 : vector<8x666xf32>
    %c10_222 = arith.constant 10 : index
    %c0_223 = arith.constant 0 : index
    %c0_224 = arith.constant 0 : index
    %423 = vector.load %arg9[%c10_222, %c0_223, %c0_224] : memref<11x8x666xf32, #tpu.memory_space<vmem>>, vector<1x8x666xf32>
    %424 = vector.shape_cast %423 : vector<1x8x666xf32> to vector<8x666xf32>
    %425 = vector.extract_strided_slice %96 {offsets = [0, 54], sizes = [8, 1], strides = [1, 1]} : vector<8x121xf32> to vector<8x1xf32>
    %426 = vector.broadcast %425 : vector<8x1xf32> to vector<8x666xf32>
    %427 = arith.mulf %424, %426 : vector<8x666xf32>
    %428 = arith.addf %422, %427 : vector<8x666xf32>
    %429 = vector.extract_strided_slice %428 {offsets = [0, 104], sizes = [8, 406], strides = [1, 1]} : vector<8x666xf32> to vector<8x406xf32>
    %430 = arith.addf %363, %429 : vector<8x406xf32>
    %c0_225 = arith.constant 0 : index
    %c0_226 = arith.constant 0 : index
    %c0_227 = arith.constant 0 : index
    %431 = vector.load %arg9[%c0_225, %c0_226, %c0_227] : memref<11x8x666xf32, #tpu.memory_space<vmem>>, vector<1x8x666xf32>
    %432 = vector.shape_cast %431 : vector<1x8x666xf32> to vector<8x666xf32>
    %433 = vector.extract_strided_slice %96 {offsets = [0, 55], sizes = [8, 1], strides = [1, 1]} : vector<8x121xf32> to vector<8x1xf32>
    %434 = vector.broadcast %433 : vector<8x1xf32> to vector<8x666xf32>
    %435 = arith.mulf %432, %434 : vector<8x666xf32>
    %c1_228 = arith.constant 1 : index
    %c0_229 = arith.constant 0 : index
    %c0_230 = arith.constant 0 : index
    %436 = vector.load %arg9[%c1_228, %c0_229, %c0_230] : memref<11x8x666xf32, #tpu.memory_space<vmem>>, vector<1x8x666xf32>
    %437 = vector.shape_cast %436 : vector<1x8x666xf32> to vector<8x666xf32>
    %438 = vector.extract_strided_slice %96 {offsets = [0, 56], sizes = [8, 1], strides = [1, 1]} : vector<8x121xf32> to vector<8x1xf32>
    %439 = vector.broadcast %438 : vector<8x1xf32> to vector<8x666xf32>
    %440 = arith.mulf %437, %439 : vector<8x666xf32>
    %441 = arith.addf %435, %440 : vector<8x666xf32>
    %c2_231 = arith.constant 2 : index
    %c0_232 = arith.constant 0 : index
    %c0_233 = arith.constant 0 : index
    %442 = vector.load %arg9[%c2_231, %c0_232, %c0_233] : memref<11x8x666xf32, #tpu.memory_space<vmem>>, vector<1x8x666xf32>
    %443 = vector.shape_cast %442 : vector<1x8x666xf32> to vector<8x666xf32>
    %444 = vector.extract_strided_slice %96 {offsets = [0, 57], sizes = [8, 1], strides = [1, 1]} : vector<8x121xf32> to vector<8x1xf32>
    %445 = vector.broadcast %444 : vector<8x1xf32> to vector<8x666xf32>
    %446 = arith.mulf %443, %445 : vector<8x666xf32>
    %447 = arith.addf %441, %446 : vector<8x666xf32>
    %c3_234 = arith.constant 3 : index
    %c0_235 = arith.constant 0 : index
    %c0_236 = arith.constant 0 : index
    %448 = vector.load %arg9[%c3_234, %c0_235, %c0_236] : memref<11x8x666xf32, #tpu.memory_space<vmem>>, vector<1x8x666xf32>
    %449 = vector.shape_cast %448 : vector<1x8x666xf32> to vector<8x666xf32>
    %450 = vector.extract_strided_slice %96 {offsets = [0, 58], sizes = [8, 1], strides = [1, 1]} : vector<8x121xf32> to vector<8x1xf32>
    %451 = vector.broadcast %450 : vector<8x1xf32> to vector<8x666xf32>
    %452 = arith.mulf %449, %451 : vector<8x666xf32>
    %453 = arith.addf %447, %452 : vector<8x666xf32>
    %c4_237 = arith.constant 4 : index
    %c0_238 = arith.constant 0 : index
    %c0_239 = arith.constant 0 : index
    %454 = vector.load %arg9[%c4_237, %c0_238, %c0_239] : memref<11x8x666xf32, #tpu.memory_space<vmem>>, vector<1x8x666xf32>
    %455 = vector.shape_cast %454 : vector<1x8x666xf32> to vector<8x666xf32>
    %456 = vector.extract_strided_slice %96 {offsets = [0, 59], sizes = [8, 1], strides = [1, 1]} : vector<8x121xf32> to vector<8x1xf32>
    %457 = vector.broadcast %456 : vector<8x1xf32> to vector<8x666xf32>
    %458 = arith.mulf %455, %457 : vector<8x666xf32>
    %459 = arith.addf %453, %458 : vector<8x666xf32>
    %c5_240 = arith.constant 5 : index
    %c0_241 = arith.constant 0 : index
    %c0_242 = arith.constant 0 : index
    %460 = vector.load %arg9[%c5_240, %c0_241, %c0_242] : memref<11x8x666xf32, #tpu.memory_space<vmem>>, vector<1x8x666xf32>
    %461 = vector.shape_cast %460 : vector<1x8x666xf32> to vector<8x666xf32>
    %462 = vector.extract_strided_slice %96 {offsets = [0, 60], sizes = [8, 1], strides = [1, 1]} : vector<8x121xf32> to vector<8x1xf32>
    %463 = vector.broadcast %462 : vector<8x1xf32> to vector<8x666xf32>
    %464 = arith.mulf %461, %463 : vector<8x666xf32>
    %465 = arith.addf %459, %464 : vector<8x666xf32>
    %c6_243 = arith.constant 6 : index
    %c0_244 = arith.constant 0 : index
    %c0_245 = arith.constant 0 : index
    %466 = vector.load %arg9[%c6_243, %c0_244, %c0_245] : memref<11x8x666xf32, #tpu.memory_space<vmem>>, vector<1x8x666xf32>
    %467 = vector.shape_cast %466 : vector<1x8x666xf32> to vector<8x666xf32>
    %468 = vector.extract_strided_slice %96 {offsets = [0, 61], sizes = [8, 1], strides = [1, 1]} : vector<8x121xf32> to vector<8x1xf32>
    %469 = vector.broadcast %468 : vector<8x1xf32> to vector<8x666xf32>
    %470 = arith.mulf %467, %469 : vector<8x666xf32>
    %471 = arith.addf %465, %470 : vector<8x666xf32>
    %c7_246 = arith.constant 7 : index
    %c0_247 = arith.constant 0 : index
    %c0_248 = arith.constant 0 : index
    %472 = vector.load %arg9[%c7_246, %c0_247, %c0_248] : memref<11x8x666xf32, #tpu.memory_space<vmem>>, vector<1x8x666xf32>
    %473 = vector.shape_cast %472 : vector<1x8x666xf32> to vector<8x666xf32>
    %474 = vector.extract_strided_slice %96 {offsets = [0, 62], sizes = [8, 1], strides = [1, 1]} : vector<8x121xf32> to vector<8x1xf32>
    %475 = vector.broadcast %474 : vector<8x1xf32> to vector<8x666xf32>
    %476 = arith.mulf %473, %475 : vector<8x666xf32>
    %477 = arith.addf %471, %476 : vector<8x666xf32>
    %c8_249 = arith.constant 8 : index
    %c0_250 = arith.constant 0 : index
    %c0_251 = arith.constant 0 : index
    %478 = vector.load %arg9[%c8_249, %c0_250, %c0_251] : memref<11x8x666xf32, #tpu.memory_space<vmem>>, vector<1x8x666xf32>
    %479 = vector.shape_cast %478 : vector<1x8x666xf32> to vector<8x666xf32>
    %480 = vector.extract_strided_slice %96 {offsets = [0, 63], sizes = [8, 1], strides = [1, 1]} : vector<8x121xf32> to vector<8x1xf32>
    %481 = vector.broadcast %480 : vector<8x1xf32> to vector<8x666xf32>
    %482 = arith.mulf %479, %481 : vector<8x666xf32>
    %483 = arith.addf %477, %482 : vector<8x666xf32>
    %c9_252 = arith.constant 9 : index
    %c0_253 = arith.constant 0 : index
    %c0_254 = arith.constant 0 : index
    %484 = vector.load %arg9[%c9_252, %c0_253, %c0_254] : memref<11x8x666xf32, #tpu.memory_space<vmem>>, vector<1x8x666xf32>
    %485 = vector.shape_cast %484 : vector<1x8x666xf32> to vector<8x666xf32>
    %486 = vector.extract_strided_slice %96 {offsets = [0, 64], sizes = [8, 1], strides = [1, 1]} : vector<8x121xf32> to vector<8x1xf32>
    %487 = vector.broadcast %486 : vector<8x1xf32> to vector<8x666xf32>
    %488 = arith.mulf %485, %487 : vector<8x666xf32>
    %489 = arith.addf %483, %488 : vector<8x666xf32>
    %c10_255 = arith.constant 10 : index
    %c0_256 = arith.constant 0 : index
    %c0_257 = arith.constant 0 : index
    %490 = vector.load %arg9[%c10_255, %c0_256, %c0_257] : memref<11x8x666xf32, #tpu.memory_space<vmem>>, vector<1x8x666xf32>
    %491 = vector.shape_cast %490 : vector<1x8x666xf32> to vector<8x666xf32>
    %492 = vector.extract_strided_slice %96 {offsets = [0, 65], sizes = [8, 1], strides = [1, 1]} : vector<8x121xf32> to vector<8x1xf32>
    %493 = vector.broadcast %492 : vector<8x1xf32> to vector<8x666xf32>
    %494 = arith.mulf %491, %493 : vector<8x666xf32>
    %495 = arith.addf %489, %494 : vector<8x666xf32>
    %496 = vector.extract_strided_slice %495 {offsets = [0, 130], sizes = [8, 406], strides = [1, 1]} : vector<8x666xf32> to vector<8x406xf32>
    %497 = arith.addf %430, %496 : vector<8x406xf32>
    %c0_258 = arith.constant 0 : index
    %c0_259 = arith.constant 0 : index
    %c0_260 = arith.constant 0 : index
    %498 = vector.load %arg9[%c0_258, %c0_259, %c0_260] : memref<11x8x666xf32, #tpu.memory_space<vmem>>, vector<1x8x666xf32>
    %499 = vector.shape_cast %498 : vector<1x8x666xf32> to vector<8x666xf32>
    %500 = vector.extract_strided_slice %96 {offsets = [0, 66], sizes = [8, 1], strides = [1, 1]} : vector<8x121xf32> to vector<8x1xf32>
    %501 = vector.broadcast %500 : vector<8x1xf32> to vector<8x666xf32>
    %502 = arith.mulf %499, %501 : vector<8x666xf32>
    %c1_261 = arith.constant 1 : index
    %c0_262 = arith.constant 0 : index
    %c0_263 = arith.constant 0 : index
    %503 = vector.load %arg9[%c1_261, %c0_262, %c0_263] : memref<11x8x666xf32, #tpu.memory_space<vmem>>, vector<1x8x666xf32>
    %504 = vector.shape_cast %503 : vector<1x8x666xf32> to vector<8x666xf32>
    %505 = vector.extract_strided_slice %96 {offsets = [0, 67], sizes = [8, 1], strides = [1, 1]} : vector<8x121xf32> to vector<8x1xf32>
    %506 = vector.broadcast %505 : vector<8x1xf32> to vector<8x666xf32>
    %507 = arith.mulf %504, %506 : vector<8x666xf32>
    %508 = arith.addf %502, %507 : vector<8x666xf32>
    %c2_264 = arith.constant 2 : index
    %c0_265 = arith.constant 0 : index
    %c0_266 = arith.constant 0 : index
    %509 = vector.load %arg9[%c2_264, %c0_265, %c0_266] : memref<11x8x666xf32, #tpu.memory_space<vmem>>, vector<1x8x666xf32>
    %510 = vector.shape_cast %509 : vector<1x8x666xf32> to vector<8x666xf32>
    %511 = vector.extract_strided_slice %96 {offsets = [0, 68], sizes = [8, 1], strides = [1, 1]} : vector<8x121xf32> to vector<8x1xf32>
    %512 = vector.broadcast %511 : vector<8x1xf32> to vector<8x666xf32>
    %513 = arith.mulf %510, %512 : vector<8x666xf32>
    %514 = arith.addf %508, %513 : vector<8x666xf32>
    %c3_267 = arith.constant 3 : index
    %c0_268 = arith.constant 0 : index
    %c0_269 = arith.constant 0 : index
    %515 = vector.load %arg9[%c3_267, %c0_268, %c0_269] : memref<11x8x666xf32, #tpu.memory_space<vmem>>, vector<1x8x666xf32>
    %516 = vector.shape_cast %515 : vector<1x8x666xf32> to vector<8x666xf32>
    %517 = vector.extract_strided_slice %96 {offsets = [0, 69], sizes = [8, 1], strides = [1, 1]} : vector<8x121xf32> to vector<8x1xf32>
    %518 = vector.broadcast %517 : vector<8x1xf32> to vector<8x666xf32>
    %519 = arith.mulf %516, %518 : vector<8x666xf32>
    %520 = arith.addf %514, %519 : vector<8x666xf32>
    %c4_270 = arith.constant 4 : index
    %c0_271 = arith.constant 0 : index
    %c0_272 = arith.constant 0 : index
    %521 = vector.load %arg9[%c4_270, %c0_271, %c0_272] : memref<11x8x666xf32, #tpu.memory_space<vmem>>, vector<1x8x666xf32>
    %522 = vector.shape_cast %521 : vector<1x8x666xf32> to vector<8x666xf32>
    %523 = vector.extract_strided_slice %96 {offsets = [0, 70], sizes = [8, 1], strides = [1, 1]} : vector<8x121xf32> to vector<8x1xf32>
    %524 = vector.broadcast %523 : vector<8x1xf32> to vector<8x666xf32>
    %525 = arith.mulf %522, %524 : vector<8x666xf32>
    %526 = arith.addf %520, %525 : vector<8x666xf32>
    %c5_273 = arith.constant 5 : index
    %c0_274 = arith.constant 0 : index
    %c0_275 = arith.constant 0 : index
    %527 = vector.load %arg9[%c5_273, %c0_274, %c0_275] : memref<11x8x666xf32, #tpu.memory_space<vmem>>, vector<1x8x666xf32>
    %528 = vector.shape_cast %527 : vector<1x8x666xf32> to vector<8x666xf32>
    %529 = vector.extract_strided_slice %96 {offsets = [0, 71], sizes = [8, 1], strides = [1, 1]} : vector<8x121xf32> to vector<8x1xf32>
    %530 = vector.broadcast %529 : vector<8x1xf32> to vector<8x666xf32>
    %531 = arith.mulf %528, %530 : vector<8x666xf32>
    %532 = arith.addf %526, %531 : vector<8x666xf32>
    %c6_276 = arith.constant 6 : index
    %c0_277 = arith.constant 0 : index
    %c0_278 = arith.constant 0 : index
    %533 = vector.load %arg9[%c6_276, %c0_277, %c0_278] : memref<11x8x666xf32, #tpu.memory_space<vmem>>, vector<1x8x666xf32>
    %534 = vector.shape_cast %533 : vector<1x8x666xf32> to vector<8x666xf32>
    %535 = vector.extract_strided_slice %96 {offsets = [0, 72], sizes = [8, 1], strides = [1, 1]} : vector<8x121xf32> to vector<8x1xf32>
    %536 = vector.broadcast %535 : vector<8x1xf32> to vector<8x666xf32>
    %537 = arith.mulf %534, %536 : vector<8x666xf32>
    %538 = arith.addf %532, %537 : vector<8x666xf32>
    %c7_279 = arith.constant 7 : index
    %c0_280 = arith.constant 0 : index
    %c0_281 = arith.constant 0 : index
    %539 = vector.load %arg9[%c7_279, %c0_280, %c0_281] : memref<11x8x666xf32, #tpu.memory_space<vmem>>, vector<1x8x666xf32>
    %540 = vector.shape_cast %539 : vector<1x8x666xf32> to vector<8x666xf32>
    %541 = vector.extract_strided_slice %96 {offsets = [0, 73], sizes = [8, 1], strides = [1, 1]} : vector<8x121xf32> to vector<8x1xf32>
    %542 = vector.broadcast %541 : vector<8x1xf32> to vector<8x666xf32>
    %543 = arith.mulf %540, %542 : vector<8x666xf32>
    %544 = arith.addf %538, %543 : vector<8x666xf32>
    %c8_282 = arith.constant 8 : index
    %c0_283 = arith.constant 0 : index
    %c0_284 = arith.constant 0 : index
    %545 = vector.load %arg9[%c8_282, %c0_283, %c0_284] : memref<11x8x666xf32, #tpu.memory_space<vmem>>, vector<1x8x666xf32>
    %546 = vector.shape_cast %545 : vector<1x8x666xf32> to vector<8x666xf32>
    %547 = vector.extract_strided_slice %96 {offsets = [0, 74], sizes = [8, 1], strides = [1, 1]} : vector<8x121xf32> to vector<8x1xf32>
    %548 = vector.broadcast %547 : vector<8x1xf32> to vector<8x666xf32>
    %549 = arith.mulf %546, %548 : vector<8x666xf32>
    %550 = arith.addf %544, %549 : vector<8x666xf32>
    %c9_285 = arith.constant 9 : index
    %c0_286 = arith.constant 0 : index
    %c0_287 = arith.constant 0 : index
    %551 = vector.load %arg9[%c9_285, %c0_286, %c0_287] : memref<11x8x666xf32, #tpu.memory_space<vmem>>, vector<1x8x666xf32>
    %552 = vector.shape_cast %551 : vector<1x8x666xf32> to vector<8x666xf32>
    %553 = vector.extract_strided_slice %96 {offsets = [0, 75], sizes = [8, 1], strides = [1, 1]} : vector<8x121xf32> to vector<8x1xf32>
    %554 = vector.broadcast %553 : vector<8x1xf32> to vector<8x666xf32>
    %555 = arith.mulf %552, %554 : vector<8x666xf32>
    %556 = arith.addf %550, %555 : vector<8x666xf32>
    %c10_288 = arith.constant 10 : index
    %c0_289 = arith.constant 0 : index
    %c0_290 = arith.constant 0 : index
    %557 = vector.load %arg9[%c10_288, %c0_289, %c0_290] : memref<11x8x666xf32, #tpu.memory_space<vmem>>, vector<1x8x666xf32>
    %558 = vector.shape_cast %557 : vector<1x8x666xf32> to vector<8x666xf32>
    %559 = vector.extract_strided_slice %96 {offsets = [0, 76], sizes = [8, 1], strides = [1, 1]} : vector<8x121xf32> to vector<8x1xf32>
    %560 = vector.broadcast %559 : vector<8x1xf32> to vector<8x666xf32>
    %561 = arith.mulf %558, %560 : vector<8x666xf32>
    %562 = arith.addf %556, %561 : vector<8x666xf32>
    %563 = vector.extract_strided_slice %562 {offsets = [0, 156], sizes = [8, 406], strides = [1, 1]} : vector<8x666xf32> to vector<8x406xf32>
    %564 = arith.addf %497, %563 : vector<8x406xf32>
    %c0_291 = arith.constant 0 : index
    %c0_292 = arith.constant 0 : index
    %c0_293 = arith.constant 0 : index
    %565 = vector.load %arg9[%c0_291, %c0_292, %c0_293] : memref<11x8x666xf32, #tpu.memory_space<vmem>>, vector<1x8x666xf32>
    %566 = vector.shape_cast %565 : vector<1x8x666xf32> to vector<8x666xf32>
    %567 = vector.extract_strided_slice %96 {offsets = [0, 77], sizes = [8, 1], strides = [1, 1]} : vector<8x121xf32> to vector<8x1xf32>
    %568 = vector.broadcast %567 : vector<8x1xf32> to vector<8x666xf32>
    %569 = arith.mulf %566, %568 : vector<8x666xf32>
    %c1_294 = arith.constant 1 : index
    %c0_295 = arith.constant 0 : index
    %c0_296 = arith.constant 0 : index
    %570 = vector.load %arg9[%c1_294, %c0_295, %c0_296] : memref<11x8x666xf32, #tpu.memory_space<vmem>>, vector<1x8x666xf32>
    %571 = vector.shape_cast %570 : vector<1x8x666xf32> to vector<8x666xf32>
    %572 = vector.extract_strided_slice %96 {offsets = [0, 78], sizes = [8, 1], strides = [1, 1]} : vector<8x121xf32> to vector<8x1xf32>
    %573 = vector.broadcast %572 : vector<8x1xf32> to vector<8x666xf32>
    %574 = arith.mulf %571, %573 : vector<8x666xf32>
    %575 = arith.addf %569, %574 : vector<8x666xf32>
    %c2_297 = arith.constant 2 : index
    %c0_298 = arith.constant 0 : index
    %c0_299 = arith.constant 0 : index
    %576 = vector.load %arg9[%c2_297, %c0_298, %c0_299] : memref<11x8x666xf32, #tpu.memory_space<vmem>>, vector<1x8x666xf32>
    %577 = vector.shape_cast %576 : vector<1x8x666xf32> to vector<8x666xf32>
    %578 = vector.extract_strided_slice %96 {offsets = [0, 79], sizes = [8, 1], strides = [1, 1]} : vector<8x121xf32> to vector<8x1xf32>
    %579 = vector.broadcast %578 : vector<8x1xf32> to vector<8x666xf32>
    %580 = arith.mulf %577, %579 : vector<8x666xf32>
    %581 = arith.addf %575, %580 : vector<8x666xf32>
    %c3_300 = arith.constant 3 : index
    %c0_301 = arith.constant 0 : index
    %c0_302 = arith.constant 0 : index
    %582 = vector.load %arg9[%c3_300, %c0_301, %c0_302] : memref<11x8x666xf32, #tpu.memory_space<vmem>>, vector<1x8x666xf32>
    %583 = vector.shape_cast %582 : vector<1x8x666xf32> to vector<8x666xf32>
    %584 = vector.extract_strided_slice %96 {offsets = [0, 80], sizes = [8, 1], strides = [1, 1]} : vector<8x121xf32> to vector<8x1xf32>
    %585 = vector.broadcast %584 : vector<8x1xf32> to vector<8x666xf32>
    %586 = arith.mulf %583, %585 : vector<8x666xf32>
    %587 = arith.addf %581, %586 : vector<8x666xf32>
    %c4_303 = arith.constant 4 : index
    %c0_304 = arith.constant 0 : index
    %c0_305 = arith.constant 0 : index
    %588 = vector.load %arg9[%c4_303, %c0_304, %c0_305] : memref<11x8x666xf32, #tpu.memory_space<vmem>>, vector<1x8x666xf32>
    %589 = vector.shape_cast %588 : vector<1x8x666xf32> to vector<8x666xf32>
    %590 = vector.extract_strided_slice %96 {offsets = [0, 81], sizes = [8, 1], strides = [1, 1]} : vector<8x121xf32> to vector<8x1xf32>
    %591 = vector.broadcast %590 : vector<8x1xf32> to vector<8x666xf32>
    %592 = arith.mulf %589, %591 : vector<8x666xf32>
    %593 = arith.addf %587, %592 : vector<8x666xf32>
    %c5_306 = arith.constant 5 : index
    %c0_307 = arith.constant 0 : index
    %c0_308 = arith.constant 0 : index
    %594 = vector.load %arg9[%c5_306, %c0_307, %c0_308] : memref<11x8x666xf32, #tpu.memory_space<vmem>>, vector<1x8x666xf32>
    %595 = vector.shape_cast %594 : vector<1x8x666xf32> to vector<8x666xf32>
    %596 = vector.extract_strided_slice %96 {offsets = [0, 82], sizes = [8, 1], strides = [1, 1]} : vector<8x121xf32> to vector<8x1xf32>
    %597 = vector.broadcast %596 : vector<8x1xf32> to vector<8x666xf32>
    %598 = arith.mulf %595, %597 : vector<8x666xf32>
    %599 = arith.addf %593, %598 : vector<8x666xf32>
    %c6_309 = arith.constant 6 : index
    %c0_310 = arith.constant 0 : index
    %c0_311 = arith.constant 0 : index
    %600 = vector.load %arg9[%c6_309, %c0_310, %c0_311] : memref<11x8x666xf32, #tpu.memory_space<vmem>>, vector<1x8x666xf32>
    %601 = vector.shape_cast %600 : vector<1x8x666xf32> to vector<8x666xf32>
    %602 = vector.extract_strided_slice %96 {offsets = [0, 83], sizes = [8, 1], strides = [1, 1]} : vector<8x121xf32> to vector<8x1xf32>
    %603 = vector.broadcast %602 : vector<8x1xf32> to vector<8x666xf32>
    %604 = arith.mulf %601, %603 : vector<8x666xf32>
    %605 = arith.addf %599, %604 : vector<8x666xf32>
    %c7_312 = arith.constant 7 : index
    %c0_313 = arith.constant 0 : index
    %c0_314 = arith.constant 0 : index
    %606 = vector.load %arg9[%c7_312, %c0_313, %c0_314] : memref<11x8x666xf32, #tpu.memory_space<vmem>>, vector<1x8x666xf32>
    %607 = vector.shape_cast %606 : vector<1x8x666xf32> to vector<8x666xf32>
    %608 = vector.extract_strided_slice %96 {offsets = [0, 84], sizes = [8, 1], strides = [1, 1]} : vector<8x121xf32> to vector<8x1xf32>
    %609 = vector.broadcast %608 : vector<8x1xf32> to vector<8x666xf32>
    %610 = arith.mulf %607, %609 : vector<8x666xf32>
    %611 = arith.addf %605, %610 : vector<8x666xf32>
    %c8_315 = arith.constant 8 : index
    %c0_316 = arith.constant 0 : index
    %c0_317 = arith.constant 0 : index
    %612 = vector.load %arg9[%c8_315, %c0_316, %c0_317] : memref<11x8x666xf32, #tpu.memory_space<vmem>>, vector<1x8x666xf32>
    %613 = vector.shape_cast %612 : vector<1x8x666xf32> to vector<8x666xf32>
    %614 = vector.extract_strided_slice %96 {offsets = [0, 85], sizes = [8, 1], strides = [1, 1]} : vector<8x121xf32> to vector<8x1xf32>
    %615 = vector.broadcast %614 : vector<8x1xf32> to vector<8x666xf32>
    %616 = arith.mulf %613, %615 : vector<8x666xf32>
    %617 = arith.addf %611, %616 : vector<8x666xf32>
    %c9_318 = arith.constant 9 : index
    %c0_319 = arith.constant 0 : index
    %c0_320 = arith.constant 0 : index
    %618 = vector.load %arg9[%c9_318, %c0_319, %c0_320] : memref<11x8x666xf32, #tpu.memory_space<vmem>>, vector<1x8x666xf32>
    %619 = vector.shape_cast %618 : vector<1x8x666xf32> to vector<8x666xf32>
    %620 = vector.extract_strided_slice %96 {offsets = [0, 86], sizes = [8, 1], strides = [1, 1]} : vector<8x121xf32> to vector<8x1xf32>
    %621 = vector.broadcast %620 : vector<8x1xf32> to vector<8x666xf32>
    %622 = arith.mulf %619, %621 : vector<8x666xf32>
    %623 = arith.addf %617, %622 : vector<8x666xf32>
    %c10_321 = arith.constant 10 : index
    %c0_322 = arith.constant 0 : index
    %c0_323 = arith.constant 0 : index
    %624 = vector.load %arg9[%c10_321, %c0_322, %c0_323] : memref<11x8x666xf32, #tpu.memory_space<vmem>>, vector<1x8x666xf32>
    %625 = vector.shape_cast %624 : vector<1x8x666xf32> to vector<8x666xf32>
    %626 = vector.extract_strided_slice %96 {offsets = [0, 87], sizes = [8, 1], strides = [1, 1]} : vector<8x121xf32> to vector<8x1xf32>
    %627 = vector.broadcast %626 : vector<8x1xf32> to vector<8x666xf32>
    %628 = arith.mulf %625, %627 : vector<8x666xf32>
    %629 = arith.addf %623, %628 : vector<8x666xf32>
    %630 = vector.extract_strided_slice %629 {offsets = [0, 182], sizes = [8, 406], strides = [1, 1]} : vector<8x666xf32> to vector<8x406xf32>
    %631 = arith.addf %564, %630 : vector<8x406xf32>
    %c0_324 = arith.constant 0 : index
    %c0_325 = arith.constant 0 : index
    %c0_326 = arith.constant 0 : index
    %632 = vector.load %arg9[%c0_324, %c0_325, %c0_326] : memref<11x8x666xf32, #tpu.memory_space<vmem>>, vector<1x8x666xf32>
    %633 = vector.shape_cast %632 : vector<1x8x666xf32> to vector<8x666xf32>
    %634 = vector.extract_strided_slice %96 {offsets = [0, 88], sizes = [8, 1], strides = [1, 1]} : vector<8x121xf32> to vector<8x1xf32>
    %635 = vector.broadcast %634 : vector<8x1xf32> to vector<8x666xf32>
    %636 = arith.mulf %633, %635 : vector<8x666xf32>
    %c1_327 = arith.constant 1 : index
    %c0_328 = arith.constant 0 : index
    %c0_329 = arith.constant 0 : index
    %637 = vector.load %arg9[%c1_327, %c0_328, %c0_329] : memref<11x8x666xf32, #tpu.memory_space<vmem>>, vector<1x8x666xf32>
    %638 = vector.shape_cast %637 : vector<1x8x666xf32> to vector<8x666xf32>
    %639 = vector.extract_strided_slice %96 {offsets = [0, 89], sizes = [8, 1], strides = [1, 1]} : vector<8x121xf32> to vector<8x1xf32>
    %640 = vector.broadcast %639 : vector<8x1xf32> to vector<8x666xf32>
    %641 = arith.mulf %638, %640 : vector<8x666xf32>
    %642 = arith.addf %636, %641 : vector<8x666xf32>
    %c2_330 = arith.constant 2 : index
    %c0_331 = arith.constant 0 : index
    %c0_332 = arith.constant 0 : index
    %643 = vector.load %arg9[%c2_330, %c0_331, %c0_332] : memref<11x8x666xf32, #tpu.memory_space<vmem>>, vector<1x8x666xf32>
    %644 = vector.shape_cast %643 : vector<1x8x666xf32> to vector<8x666xf32>
    %645 = vector.extract_strided_slice %96 {offsets = [0, 90], sizes = [8, 1], strides = [1, 1]} : vector<8x121xf32> to vector<8x1xf32>
    %646 = vector.broadcast %645 : vector<8x1xf32> to vector<8x666xf32>
    %647 = arith.mulf %644, %646 : vector<8x666xf32>
    %648 = arith.addf %642, %647 : vector<8x666xf32>
    %c3_333 = arith.constant 3 : index
    %c0_334 = arith.constant 0 : index
    %c0_335 = arith.constant 0 : index
    %649 = vector.load %arg9[%c3_333, %c0_334, %c0_335] : memref<11x8x666xf32, #tpu.memory_space<vmem>>, vector<1x8x666xf32>
    %650 = vector.shape_cast %649 : vector<1x8x666xf32> to vector<8x666xf32>
    %651 = vector.extract_strided_slice %96 {offsets = [0, 91], sizes = [8, 1], strides = [1, 1]} : vector<8x121xf32> to vector<8x1xf32>
    %652 = vector.broadcast %651 : vector<8x1xf32> to vector<8x666xf32>
    %653 = arith.mulf %650, %652 : vector<8x666xf32>
    %654 = arith.addf %648, %653 : vector<8x666xf32>
    %c4_336 = arith.constant 4 : index
    %c0_337 = arith.constant 0 : index
    %c0_338 = arith.constant 0 : index
    %655 = vector.load %arg9[%c4_336, %c0_337, %c0_338] : memref<11x8x666xf32, #tpu.memory_space<vmem>>, vector<1x8x666xf32>
    %656 = vector.shape_cast %655 : vector<1x8x666xf32> to vector<8x666xf32>
    %657 = vector.extract_strided_slice %96 {offsets = [0, 92], sizes = [8, 1], strides = [1, 1]} : vector<8x121xf32> to vector<8x1xf32>
    %658 = vector.broadcast %657 : vector<8x1xf32> to vector<8x666xf32>
    %659 = arith.mulf %656, %658 : vector<8x666xf32>
    %660 = arith.addf %654, %659 : vector<8x666xf32>
    %c5_339 = arith.constant 5 : index
    %c0_340 = arith.constant 0 : index
    %c0_341 = arith.constant 0 : index
    %661 = vector.load %arg9[%c5_339, %c0_340, %c0_341] : memref<11x8x666xf32, #tpu.memory_space<vmem>>, vector<1x8x666xf32>
    %662 = vector.shape_cast %661 : vector<1x8x666xf32> to vector<8x666xf32>
    %663 = vector.extract_strided_slice %96 {offsets = [0, 93], sizes = [8, 1], strides = [1, 1]} : vector<8x121xf32> to vector<8x1xf32>
    %664 = vector.broadcast %663 : vector<8x1xf32> to vector<8x666xf32>
    %665 = arith.mulf %662, %664 : vector<8x666xf32>
    %666 = arith.addf %660, %665 : vector<8x666xf32>
    %c6_342 = arith.constant 6 : index
    %c0_343 = arith.constant 0 : index
    %c0_344 = arith.constant 0 : index
    %667 = vector.load %arg9[%c6_342, %c0_343, %c0_344] : memref<11x8x666xf32, #tpu.memory_space<vmem>>, vector<1x8x666xf32>
    %668 = vector.shape_cast %667 : vector<1x8x666xf32> to vector<8x666xf32>
    %669 = vector.extract_strided_slice %96 {offsets = [0, 94], sizes = [8, 1], strides = [1, 1]} : vector<8x121xf32> to vector<8x1xf32>
    %670 = vector.broadcast %669 : vector<8x1xf32> to vector<8x666xf32>
    %671 = arith.mulf %668, %670 : vector<8x666xf32>
    %672 = arith.addf %666, %671 : vector<8x666xf32>
    %c7_345 = arith.constant 7 : index
    %c0_346 = arith.constant 0 : index
    %c0_347 = arith.constant 0 : index
    %673 = vector.load %arg9[%c7_345, %c0_346, %c0_347] : memref<11x8x666xf32, #tpu.memory_space<vmem>>, vector<1x8x666xf32>
    %674 = vector.shape_cast %673 : vector<1x8x666xf32> to vector<8x666xf32>
    %675 = vector.extract_strided_slice %96 {offsets = [0, 95], sizes = [8, 1], strides = [1, 1]} : vector<8x121xf32> to vector<8x1xf32>
    %676 = vector.broadcast %675 : vector<8x1xf32> to vector<8x666xf32>
    %677 = arith.mulf %674, %676 : vector<8x666xf32>
    %678 = arith.addf %672, %677 : vector<8x666xf32>
    %c8_348 = arith.constant 8 : index
    %c0_349 = arith.constant 0 : index
    %c0_350 = arith.constant 0 : index
    %679 = vector.load %arg9[%c8_348, %c0_349, %c0_350] : memref<11x8x666xf32, #tpu.memory_space<vmem>>, vector<1x8x666xf32>
    %680 = vector.shape_cast %679 : vector<1x8x666xf32> to vector<8x666xf32>
    %681 = vector.extract_strided_slice %96 {offsets = [0, 96], sizes = [8, 1], strides = [1, 1]} : vector<8x121xf32> to vector<8x1xf32>
    %682 = vector.broadcast %681 : vector<8x1xf32> to vector<8x666xf32>
    %683 = arith.mulf %680, %682 : vector<8x666xf32>
    %684 = arith.addf %678, %683 : vector<8x666xf32>
    %c9_351 = arith.constant 9 : index
    %c0_352 = arith.constant 0 : index
    %c0_353 = arith.constant 0 : index
    %685 = vector.load %arg9[%c9_351, %c0_352, %c0_353] : memref<11x8x666xf32, #tpu.memory_space<vmem>>, vector<1x8x666xf32>
    %686 = vector.shape_cast %685 : vector<1x8x666xf32> to vector<8x666xf32>
    %687 = vector.extract_strided_slice %96 {offsets = [0, 97], sizes = [8, 1], strides = [1, 1]} : vector<8x121xf32> to vector<8x1xf32>
    %688 = vector.broadcast %687 : vector<8x1xf32> to vector<8x666xf32>
    %689 = arith.mulf %686, %688 : vector<8x666xf32>
    %690 = arith.addf %684, %689 : vector<8x666xf32>
    %c10_354 = arith.constant 10 : index
    %c0_355 = arith.constant 0 : index
    %c0_356 = arith.constant 0 : index
    %691 = vector.load %arg9[%c10_354, %c0_355, %c0_356] : memref<11x8x666xf32, #tpu.memory_space<vmem>>, vector<1x8x666xf32>
    %692 = vector.shape_cast %691 : vector<1x8x666xf32> to vector<8x666xf32>
    %693 = vector.extract_strided_slice %96 {offsets = [0, 98], sizes = [8, 1], strides = [1, 1]} : vector<8x121xf32> to vector<8x1xf32>
    %694 = vector.broadcast %693 : vector<8x1xf32> to vector<8x666xf32>
    %695 = arith.mulf %692, %694 : vector<8x666xf32>
    %696 = arith.addf %690, %695 : vector<8x666xf32>
    %697 = vector.extract_strided_slice %696 {offsets = [0, 208], sizes = [8, 406], strides = [1, 1]} : vector<8x666xf32> to vector<8x406xf32>
    %698 = arith.addf %631, %697 : vector<8x406xf32>
    %c0_357 = arith.constant 0 : index
    %c0_358 = arith.constant 0 : index
    %c0_359 = arith.constant 0 : index
    %699 = vector.load %arg9[%c0_357, %c0_358, %c0_359] : memref<11x8x666xf32, #tpu.memory_space<vmem>>, vector<1x8x666xf32>
    %700 = vector.shape_cast %699 : vector<1x8x666xf32> to vector<8x666xf32>
    %701 = vector.extract_strided_slice %96 {offsets = [0, 99], sizes = [8, 1], strides = [1, 1]} : vector<8x121xf32> to vector<8x1xf32>
    %702 = vector.broadcast %701 : vector<8x1xf32> to vector<8x666xf32>
    %703 = arith.mulf %700, %702 : vector<8x666xf32>
    %c1_360 = arith.constant 1 : index
    %c0_361 = arith.constant 0 : index
    %c0_362 = arith.constant 0 : index
    %704 = vector.load %arg9[%c1_360, %c0_361, %c0_362] : memref<11x8x666xf32, #tpu.memory_space<vmem>>, vector<1x8x666xf32>
    %705 = vector.shape_cast %704 : vector<1x8x666xf32> to vector<8x666xf32>
    %706 = vector.extract_strided_slice %96 {offsets = [0, 100], sizes = [8, 1], strides = [1, 1]} : vector<8x121xf32> to vector<8x1xf32>
    %707 = vector.broadcast %706 : vector<8x1xf32> to vector<8x666xf32>
    %708 = arith.mulf %705, %707 : vector<8x666xf32>
    %709 = arith.addf %703, %708 : vector<8x666xf32>
    %c2_363 = arith.constant 2 : index
    %c0_364 = arith.constant 0 : index
    %c0_365 = arith.constant 0 : index
    %710 = vector.load %arg9[%c2_363, %c0_364, %c0_365] : memref<11x8x666xf32, #tpu.memory_space<vmem>>, vector<1x8x666xf32>
    %711 = vector.shape_cast %710 : vector<1x8x666xf32> to vector<8x666xf32>
    %712 = vector.extract_strided_slice %96 {offsets = [0, 101], sizes = [8, 1], strides = [1, 1]} : vector<8x121xf32> to vector<8x1xf32>
    %713 = vector.broadcast %712 : vector<8x1xf32> to vector<8x666xf32>
    %714 = arith.mulf %711, %713 : vector<8x666xf32>
    %715 = arith.addf %709, %714 : vector<8x666xf32>
    %c3_366 = arith.constant 3 : index
    %c0_367 = arith.constant 0 : index
    %c0_368 = arith.constant 0 : index
    %716 = vector.load %arg9[%c3_366, %c0_367, %c0_368] : memref<11x8x666xf32, #tpu.memory_space<vmem>>, vector<1x8x666xf32>
    %717 = vector.shape_cast %716 : vector<1x8x666xf32> to vector<8x666xf32>
    %718 = vector.extract_strided_slice %96 {offsets = [0, 102], sizes = [8, 1], strides = [1, 1]} : vector<8x121xf32> to vector<8x1xf32>
    %719 = vector.broadcast %718 : vector<8x1xf32> to vector<8x666xf32>
    %720 = arith.mulf %717, %719 : vector<8x666xf32>
    %721 = arith.addf %715, %720 : vector<8x666xf32>
    %c4_369 = arith.constant 4 : index
    %c0_370 = arith.constant 0 : index
    %c0_371 = arith.constant 0 : index
    %722 = vector.load %arg9[%c4_369, %c0_370, %c0_371] : memref<11x8x666xf32, #tpu.memory_space<vmem>>, vector<1x8x666xf32>
    %723 = vector.shape_cast %722 : vector<1x8x666xf32> to vector<8x666xf32>
    %724 = vector.extract_strided_slice %96 {offsets = [0, 103], sizes = [8, 1], strides = [1, 1]} : vector<8x121xf32> to vector<8x1xf32>
    %725 = vector.broadcast %724 : vector<8x1xf32> to vector<8x666xf32>
    %726 = arith.mulf %723, %725 : vector<8x666xf32>
    %727 = arith.addf %721, %726 : vector<8x666xf32>
    %c5_372 = arith.constant 5 : index
    %c0_373 = arith.constant 0 : index
    %c0_374 = arith.constant 0 : index
    %728 = vector.load %arg9[%c5_372, %c0_373, %c0_374] : memref<11x8x666xf32, #tpu.memory_space<vmem>>, vector<1x8x666xf32>
    %729 = vector.shape_cast %728 : vector<1x8x666xf32> to vector<8x666xf32>
    %730 = vector.extract_strided_slice %96 {offsets = [0, 104], sizes = [8, 1], strides = [1, 1]} : vector<8x121xf32> to vector<8x1xf32>
    %731 = vector.broadcast %730 : vector<8x1xf32> to vector<8x666xf32>
    %732 = arith.mulf %729, %731 : vector<8x666xf32>
    %733 = arith.addf %727, %732 : vector<8x666xf32>
    %c6_375 = arith.constant 6 : index
    %c0_376 = arith.constant 0 : index
    %c0_377 = arith.constant 0 : index
    %734 = vector.load %arg9[%c6_375, %c0_376, %c0_377] : memref<11x8x666xf32, #tpu.memory_space<vmem>>, vector<1x8x666xf32>
    %735 = vector.shape_cast %734 : vector<1x8x666xf32> to vector<8x666xf32>
    %736 = vector.extract_strided_slice %96 {offsets = [0, 105], sizes = [8, 1], strides = [1, 1]} : vector<8x121xf32> to vector<8x1xf32>
    %737 = vector.broadcast %736 : vector<8x1xf32> to vector<8x666xf32>
    %738 = arith.mulf %735, %737 : vector<8x666xf32>
    %739 = arith.addf %733, %738 : vector<8x666xf32>
    %c7_378 = arith.constant 7 : index
    %c0_379 = arith.constant 0 : index
    %c0_380 = arith.constant 0 : index
    %740 = vector.load %arg9[%c7_378, %c0_379, %c0_380] : memref<11x8x666xf32, #tpu.memory_space<vmem>>, vector<1x8x666xf32>
    %741 = vector.shape_cast %740 : vector<1x8x666xf32> to vector<8x666xf32>
    %742 = vector.extract_strided_slice %96 {offsets = [0, 106], sizes = [8, 1], strides = [1, 1]} : vector<8x121xf32> to vector<8x1xf32>
    %743 = vector.broadcast %742 : vector<8x1xf32> to vector<8x666xf32>
    %744 = arith.mulf %741, %743 : vector<8x666xf32>
    %745 = arith.addf %739, %744 : vector<8x666xf32>
    %c8_381 = arith.constant 8 : index
    %c0_382 = arith.constant 0 : index
    %c0_383 = arith.constant 0 : index
    %746 = vector.load %arg9[%c8_381, %c0_382, %c0_383] : memref<11x8x666xf32, #tpu.memory_space<vmem>>, vector<1x8x666xf32>
    %747 = vector.shape_cast %746 : vector<1x8x666xf32> to vector<8x666xf32>
    %748 = vector.extract_strided_slice %96 {offsets = [0, 107], sizes = [8, 1], strides = [1, 1]} : vector<8x121xf32> to vector<8x1xf32>
    %749 = vector.broadcast %748 : vector<8x1xf32> to vector<8x666xf32>
    %750 = arith.mulf %747, %749 : vector<8x666xf32>
    %751 = arith.addf %745, %750 : vector<8x666xf32>
    %c9_384 = arith.constant 9 : index
    %c0_385 = arith.constant 0 : index
    %c0_386 = arith.constant 0 : index
    %752 = vector.load %arg9[%c9_384, %c0_385, %c0_386] : memref<11x8x666xf32, #tpu.memory_space<vmem>>, vector<1x8x666xf32>
    %753 = vector.shape_cast %752 : vector<1x8x666xf32> to vector<8x666xf32>
    %754 = vector.extract_strided_slice %96 {offsets = [0, 108], sizes = [8, 1], strides = [1, 1]} : vector<8x121xf32> to vector<8x1xf32>
    %755 = vector.broadcast %754 : vector<8x1xf32> to vector<8x666xf32>
    %756 = arith.mulf %753, %755 : vector<8x666xf32>
    %757 = arith.addf %751, %756 : vector<8x666xf32>
    %c10_387 = arith.constant 10 : index
    %c0_388 = arith.constant 0 : index
    %c0_389 = arith.constant 0 : index
    %758 = vector.load %arg9[%c10_387, %c0_388, %c0_389] : memref<11x8x666xf32, #tpu.memory_space<vmem>>, vector<1x8x666xf32>
    %759 = vector.shape_cast %758 : vector<1x8x666xf32> to vector<8x666xf32>
    %760 = vector.extract_strided_slice %96 {offsets = [0, 109], sizes = [8, 1], strides = [1, 1]} : vector<8x121xf32> to vector<8x1xf32>
    %761 = vector.broadcast %760 : vector<8x1xf32> to vector<8x666xf32>
    %762 = arith.mulf %759, %761 : vector<8x666xf32>
    %763 = arith.addf %757, %762 : vector<8x666xf32>
    %764 = vector.extract_strided_slice %763 {offsets = [0, 234], sizes = [8, 406], strides = [1, 1]} : vector<8x666xf32> to vector<8x406xf32>
    %765 = arith.addf %698, %764 : vector<8x406xf32>
    %c0_390 = arith.constant 0 : index
    %c0_391 = arith.constant 0 : index
    %c0_392 = arith.constant 0 : index
    %766 = vector.load %arg9[%c0_390, %c0_391, %c0_392] : memref<11x8x666xf32, #tpu.memory_space<vmem>>, vector<1x8x666xf32>
    %767 = vector.shape_cast %766 : vector<1x8x666xf32> to vector<8x666xf32>
    %768 = vector.extract_strided_slice %96 {offsets = [0, 110], sizes = [8, 1], strides = [1, 1]} : vector<8x121xf32> to vector<8x1xf32>
    %769 = vector.broadcast %768 : vector<8x1xf32> to vector<8x666xf32>
    %770 = arith.mulf %767, %769 : vector<8x666xf32>
    %c1_393 = arith.constant 1 : index
    %c0_394 = arith.constant 0 : index
    %c0_395 = arith.constant 0 : index
    %771 = vector.load %arg9[%c1_393, %c0_394, %c0_395] : memref<11x8x666xf32, #tpu.memory_space<vmem>>, vector<1x8x666xf32>
    %772 = vector.shape_cast %771 : vector<1x8x666xf32> to vector<8x666xf32>
    %773 = vector.extract_strided_slice %96 {offsets = [0, 111], sizes = [8, 1], strides = [1, 1]} : vector<8x121xf32> to vector<8x1xf32>
    %774 = vector.broadcast %773 : vector<8x1xf32> to vector<8x666xf32>
    %775 = arith.mulf %772, %774 : vector<8x666xf32>
    %776 = arith.addf %770, %775 : vector<8x666xf32>
    %c2_396 = arith.constant 2 : index
    %c0_397 = arith.constant 0 : index
    %c0_398 = arith.constant 0 : index
    %777 = vector.load %arg9[%c2_396, %c0_397, %c0_398] : memref<11x8x666xf32, #tpu.memory_space<vmem>>, vector<1x8x666xf32>
    %778 = vector.shape_cast %777 : vector<1x8x666xf32> to vector<8x666xf32>
    %779 = vector.extract_strided_slice %96 {offsets = [0, 112], sizes = [8, 1], strides = [1, 1]} : vector<8x121xf32> to vector<8x1xf32>
    %780 = vector.broadcast %779 : vector<8x1xf32> to vector<8x666xf32>
    %781 = arith.mulf %778, %780 : vector<8x666xf32>
    %782 = arith.addf %776, %781 : vector<8x666xf32>
    %c3_399 = arith.constant 3 : index
    %c0_400 = arith.constant 0 : index
    %c0_401 = arith.constant 0 : index
    %783 = vector.load %arg9[%c3_399, %c0_400, %c0_401] : memref<11x8x666xf32, #tpu.memory_space<vmem>>, vector<1x8x666xf32>
    %784 = vector.shape_cast %783 : vector<1x8x666xf32> to vector<8x666xf32>
    %785 = vector.extract_strided_slice %96 {offsets = [0, 113], sizes = [8, 1], strides = [1, 1]} : vector<8x121xf32> to vector<8x1xf32>
    %786 = vector.broadcast %785 : vector<8x1xf32> to vector<8x666xf32>
    %787 = arith.mulf %784, %786 : vector<8x666xf32>
    %788 = arith.addf %782, %787 : vector<8x666xf32>
    %c4_402 = arith.constant 4 : index
    %c0_403 = arith.constant 0 : index
    %c0_404 = arith.constant 0 : index
    %789 = vector.load %arg9[%c4_402, %c0_403, %c0_404] : memref<11x8x666xf32, #tpu.memory_space<vmem>>, vector<1x8x666xf32>
    %790 = vector.shape_cast %789 : vector<1x8x666xf32> to vector<8x666xf32>
    %791 = vector.extract_strided_slice %96 {offsets = [0, 114], sizes = [8, 1], strides = [1, 1]} : vector<8x121xf32> to vector<8x1xf32>
    %792 = vector.broadcast %791 : vector<8x1xf32> to vector<8x666xf32>
    %793 = arith.mulf %790, %792 : vector<8x666xf32>
    %794 = arith.addf %788, %793 : vector<8x666xf32>
    %c5_405 = arith.constant 5 : index
    %c0_406 = arith.constant 0 : index
    %c0_407 = arith.constant 0 : index
    %795 = vector.load %arg9[%c5_405, %c0_406, %c0_407] : memref<11x8x666xf32, #tpu.memory_space<vmem>>, vector<1x8x666xf32>
    %796 = vector.shape_cast %795 : vector<1x8x666xf32> to vector<8x666xf32>
    %797 = vector.extract_strided_slice %96 {offsets = [0, 115], sizes = [8, 1], strides = [1, 1]} : vector<8x121xf32> to vector<8x1xf32>
    %798 = vector.broadcast %797 : vector<8x1xf32> to vector<8x666xf32>
    %799 = arith.mulf %796, %798 : vector<8x666xf32>
    %800 = arith.addf %794, %799 : vector<8x666xf32>
    %c6_408 = arith.constant 6 : index
    %c0_409 = arith.constant 0 : index
    %c0_410 = arith.constant 0 : index
    %801 = vector.load %arg9[%c6_408, %c0_409, %c0_410] : memref<11x8x666xf32, #tpu.memory_space<vmem>>, vector<1x8x666xf32>
    %802 = vector.shape_cast %801 : vector<1x8x666xf32> to vector<8x666xf32>
    %803 = vector.extract_strided_slice %96 {offsets = [0, 116], sizes = [8, 1], strides = [1, 1]} : vector<8x121xf32> to vector<8x1xf32>
    %804 = vector.broadcast %803 : vector<8x1xf32> to vector<8x666xf32>
    %805 = arith.mulf %802, %804 : vector<8x666xf32>
    %806 = arith.addf %800, %805 : vector<8x666xf32>
    %c7_411 = arith.constant 7 : index
    %c0_412 = arith.constant 0 : index
    %c0_413 = arith.constant 0 : index
    %807 = vector.load %arg9[%c7_411, %c0_412, %c0_413] : memref<11x8x666xf32, #tpu.memory_space<vmem>>, vector<1x8x666xf32>
    %808 = vector.shape_cast %807 : vector<1x8x666xf32> to vector<8x666xf32>
    %809 = vector.extract_strided_slice %96 {offsets = [0, 117], sizes = [8, 1], strides = [1, 1]} : vector<8x121xf32> to vector<8x1xf32>
    %810 = vector.broadcast %809 : vector<8x1xf32> to vector<8x666xf32>
    %811 = arith.mulf %808, %810 : vector<8x666xf32>
    %812 = arith.addf %806, %811 : vector<8x666xf32>
    %c8_414 = arith.constant 8 : index
    %c0_415 = arith.constant 0 : index
    %c0_416 = arith.constant 0 : index
    %813 = vector.load %arg9[%c8_414, %c0_415, %c0_416] : memref<11x8x666xf32, #tpu.memory_space<vmem>>, vector<1x8x666xf32>
    %814 = vector.shape_cast %813 : vector<1x8x666xf32> to vector<8x666xf32>
    %815 = vector.extract_strided_slice %96 {offsets = [0, 118], sizes = [8, 1], strides = [1, 1]} : vector<8x121xf32> to vector<8x1xf32>
    %816 = vector.broadcast %815 : vector<8x1xf32> to vector<8x666xf32>
    %817 = arith.mulf %814, %816 : vector<8x666xf32>
    %818 = arith.addf %812, %817 : vector<8x666xf32>
    %c9_417 = arith.constant 9 : index
    %c0_418 = arith.constant 0 : index
    %c0_419 = arith.constant 0 : index
    %819 = vector.load %arg9[%c9_417, %c0_418, %c0_419] : memref<11x8x666xf32, #tpu.memory_space<vmem>>, vector<1x8x666xf32>
    %820 = vector.shape_cast %819 : vector<1x8x666xf32> to vector<8x666xf32>
    %821 = vector.extract_strided_slice %96 {offsets = [0, 119], sizes = [8, 1], strides = [1, 1]} : vector<8x121xf32> to vector<8x1xf32>
    %822 = vector.broadcast %821 : vector<8x1xf32> to vector<8x666xf32>
    %823 = arith.mulf %820, %822 : vector<8x666xf32>
    %824 = arith.addf %818, %823 : vector<8x666xf32>
    %c10_420 = arith.constant 10 : index
    %c0_421 = arith.constant 0 : index
    %c0_422 = arith.constant 0 : index
    %825 = vector.load %arg9[%c10_420, %c0_421, %c0_422] : memref<11x8x666xf32, #tpu.memory_space<vmem>>, vector<1x8x666xf32>
    %826 = vector.shape_cast %825 : vector<1x8x666xf32> to vector<8x666xf32>
    %827 = vector.extract_strided_slice %96 {offsets = [0, 120], sizes = [8, 1], strides = [1, 1]} : vector<8x121xf32> to vector<8x1xf32>
    %828 = vector.broadcast %827 : vector<8x1xf32> to vector<8x666xf32>
    %829 = arith.mulf %826, %828 : vector<8x666xf32>
    %830 = arith.addf %824, %829 : vector<8x666xf32>
    %831 = vector.extract_strided_slice %830 {offsets = [0, 260], sizes = [8, 406], strides = [1, 1]} : vector<8x666xf32> to vector<8x406xf32>
    %832 = arith.addf %765, %831 : vector<8x406xf32>
    %833 = vector.extract_strided_slice %832 {offsets = [0, 0], sizes = [8, 16], strides = [1, 1]} : vector<8x406xf32> to vector<8x16xf32>
    %834 = vector.extract_strided_slice %832 {offsets = [0, 26], sizes = [8, 16], strides = [1, 1]} : vector<8x406xf32> to vector<8x16xf32>
    %835 = vector.extract_strided_slice %832 {offsets = [0, 52], sizes = [8, 16], strides = [1, 1]} : vector<8x406xf32> to vector<8x16xf32>
    %836 = vector.extract_strided_slice %832 {offsets = [0, 78], sizes = [8, 16], strides = [1, 1]} : vector<8x406xf32> to vector<8x16xf32>
    %837 = vector.extract_strided_slice %832 {offsets = [0, 104], sizes = [8, 16], strides = [1, 1]} : vector<8x406xf32> to vector<8x16xf32>
    %838 = vector.extract_strided_slice %832 {offsets = [0, 130], sizes = [8, 16], strides = [1, 1]} : vector<8x406xf32> to vector<8x16xf32>
    %839 = vector.extract_strided_slice %832 {offsets = [0, 156], sizes = [8, 16], strides = [1, 1]} : vector<8x406xf32> to vector<8x16xf32>
    %840 = vector.extract_strided_slice %832 {offsets = [0, 182], sizes = [8, 16], strides = [1, 1]} : vector<8x406xf32> to vector<8x16xf32>
    %841 = vector.extract_strided_slice %832 {offsets = [0, 208], sizes = [8, 16], strides = [1, 1]} : vector<8x406xf32> to vector<8x16xf32>
    %842 = vector.extract_strided_slice %832 {offsets = [0, 234], sizes = [8, 16], strides = [1, 1]} : vector<8x406xf32> to vector<8x16xf32>
    %843 = vector.extract_strided_slice %832 {offsets = [0, 260], sizes = [8, 16], strides = [1, 1]} : vector<8x406xf32> to vector<8x16xf32>
    %844 = vector.extract_strided_slice %832 {offsets = [0, 286], sizes = [8, 16], strides = [1, 1]} : vector<8x406xf32> to vector<8x16xf32>
    %845 = vector.extract_strided_slice %832 {offsets = [0, 312], sizes = [8, 16], strides = [1, 1]} : vector<8x406xf32> to vector<8x16xf32>
    %846 = vector.extract_strided_slice %832 {offsets = [0, 338], sizes = [8, 16], strides = [1, 1]} : vector<8x406xf32> to vector<8x16xf32>
    %847 = vector.extract_strided_slice %832 {offsets = [0, 364], sizes = [8, 16], strides = [1, 1]} : vector<8x406xf32> to vector<8x16xf32>
    %848 = vector.extract_strided_slice %832 {offsets = [0, 390], sizes = [8, 16], strides = [1, 1]} : vector<8x406xf32> to vector<8x16xf32>
    %849 = tpu.concatenate %833, %834, %835, %836, %837, %838, %839, %840, %841, %842, %843, %844, %845, %846, %847, %848 in 1 : vector<8x16xf32>, vector<8x16xf32>, vector<8x16xf32>, vector<8x16xf32>, vector<8x16xf32>, vector<8x16xf32>, vector<8x16xf32>, vector<8x16xf32>, vector<8x16xf32>, vector<8x16xf32>, vector<8x16xf32>, vector<8x16xf32>, vector<8x16xf32>, vector<8x16xf32>, vector<8x16xf32>, vector<8x16xf32> -> vector<8x256xf32>
    %850 = vector.extract_strided_slice %849 {offsets = [0, 0], sizes = [4, 256], strides = [1, 1]} : vector<8x256xf32> to vector<4x256xf32>
    %c0_423 = arith.constant 0 : index
    %c0_424 = arith.constant 0 : index
    %851 = vector.load %arg5[%c0_423, %c0_424] : memref<16x4xbf16, #tpu.memory_space<vmem>>, vector<16x4xbf16>
    %852 = arith.truncf %850 : vector<4x256xf32> to vector<4x256xbf16>
    %cst_425 = arith.constant dense<0.000000e+00> : vector<16x256xf32>
    %853 = tpu.matmul %851, %852, %cst_425 {dimension_numbers = #tpu.dot_dimension_numbers<[1], [0], [0], [1], [0, 0, 1, 1], [], []>} : vector<16x4xbf16>, vector<4x256xbf16>, vector<16x256xf32> -> vector<16x256xf32>
    %c0_426 = arith.constant 0 : index
    %c0_427 = arith.constant 0 : index
    %854 = vector.load %arg6[%c0_426, %c0_427] : memref<16x1xf32, #tpu.memory_space<vmem>>, vector<16x1xf32>
    %855 = vector.broadcast %854 : vector<16x1xf32> to vector<16x256xf32>
    %856 = arith.addf %853, %855 : vector<16x256xf32>
    %c0_428 = arith.constant 0 : index
    %c0_429 = arith.constant 0 : index
    %c0_430 = arith.constant 0 : index
    %857 = vector.load %arg1[%c0_428, %c0_429, %c0_430] : memref<2x16x256xf32, #tpu.memory_space<vmem>>, vector<1x16x256xf32>
    %858 = vector.shape_cast %857 : vector<1x16x256xf32> to vector<16x256xf32>
    %859 = arith.addf %856, %858 : vector<16x256xf32>
    %cst_431 = arith.constant 0.000000e+00 : f32
    %860 = vector.broadcast %cst_431 : f32 to vector<16x256xf32>
    %861 = arith.maximumf %859, %860 : vector<16x256xf32>
    %c0_432 = arith.constant 0 : index
    %c0_433 = arith.constant 0 : index
    %c0_434 = arith.constant 0 : index
    %862 = vector.load %arg7[%c0_432, %c0_433, %c0_434] : memref<2x16x256xf32, #tpu.memory_space<vmem>>, vector<1x16x256xf32>
    %863 = vector.shape_cast %862 : vector<1x16x256xf32> to vector<16x256xf32>
    %864 = vector.shape_cast %861 : vector<16x256xf32> to vector<1x16x256xf32>
    tpu.vector_store %arg7[%c0_432, %c0_433, %c0_434], %864 {strides = array<i32>} : memref<2x16x256xf32, #tpu.memory_space<vmem>>, vector<1x16x256xf32>,
    %865 = vector.extract_strided_slice %849 {offsets = [4, 0], sizes = [4, 256], strides = [1, 1]} : vector<8x256xf32> to vector<4x256xf32>
    %c0_435 = arith.constant 0 : index
    %c0_436 = arith.constant 0 : index
    %866 = vector.load %arg5[%c0_435, %c0_436] : memref<16x4xbf16, #tpu.memory_space<vmem>>, vector<16x4xbf16>
    %867 = arith.truncf %865 : vector<4x256xf32> to vector<4x256xbf16>
    %cst_437 = arith.constant dense<0.000000e+00> : vector<16x256xf32>
    %868 = tpu.matmul %866, %867, %cst_437 {dimension_numbers = #tpu.dot_dimension_numbers<[1], [0], [0], [1], [0, 0, 1, 1], [], []>} : vector<16x4xbf16>, vector<4x256xbf16>, vector<16x256xf32> -> vector<16x256xf32>
    %c0_438 = arith.constant 0 : index
    %c0_439 = arith.constant 0 : index
    %869 = vector.load %arg6[%c0_438, %c0_439] : memref<16x1xf32, #tpu.memory_space<vmem>>, vector<16x1xf32>
    %870 = vector.broadcast %869 : vector<16x1xf32> to vector<16x256xf32>
    %871 = arith.addf %868, %870 : vector<16x256xf32>
    %c1_440 = arith.constant 1 : index
    %c0_441 = arith.constant 0 : index
    %c0_442 = arith.constant 0 : index
    %872 = vector.load %arg1[%c1_440, %c0_441, %c0_442] : memref<2x16x256xf32, #tpu.memory_space<vmem>>, vector<1x16x256xf32>
    %873 = vector.shape_cast %872 : vector<1x16x256xf32> to vector<16x256xf32>
    %874 = arith.addf %871, %873 : vector<16x256xf32>
    %cst_443 = arith.constant 0.000000e+00 : f32
    %875 = vector.broadcast %cst_443 : f32 to vector<16x256xf32>
    %876 = arith.maximumf %874, %875 : vector<16x256xf32>
    %c1_444 = arith.constant 1 : index
    %c0_445 = arith.constant 0 : index
    %c0_446 = arith.constant 0 : index
    %877 = vector.load %arg7[%c1_444, %c0_445, %c0_446] : memref<2x16x256xf32, #tpu.memory_space<vmem>>, vector<1x16x256xf32>
    %878 = vector.shape_cast %877 : vector<1x16x256xf32> to vector<16x256xf32>
    %879 = vector.shape_cast %876 : vector<16x256xf32> to vector<1x16x256xf32>
    tpu.vector_store %arg7[%c1_444, %c0_445, %c0_446], %879 {strides = array<i32>} : memref<2x16x256xf32, #tpu.memory_space<vmem>>, vector<1x16x256xf32>,
    return
  }
  func.func @transform_0(%arg0: i32) -> (i32, i32, i32) {
    %c0_i32 = arith.constant 0 : i32
    %c0_i32_0 = arith.constant 0 : i32
    %c0_i32_1 = arith.constant 0 : i32
    return %arg0, %c0_i32, %c0_i32_0 : i32, i32, i32
  }
  func.func @transform_1(%arg0: i32) -> (i32, i32) {
    %c0_i32 = arith.constant 0 : i32
    %c0_i32_0 = arith.constant 0 : i32
    %c0_i32_1 = arith.constant 0 : i32
    return %c0_i32, %c0_i32_0 : i32, i32
  }
  func.func @transform_2(%arg0: i32) -> (i32, i32) {
    %c0_i32 = arith.constant 0 : i32
    %c0_i32_0 = arith.constant 0 : i32
    %c0_i32_1 = arith.constant 0 : i32
    return %c0_i32, %c0_i32_0 : i32, i32
  }
  func.func @transform_3(%arg0: i32) -> (i32, i32) {
    %c0_i32 = arith.constant 0 : i32
    %c0_i32_0 = arith.constant 0 : i32
    %c0_i32_1 = arith.constant 0 : i32
    return %c0_i32, %c0_i32_0 : i32, i32
  }
  func.func @transform_4(%arg0: i32) -> (i32, i32) {
    %c0_i32 = arith.constant 0 : i32
    %c0_i32_0 = arith.constant 0 : i32
    %c0_i32_1 = arith.constant 0 : i32
    return %c0_i32, %c0_i32_0 : i32, i32
  }
  func.func @transform_5(%arg0: i32) -> (i32, i32) {
    %c0_i32 = arith.constant 0 : i32
    %c0_i32_0 = arith.constant 0 : i32
    %c0_i32_1 = arith.constant 0 : i32
    return %c0_i32, %c0_i32_0 : i32, i32
  }
  func.func @transform_6(%arg0: i32) -> (i32, i32, i32) {
    %c0_i32 = arith.constant 0 : i32
    %c0_i32_0 = arith.constant 0 : i32
    %c0_i32_1 = arith.constant 0 : i32
    return %arg0, %c0_i32, %c0_i32_0 : i32, i32, i32
  }
}

</mosaic_0001>

<bundles_post_ra>
// kernel: tpu_custom_call.1
= control target key start
LH: loop header
LB: loop body
LE: loop exit
PB: predicated region body
PF: predicated region fallthrough
CT: control target
= control target key end

     0   :  { %11 = vsyncpa [#allocation5], 0  ;;  %s5721_s0 = inlined_call_operand.hbm [shape: f32[2,16,256], index: 0, kind: input, shape index: {}]   ;;  %s5722_s1 = inlined_call_operand.vmem [shape: bf16[4,16], index: 1, kind: input, shape index: {}]   ;;  %s5723_s2 = inlined_call_operand.vmem [shape: f32[4,1], index: 2, kind: input, shape index: {}]   ;;  %s5724_s3 = inlined_call_operand.vmem [shape: f32[8,121], index: 3, kind: input, shape index: {}]   ;;  %s5725_s4 = inlined_call_operand.vmem [shape: bf16[16,4], index: 4, kind: input, shape index: {}]   ;;  %s5726_s5 = inlined_call_operand.vmem [shape: f32[16,1], index: 5, kind: input, shape index: {}]   ;;  %s5727_s6 = inlined_call_operand.hbm [shape: f32[2,16,256], index: 6, kind: output, shape index: {}]  }
   0x1   :  { %12 = vsyncpa [#allocation6], 0  ;;  %s2963_s21 = smov [#allocation4]   ;;  %s2915_s25 = scalar_lea.hbm %s5721_s0, 1024 }
   0x2   :  { %s18_s22 = sshll.u32 %s2963_s21, 4  ;;  %p2916_p0 = scmp.ne.s32.totalorder %s5721_s0, %s2915_s25  ;;  %s19_s22 = int_to_ptr.vmem [resolvable:$true] %s18_s22 }
   0x3   :  { %p2919_p1 = scmp.lt.u32.totalorder %s2915_s25, %s5721_s0 }
   0x5   :  { %p2921_p2 = pnand %p2919_p1, %p2916_p0 }
   0x7   :  { %2924 = shalt.err (!%p2921_p2)
}
   0x8   :  { %s2925_s30 = scalar_lea.vmem %s19_s22, 1024  ;;  %p2930_p4 = scmp.lt.s32.totalorder %s19_s22, %s19_s22 }
   0x9   :  { %p2926_p3 = scmp.ne.s32.totalorder %s19_s22, %s2925_s30  ;;  %p2931_p5 = scmp.lt.s32.totalorder %s2925_s30, %s2925_s30 }
   0xb   :  { %p2932_p6 = por %p2931_p5, %p2930_p4 }
   0xd   :  { %p2933_p7 = pnand %p2932_p6, %p2926_p3 }
   0xf   :  { %2936 = shalt.err (!%p2933_p7)
}
  0x10   :  { %s2964_s7 = smov 256   ;;  %s2965_s8 = smov 16  }
  0x11   :  { %24 = dma.hbm_to_vmem [thread:$0]  %s5721_s0, 1024, %s19_s22, [#allocation5], %s2964_s7, %s2964_s7, %s2965_s8  }
  0x12   :  { %2959 = dma.done.wait [#allocation5], 1024  }
  0x13   :  { %2960 = vsyncadd [#allocation5], 4294966272  ;;  %v2966_v0 = vmov 0.0   ;;  %s2967_s11 = smov 127   ;;  %v5728_v1 = vmov 0   ;;  %vm159_vm0 = vcmask 293888  }
  0x14   :  { %154 = vst [vmem:[#allocation2] sm:$0xff] %v2966_v0  ;;  %266 = vrot.lane.b32.xlu1 %v2966_v0, %s2967_s11  ;;  %155 = vst [vmem:[#allocation2 + $0x8] sm:$0xff] %v2966_v0  ;;  %136 = vmatprep.mubr.bf16.mxu1 %v5728_v1  ;;  %s2969_s0 = smov 126   ;;  %v99_v2 = vld [vmem:[#allocation4 + $0x28] sm:$0xff]  ;;  %v101_v3 = vld [vmem:[#allocation4 + $0x38] sm:$0xff]  ;;  %s2970_s12 = smov 125  }
  0x15   :  { %156 = vst [vmem:[#allocation2 + $0x10] sm:$0xff] %v2966_v0  ;;  %157 = vst [vmem:[#allocation2 + $0x18] sm:$0xff] %v2966_v0  ;;  %88 = vmatprep.mubr.bf16.mxu0 %v5728_v1  ;;  %2738 = vset.pattern.permute.xlu1 %v5728_v1  ;;  %v98_v4 = vld [vmem:[#allocation4 + $0x20] sm:$0xff]  ;;  %v103_v5 = vpack.c.bf16 %v101_v3, %v99_v2  ;;  %v100_v6 = vld [vmem:[#allocation4 + $0x30] sm:$0xff]  ;;  %vm52_vm1 = vcmask 130048   ;;  %s2971_s17 = smov 124  }
  0x16   :  { %158 = vst [vmem:[#allocation2 + $0x20] sm:$0xff] %v2966_v0  ;;  %2737 = vset.pattern.permute.xlu0 %v5728_v1  ;;  %160 = vst.msk [vmem:[#allocation2 + $0x28] sm:$0xff] %vm159_vm0, %v2966_v0  ;;  %v40_v7 = vld [vmem:[#allocation4 + $0x8] sm:$0xff]  ;;  %v42_v8 = vld [vmem:[#allocation4 + $0x18] sm:$0xff]  ;;  %v102_v9 = vpack.c.bf16 %v100_v6, %v98_v4  ;;  %v2973_v17 = vmov 1   ;;  %s2975_s18 = smov 121  }
  0x17   :  { %v45_v10 = vpack.c.bf16 %v42_v8, %v40_v7  ;;  %v39_v11 = vld [vmem:[#allocation4] sm:$0xff]  ;;  %v41_v12 = vld [vmem:[#allocation4 + $0x10] sm:$0xff]  ;;  %104 = vmatprep.subr.bf16.mxu1 %v103_v5  ;;  %s2976_s19 = smov 120   ;;  %s2977_s20 = smov 119   ;;  %v2979_v19 = vmov 2   ;;  %v2980_v20 = vmov 3  }
  0x18   :  { %297 = vrot.lane.b32.xlu1 %v2966_v0, %s2969_s0  ;;  %v44_v13 = vpack.c.bf16 %v41_v12, %v39_v11  ;;  %v46_v14 = vld [vmem:[%s5723_s2] sm:$0xf]  ;;  %105 = vmatpush1.bf16.msra.mxu1 %v102_v9  ;;  %s2974_s2 = smov 122   ;;  %s2978_s21 = smov 118   ;;  %v2981_v21 = vmov 5   ;;  %v2982_v22 = vmov 6  }
  0x19   :  { %56 = vmatprep.subr.bf16.mxu0 %v45_v10  ;;  %v43_v15 = vld [vmem:[%s5722_s1] sm:$0x3]  ;;  %49 = vperm.xlu0 %2737, %v46_v14   ;;  %s2972_s1 = smov 123   ;;  %v2983_v23 = vmov 4   ;;  %v2984_v24 = vmov 8   ;;  %v2985_v25 = vmov 7  }
  0x1a   :  { %57 = vmatpush1.bf16.msra.mxu0 %v44_v13  ;;  %v3241_v18 = vld [vmem:[%s5724_s3] sm:$0xff]  ;;  %v2986_v26 = vmov 9   ;;  %v2987_v27 = vmov 10   ;;  %v2988_v28 = vmov 11   ;;  %v2989_v29 = vmov 13   ;;  %s3037_s24 = smov 7  }
  0x1b   :  { %2559 = vmatmul.mubr.msk.bf16.vlgmr.msra.gmra.mrb[0].mxu1 %vm52_vm1, %v43_v15  ;;  %v2990_v30 = vmov 12   ;;  %v2991_v31 = vmov 16   ;;  %v2992_v32 = vmov 14   ;;  %v2993_v33 = vmov 19   ;;  %s3038_s25 = smov 37   ;;  %s3040_s26 = smov 57  }
  0x1c   :  { %328 = vrot.lane.b32.xlu1 %v2966_v0, %s2970_s12  ;;  %2513 = vmatprep.mubr.bf16.mxu1 %v5728_v1  ;;  %vm258_vm2 = vcmask 211968   ;;  %v2994_v34 = vmov 15   ;;  %v2995_v35 = vmov 22   ;;  %v2996_v36 = vmov 17   ;;  %s3042_s27 = smov 77   ;;  %s3043_s28 = smov 17  }
  0x1d   :  { %v3208_v16 = vld [vmem:[#allocation2 + $0x28] sm:$0xff]  ;;  %2558 = vmatmul.mubr.msk.bf16.vlgmr.msra.gmra.mrb[0].mxu0 %vm52_vm1, %v43_v15  ;;  %2739 = vset.pattern.permute.xlu0 %v2973_v17  ;;  %v2997_v37 = vmov 25   ;;  %v2998_v38 = vmov 18   ;;  %v2999_v39 = vmov 28   ;;  %v3000_v40 = vmov 20   ;;  %s3045_s29 = smov 97  }
  0x1e   :  { %276 = vrot.lane.b32.xlu0 %v3208_v16, %s2967_s11  ;;  %2422 = vmatprep.mubr.bf16.mxu0 %v5728_v1  ;;  %259 = vst.msk [vmem:[#allocation3 + $0x28] sm:$0xff] %vm258_vm2, %v3208_v16  ;;  %v3001_v41 = vmov 31   ;;  %v3002_v42 = vmov 21   ;;  %v3003_v43 = vmov 34   ;;  %v3004_v44 = vmov 23   ;;  %s3046_s30 = smov 27  }
  0x1f   :  { %v3005_v46 = vmov 45   ;;  %v3006_v48 = vmov 24   ;;  %v3007_v49 = vmov 55   ;;  %v3008_v51 = vmov 26   ;;  %s3047_s9 = smov 117   ;;  %s3048_s10 = smov 47  }
  0x20   :  { %359 = vrot.lane.b32.xlu1 %v2966_v0, %s2971_s17  ;;  %v3009_v52 = vmov 47   ;;  %v3010_v54 = vmov 27   ;;  %v3011_v55 = vmov 67   ;;  %v3012_v57 = vmov 29   ;;  %s3049_s13 = smov 9   ;;  %s3050_s14 = smov 67  }
  0x21   :  { %v3013_v58 = vmov 58   ;;  %v3014_v61 = vmov 30   ;;  %v3015_v62 = vmov 78   ;;  %v3017_v2 = vmov 59   ;;  %s3051_s15 = smov 29   ;;  %s3052_s16 = smov 87  }
  0x22   :  { %307 = vrot.lane.b32.xlu0 %v3208_v16, %s2969_s0  ;;  %v3018_v5 = vmov 33   ;;  %v3019_v6 = vmov 88   ;;  %v3020_v9 = vmov 35   ;;  %v3021_v11 = vmov 50   ;;  %s3053_s22 = smov 107   ;;  %s3056_s23 = smov 19  }
  0x23   :  { %v3022_v14 = vmov 44   ;;  %v3023_v17 = vmov 36   ;;  %vm151_vm3 = vcmask 1043456   ;;  %v3064_v1 = vmov 51  }
  0x24   :  { %390 = vrot.lane.b32.xlu1 %v2966_v0, %s2972_s1  ;;  %vm165_vm4 = vcmask 187448   ;;  %vm190_vm5 = vcmask 203848   ;;  %vm213_vm6 = vcmask 7168   ;;  %vm170_vm7 = vcmask 400648  }
  0x25   :  { %vm175_vm8 = vcmask 613848   ;;  %vm180_vm9 = vcmask 827048   ;;  %vm185_vm10 = vcmask 1040248   ;;  %vm195_vm11 = vcmask 417048  }
  0x26   :  { %338 = vrot.lane.b32.xlu0 %v3208_v16, %s2970_s12  ;;  %vm200_vm12 = vcmask 630248   ;;  %vm206_vm13 = vcmask 843448   ;;  %vm211_vm14 = vcmask 1048456   ;;  %vm218_vm15 = vcmask 220248  }
  0x27   :  { %vm223_vm0 = vcmask 433448  }
  0x28   :  { %421 = vrot.lane.b32.xlu1 %v2966_v0, %s2974_s2 }
  0x2a   :  { %369 = vrot.lane.b32.xlu0 %v3208_v16, %s2971_s17 }
  0x2c   :  { %452 = vrot.lane.b32.xlu1 %v2966_v0, %s2975_s18 }
  0x2e   :  { %400 = vrot.lane.b32.xlu0 %v3208_v16, %s2972_s1 }
  0x30   :  { %483 = vrot.lane.b32.xlu1 %v2966_v0, %s2976_s19 }
  0x32   :  { %431 = vrot.lane.b32.xlu0 %v3208_v16, %s2974_s2 }
  0x34   :  { %514 = vrot.lane.b32.xlu1 %v2966_v0, %s2977_s20 }
  0x36   :  { %462 = vrot.lane.b32.xlu0 %v3208_v16, %s2975_s18 }
  0x38   :  { %545 = vrot.lane.b32.xlu1 %v2966_v0, %s2978_s21  ;;  %v3016_v0 = vmov 32  }
  0x3a   :  { %493 = vrot.lane.b32.xlu0 %v3208_v16, %s2976_s19 }
  0x3c   :  { %585 = vperm.xlu1 %2738, %v3241_v18  }
  0x3e   :  { %524 = vrot.lane.b32.xlu0 %v3208_v16, %s2977_s20 }
  0x40   :  { %2740 = vset.pattern.permute.xlu1 %v2979_v19 }
  0x41   :  { %617 = vperm.xlu1 %2740, %v3241_v18  }
  0x42   :  { %555 = vrot.lane.b32.xlu0 %v3208_v16, %s2978_s21 }
  0x45   :  { %2741 = vset.pattern.permute.xlu1 %v2980_v20 }
  0x46   :  { %635 = vperm.xlu1 %2741, %v3241_v18   ;;  %599 = vperm.xlu0 %2739, %v3241_v18  }
  0x4a   :  { %2743 = vset.pattern.permute.xlu1 %v2981_v21  ;;  %2742 = vset.pattern.permute.xlu0 %v2983_v23  ;;  %v3024_v21 = vmov 46  }
  0x4b   :  { %671 = vperm.xlu1 %2743, %v3241_v18   ;;  %653 = vperm.xlu0 %2742, %v3241_v18  }
  0x4f   :  { %2744 = vset.pattern.permute.xlu1 %v2982_v22  ;;  %2745 = vset.pattern.permute.xlu0 %v2985_v25 }
  0x50   :  { %689 = vperm.xlu1 %2744, %v3241_v18   ;;  %707 = vperm.xlu0 %2745, %v3241_v18  }
  0x54   :  { %2746 = vset.pattern.permute.xlu1 %v2984_v24  ;;  %2748 = vset.pattern.permute.xlu0 %v2987_v27  ;;  %v3025_v24 = vmov 56  }
  0x55   :  { %725 = vperm.xlu1 %2746, %v3241_v18   ;;  %761 = vperm.xlu0 %2748, %v3241_v18  }
  0x59   :  { %2747 = vset.pattern.permute.xlu1 %v2986_v26  ;;  %2751 = vset.pattern.permute.xlu0 %v2989_v29 }
  0x5a   :  { %743 = vperm.xlu1 %2747, %v3241_v18   ;;  %793 = vperm.xlu0 %2751, %v3241_v18  }
  0x5e   :  { %2749 = vset.pattern.permute.xlu1 %v2988_v28  ;;  %2754 = vset.pattern.permute.xlu0 %v2991_v31  ;;  %v3026_v28 = vmov 37  }
  0x5f   :  { %773 = vperm.xlu1 %2749, %v3241_v18   ;;  %829 = vperm.xlu0 %2754, %v3241_v18  }
  0x63   :  { %2750 = vset.pattern.permute.xlu1 %v2990_v30  ;;  %2757 = vset.pattern.permute.xlu0 %v2993_v33  ;;  %v3027_v30 = vmov 57  }
  0x64   :  { %781 = vperm.xlu1 %2750, %v3241_v18   ;;  %865 = vperm.xlu0 %2757, %v3241_v18  }
  0x68   :  { %2752 = vset.pattern.permute.xlu1 %v2992_v32  ;;  %2760 = vset.pattern.permute.xlu0 %v2995_v35  ;;  %v3028_v32 = vmov 66  }
  0x69   :  { %805 = vperm.xlu1 %2752, %v3241_v18   ;;  %925 = vperm.xlu0 %2760, %v3241_v18  }
  0x6d   :  { %2753 = vset.pattern.permute.xlu1 %v2994_v34  ;;  %2763 = vset.pattern.permute.xlu0 %v2997_v37  ;;  %v3029_v34 = vmov 38  }
  0x6e   :  { %817 = vperm.xlu1 %2753, %v3241_v18   ;;  %957 = vperm.xlu0 %2763, %v3241_v18  }
  0x72   :  { %2755 = vset.pattern.permute.xlu1 %v2996_v36  ;;  %2766 = vset.pattern.permute.xlu0 %v2999_v39  ;;  %v3030_v36 = vmov 48  }
  0x73   :  { %841 = vperm.xlu1 %2755, %v3241_v18   ;;  %993 = vperm.xlu0 %2766, %v3241_v18  }
  0x77   :  { %2756 = vset.pattern.permute.xlu1 %v2998_v38  ;;  %2769 = vset.pattern.permute.xlu0 %v3001_v41  ;;  %v3031_v38 = vmov 68  }
  0x78   :  { %853 = vperm.xlu1 %2756, %v3241_v18   ;;  %1029 = vperm.xlu0 %2769, %v3241_v18  }
  0x7c   :  { %2758 = vset.pattern.permute.xlu1 %v3000_v40  ;;  %2772 = vset.pattern.permute.xlu0 %v3003_v43  ;;  %v3032_v40 = vmov 77  }
  0x7d   :  { %877 = vperm.xlu1 %2758, %v3241_v18   ;;  %1085 = vperm.xlu0 %2772, %v3241_v18  }
  0x81   :  { %2759 = vset.pattern.permute.xlu1 %v3002_v42  ;;  %2775 = vset.pattern.permute.xlu0 %v3005_v46  ;;  %v3033_v42 = vmov 39  }
  0x82   :  { %889 = vperm.xlu1 %2759, %v3241_v18   ;;  %1237 = vperm.xlu0 %2775, %v3241_v18  }
  0x86   :  { %2761 = vset.pattern.permute.xlu1 %v3004_v44  ;;  %v3280_v45 = vpop.permute.xlu1 %266  ;;  %2778 = vset.pattern.permute.xlu0 %v3007_v49  ;;  %v3034_v44 = vmov 49   ;;  %v3035_v49 = vmov 69  }
  0x87   :  { %933 = vperm.xlu1 %2761, %v3241_v18   ;;  %1381 = vperm.xlu0 %2778, %v3241_v18  }
  0x8a   :  { %v3284_v47 = vpop.permute.xlu1 %297 }
  0x8b   :  { %2762 = vset.pattern.permute.xlu1 %v3006_v48  ;;  %2781 = vset.pattern.permute.xlu0 %v3009_v52 }
  0x8c   :  { %945 = vperm.xlu1 %2762, %v3241_v18   ;;  %1261 = vperm.xlu0 %2781, %v3241_v18  }
  0x8e   :  { %v3288_v50 = vpop.permute.xlu1 %328 }
  0x90   :  { %2764 = vset.pattern.permute.xlu1 %v3008_v51  ;;  %2784 = vset.pattern.permute.xlu0 %v3011_v55 }
  0x91   :  { %969 = vperm.xlu1 %2764, %v3241_v18   ;;  %1540 = vperm.xlu0 %2784, %v3241_v18  }
  0x92   :  { %v3292_v53 = vpop.permute.xlu1 %359 }
  0x95   :  { %2765 = vset.pattern.permute.xlu1 %v3010_v54  ;;  %2787 = vset.pattern.permute.xlu0 %v3013_v58 }
  0x96   :  { %981 = vperm.xlu1 %2765, %v3241_v18   ;;  %v3296_v56 = vpop.permute.xlu1 %390  ;;  %1413 = vperm.xlu0 %2787, %v3241_v18  }
  0x98   :  { %v3300_v59 = vpop.permute.xlu0 %49 }
  0x9a   :  { %2767 = vset.pattern.permute.xlu1 %v3012_v57  ;;  %v3302_v60 = vpop.permute.xlu1 %421  ;;  %2790 = vset.pattern.permute.xlu0 %v3015_v62 }
  0x9b   :  { %1005 = vperm.xlu1 %2767, %v3241_v18   ;;  %1692 = vperm.xlu0 %2790, %v3241_v18  }
  0x9c   :  { %v3306_v63 = vpop.permute.xlu0 %276 }
  0x9d   :  { %296 = vst.msk [vmem:[#allocation3 + $0x58] sm:$0xff] %vm258_vm2, %v3306_v63 }
  0x9e   :  { %v3310_v3 = vpop.permute.xlu1 %452 }
  0x9f   :  { %2768 = vset.pattern.permute.xlu1 %v3014_v61  ;;  %2793 = vset.pattern.permute.xlu0 %v3017_v2 }
  0xa0   :  { %1017 = vperm.xlu1 %2768, %v3241_v18   ;;  %1425 = vperm.xlu0 %2793, %v3241_v18   ;;  %v3314_v4 = vpop.permute.xlu0 %307 }
  0xa1   :  { %327 = vst.msk [vmem:[#allocation3 + $0x88] sm:$0xff] %vm258_vm2, %v3314_v4 }
  0xa2   :  { %v3322_v8 = vpop.permute.xlu1 %483 }
  0xa4   :  { %2770 = vset.pattern.permute.xlu1 %v3016_v0  ;;  %2796 = vset.pattern.permute.xlu0 %v3019_v6  ;;  %v3320_v7 = vpop.permute.xlu0 %338 }
  0xa5   :  { %1041 = vperm.xlu1 %2770, %v3241_v18   ;;  %1836 = vperm.xlu0 %2796, %v3241_v18   ;;  %358 = vst.msk [vmem:[#allocation3 + $0xb8] sm:$0xff] %vm258_vm2, %v3320_v7 }
  0xa6   :  { %v3331_v12 = vpop.permute.xlu1 %514 }
  0xa7   :  { %5960 = vst [vmem:[#allocation11_spill] sm:$0xff] %v3331_v12 }
  0xa8   :  { %v3326_v10 = vpop.permute.xlu0 %369 }
  0xa9   :  { %2771 = vset.pattern.permute.xlu1 %v3018_v5  ;;  %5959 = vst [vmem:[#allocation10_spill] sm:$0xff] %v3326_v10  ;;  %2799 = vset.pattern.permute.xlu0 %v3021_v11  ;;  %389 = vst.msk [vmem:[#allocation3 + $0xe8] sm:$0xff] %vm258_vm2, %v3326_v10 }
  0xaa   :  { %1077 = vperm.xlu1 %2771, %v3241_v18   ;;  %v3340_v16 = vpop.permute.xlu1 %545 }
  0xab   :  { %5963 = vst [vmem:[#allocation14_spill] sm:$0xff] %v3340_v16 }
  0xac   :  { %v3333_v13 = vpop.permute.xlu0 %400 }
  0xad   :  { %5961 = vst [vmem:[#allocation12_spill] sm:$0xff] %v3333_v13  ;;  %420 = vst.msk [vmem:[#allocation3 + $0x118] sm:$0xff] %vm258_vm2, %v3333_v13 }
  0xae   :  { %2773 = vset.pattern.permute.xlu1 %v3020_v9 }
  0xaf   :  { %1097 = vperm.xlu1 %2773, %v3241_v18  }
  0xb0   :  { %v3338_v15 = vpop.permute.xlu0 %431 }
  0xb1   :  { %5962 = vst [vmem:[#allocation13_spill] sm:$0xff] %v3338_v15  ;;  %451 = vst.msk [vmem:[#allocation3 + $0x148] sm:$0xff] %vm258_vm2, %v3338_v15 }
  0xb3   :  { %2774 = vset.pattern.permute.xlu1 %v3022_v14 }
  0xb4   :  { %1229 = vperm.xlu1 %2774, %v3241_v18   ;;  %v3345_v19 = vpop.permute.xlu0 %462 }
  0xb5   :  { %5964 = vst [vmem:[#allocation15_spill] sm:$0xff] %v3345_v19  ;;  %482 = vst.msk [vmem:[#allocation3 + $0x178] sm:$0xff] %vm258_vm2, %v3345_v19 }
  0xb8   :  { %2776 = vset.pattern.permute.xlu1 %v3023_v17  ;;  %v3352_v22 = vpop.permute.xlu0 %493  ;;  %v3036_v17 = vmov 79  }
  0xb9   :  { %1109 = vperm.xlu1 %2776, %v3241_v18   ;;  %5966 = vst [vmem:[#allocation17_spill] sm:$0xff] %v3352_v22  ;;  %513 = vst.msk [vmem:[#allocation3 + $0x1a8] sm:$0xff] %vm258_vm2, %v3352_v22 }
  0xbb   :  { %v3347_v20 = vpop.permute.xlu1 %585 }
  0xbc   :  { %5965 = vst [vmem:[#allocation16_spill] sm:$0xff] %v3347_v20  ;;  %v3358_v25 = vpop.permute.xlu0 %524 }
  0xbd   :  { %2777 = vset.pattern.permute.xlu1 %v3024_v21  ;;  %5968 = vst [vmem:[#allocation19_spill] sm:$0xff] %v3358_v25  ;;  %544 = vst.msk [vmem:[#allocation3 + $0x1d8] sm:$0xff] %vm258_vm2, %v3358_v25 }
  0xbe   :  { %1249 = vperm.xlu1 %2777, %v3241_v18  }
  0xc0   :  { %v3356_v23 = vpop.permute.xlu1 %617  ;;  %v3365_v27 = vpop.permute.xlu0 %555 }
  0xc1   :  { %5967 = vst [vmem:[#allocation18_spill] sm:$0xff] %v3356_v23  ;;  %5970 = vst [vmem:[#allocation21_spill] sm:$0xff] %v3365_v27 }
  0xc2   :  { %2779 = vset.pattern.permute.xlu1 %v3025_v24  ;;  %575 = vst.msk [vmem:[#allocation3 + $0x208] sm:$0xff] %vm258_vm2, %v3365_v27  ;;  %vm228_vm2 = vcmask 646648  }
  0xc3   :  { %1389 = vperm.xlu1 %2779, %v3241_v18  }
  0xc5   :  { %v3363_v26 = vpop.permute.xlu1 %635  ;;  %v3396_v51 = vpop.permute.xlu0 %599 }
  0xc6   :  { %5969 = vst [vmem:[#allocation20_spill] sm:$0xff] %v3363_v26  ;;  %5979 = vst [vmem:[#allocation30_spill] sm:$0xff] %v3396_v51 }
  0xc7   :  { %2780 = vset.pattern.permute.xlu1 %v3026_v28 }
  0xc8   :  { %1121 = vperm.xlu1 %2780, %v3241_v18  }
  0xca   :  { %v3370_v29 = vpop.permute.xlu1 %671  ;;  %v3408_v28 = vpop.permute.xlu0 %653 }
  0xcb   :  { %5971 = vst [vmem:[#allocation22_spill] sm:$0xff] %v3370_v29  ;;  %5981 = vst [vmem:[#allocation32_spill] sm:$0xff] %v3408_v28 }
  0xcc   :  { %2782 = vset.pattern.permute.xlu1 %v3027_v30 }
  0xcd   :  { %1401 = vperm.xlu1 %2782, %v3241_v18  }
  0xcf   :  { %v3373_v31 = vpop.permute.xlu1 %689 }
  0xd0   :  { %5972 = vst [vmem:[#allocation23_spill] sm:$0xff] %v3373_v31 }
  0xd1   :  { %2783 = vset.pattern.permute.xlu1 %v3028_v32  ;;  %v3413_v32 = vpop.permute.xlu0 %707 }
  0xd2   :  { %1532 = vperm.xlu1 %2783, %v3241_v18   ;;  %5983 = vst [vmem:[#allocation34_spill] sm:$0xff] %v3413_v32  ;;  %v3066_v32 = vmov 81  }
  0xd4   :  { %v3376_v33 = vpop.permute.xlu1 %725 }
  0xd5   :  { %5973 = vst [vmem:[#allocation24_spill] sm:$0xff] %v3376_v33 }
  0xd6   :  { %2785 = vset.pattern.permute.xlu1 %v3029_v34 }
  0xd7   :  { %1133 = vperm.xlu1 %2785, %v3241_v18  }
  0xd9   :  { %v3379_v35 = vpop.permute.xlu1 %743 }
  0xda   :  { %5974 = vst [vmem:[#allocation25_spill] sm:$0xff] %v3379_v35  ;;  %v3065_v35 = vmov 71  }
  0xdb   :  { %2786 = vset.pattern.permute.xlu1 %v3030_v36  ;;  %v3041_v36 = vmov 40  }
  0xdc   :  { %1273 = vperm.xlu1 %2786, %v3241_v18  }
  0xde   :  { %v3382_v37 = vpop.permute.xlu1 %773 }
  0xe0   :  { %2788 = vset.pattern.permute.xlu1 %v3031_v38 }
  0xe1   :  { %1552 = vperm.xlu1 %2788, %v3241_v18  }
  0xe3   :  { %v3385_v39 = vpop.permute.xlu1 %781 }
  0xe4   :  { %5975 = vst [vmem:[#allocation26_spill] sm:$0xff] %v3385_v39 }
  0xe5   :  { %2789 = vset.pattern.permute.xlu1 %v3032_v40  ;;  %v3420_v40 = vpop.permute.xlu0 %761 }
  0xe6   :  { %1684 = vperm.xlu1 %2789, %v3241_v18   ;;  %5986 = vst [vmem:[#allocation37_spill] sm:$0xff] %v3420_v40 }
  0xe8   :  { %v3388_v41 = vpop.permute.xlu1 %805 }
  0xe9   :  { %5976 = vst [vmem:[#allocation27_spill] sm:$0xff] %v3388_v41 }
  0xea   :  { %2791 = vset.pattern.permute.xlu1 %v3033_v42  ;;  %v3044_v42 = vmov 60  }
  0xeb   :  { %1145 = vperm.xlu1 %2791, %v3241_v18  }
  0xed   :  { %v3391_v43 = vpop.permute.xlu1 %817 }
  0xee   :  { %5977 = vst [vmem:[#allocation28_spill] sm:$0xff] %v3391_v43  ;;  %v138_v48 = vpop.f32.mrb[0].mxu1 }
  0xef   :  { %2792 = vset.pattern.permute.xlu1 %v3034_v44  ;;  %v139_v52 = vadd.f32 %v138_v48, %v3300_v59  ;;  %v140_v55 = vpop.f32.mrb[1].mxu1  ;;  %v3424_v48 = vpop.permute.xlu0 %793 }
  0xf0   :  { %1285 = vperm.xlu1 %2792, %v3241_v18   ;;  %v90_v54 = vpop.f32.mrb[0].mxu0  ;;  %v141_v58 = vadd.f32 %v140_v55, %v3300_v59  ;;  %v142_v62 = vpop.f32.mrb[2].mxu1  ;;  %5988 = vst [vmem:[#allocation39_spill] sm:$0xff] %v3424_v48 }
  0xf1   :  { %v91_v57 = vadd.f32 %v90_v54, %v3300_v59  ;;  %v92_v61 = vpop.f32.mrb[1].mxu0  ;;  %v147_v0 = vrot.slane %v139_v52, 4  ;;  %v143_v6 = vpop.f32.mrb[3].mxu1 }
  0xf2   :  { %v3394_v46 = vpop.permute.xlu1 %841  ;;  %v93_v5 = vadd.f32 %v92_v61, %v3300_v59  ;;  %v148_v9 = vrot.slane %v141_v58, 4  ;;  %v94_v11 = vpop.f32.mrb[2].mxu0  ;;  %v3039_v59 = vmov 89   ;;  %v3054_v58 = vmov 80  }
  0xf3   :  { %5978 = vst [vmem:[#allocation29_spill] sm:$0xff] %v3394_v46  ;;  %v152_v14 = vsel %vm151_vm3, %v91_v57, %v147_v0  ;;  %v95_v21 = vpop.f32.mrb[3].mxu0  ;;  %v3428_v52 = vpop.permute.xlu0 %829  ;;  %v3055_v0 = vmov 100  }
  0xf4   :  { %2794 = vset.pattern.permute.xlu1 %v3035_v49  ;;  %162 = vrot.lane.b32.xlu0 %v152_v14, %s3037_s24  ;;  %v153_v24 = vsel %vm151_vm3, %v93_v5, %v148_v9  ;;  %5990 = vst [vmem:[#allocation41_spill] sm:$0xff] %v3428_v52  ;;  %v3057_v9 = vmov 61   ;;  %v3059_v21 = vmov 91   ;;  %vm233_vm3 = vcmask 859848   ;;  %s3117_s24 = smov 100  }
  0xf5   :  { %1564 = vperm.xlu1 %2794, %v3241_v18  }
  0xf7   :  { %v3402_v2 = vpop.permute.xlu1 %853  ;;  %v3432_v55 = vpop.permute.xlu0 %865 }
  0xf8   :  { %5980 = vst [vmem:[#allocation31_spill] sm:$0xff] %v3402_v2  ;;  %177 = vrot.lane.b32.xlu0 %v152_v14, %s3038_s25  ;;  %5992 = vst [vmem:[#allocation43_spill] sm:$0xff] %v3432_v55  ;;  %s3118_s25 = smov 74  }
  0xf9   :  { %2795 = vset.pattern.permute.xlu1 %v3036_v17  ;;  %v3058_v17 = vmov 70  }
  0xfa   :  { %1704 = vperm.xlu1 %2795, %v3241_v18  }
  0xfb   :  { %v3437_v61 = vpop.permute.xlu0 %925 }
  0xfc   :  { %v3410_v30 = vpop.permute.xlu1 %877  ;;  %187 = vrot.lane.b32.xlu0 %v152_v14, %s3040_s26  ;;  %5994 = vst [vmem:[#allocation45_spill] sm:$0xff] %v3437_v61  ;;  %s3119_s26 = smov 48  }
  0xfd   :  { %5982 = vst [vmem:[#allocation33_spill] sm:$0xff] %v3410_v30  ;;  %v3071_v30 = vmov 52  }
  0xfe   :  { %2797 = vset.pattern.permute.xlu1 %v3039_v59 }
  0xff   :  { %1844 = vperm.xlu1 %2797, %v3241_v18   ;;  %v3446_v6 = vpop.permute.xlu0 %957 }
 0x100   :  { %197 = vrot.lane.b32.xlu0 %v152_v14, %s3042_s27  ;;  %5997 = vst [vmem:[#allocation48_spill] sm:$0xff] %v3446_v6  ;;  %s3120_s27 = smov 22  }
 0x101   :  { %v3415_v34 = vpop.permute.xlu1 %889 }
 0x102   :  { %5984 = vst [vmem:[#allocation35_spill] sm:$0xff] %v3415_v34 }
 0x103   :  { %2798 = vset.pattern.permute.xlu1 %v3041_v36  ;;  %v3060_v36 = vmov 90  }
 0x104   :  { %1157 = vperm.xlu1 %2798, %v3241_v18   ;;  %208 = vrot.lane.b32.xlu0 %v153_v24, %s3045_s29  ;;  %s3123_s29 = smov 38  }
 0x106   :  { %v3418_v38 = vpop.permute.xlu1 %933 }
 0x107   :  { %5985 = vst [vmem:[#allocation36_spill] sm:$0xff] %v3418_v38 }
 0x108   :  { %167 = vrot.lane.b32.xlu1 %v152_v14, %s3043_s28  ;;  %220 = vrot.lane.b32.xlu0 %v153_v24, %s3047_s9  ;;  %s3122_s28 = smov 98   ;;  %s3126_s9 = smov 18  }
 0x109   :  { %2800 = vset.pattern.permute.xlu1 %v3044_v42  ;;  %v3061_v42 = vmov 111  }
 0x10b   :  { %v3422_v44 = vpop.permute.xlu1 %945 }
 0x10c   :  { %5987 = vst [vmem:[#allocation38_spill] sm:$0xff] %v3422_v44  ;;  %172 = vrot.lane.b32.xlu1 %v152_v14, %s3046_s30  ;;  %230 = vrot.lane.b32.xlu0 %v153_v24, %s3049_s13  ;;  %s3124_s30 = smov 88   ;;  %s3128_s13 = smov 78  }
 0x110   :  { %v3426_v49 = vpop.permute.xlu1 %969  ;;  %182 = vrot.lane.b32.xlu1 %v152_v14, %s3048_s10  ;;  %242 = vrot.lane.b32.xlu0 %v153_v24, %s3051_s15  ;;  %s3127_s10 = smov 8   ;;  %s3130_s15 = smov 116  }
 0x111   :  { %5989 = vst [vmem:[#allocation40_spill] sm:$0xff] %v3426_v49 }
 0x114   :  { %192 = vrot.lane.b32.xlu1 %v152_v14, %s3050_s14  ;;  %1297 = vperm.xlu0 %2799, %v3241_v18   ;;  %v3452_v14 = vpop.permute.xlu0 %993  ;;  %s3129_s14 = smov 68  }
 0x115   :  { %v3430_v54 = vpop.permute.xlu1 %981  ;;  %5999 = vst [vmem:[#allocation50_spill] sm:$0xff] %v3452_v14 }
 0x116   :  { %5991 = vst [vmem:[#allocation42_spill] sm:$0xff] %v3430_v54 }
 0x118   :  { %203 = vrot.lane.b32.xlu1 %v153_v24, %s3052_s16  ;;  %2802 = vset.pattern.permute.xlu0 %v3054_v58  ;;  %v3458_v59 = vpop.permute.xlu0 %1029  ;;  %s3131_s16 = smov 58  }
 0x119   :  { %1716 = vperm.xlu0 %2802, %v3241_v18   ;;  %6001 = vst [vmem:[#allocation52_spill] sm:$0xff] %v3458_v59 }
 0x11a   :  { %v3435_v57 = vpop.permute.xlu1 %1005 }
 0x11b   :  { %5993 = vst [vmem:[#allocation44_spill] sm:$0xff] %v3435_v57 }
 0x11c   :  { %215 = vrot.lane.b32.xlu1 %v153_v24, %s3053_s22 }
 0x11d   :  { %2805 = vset.pattern.permute.xlu0 %v3055_v0  ;;  %v3062_v0 = vmov 99  }
 0x11e   :  { %1996 = vperm.xlu0 %2805, %v3241_v18  }
 0x11f   :  { %v3440_v62 = vpop.permute.xlu1 %1017 }
 0x120   :  { %5995 = vst [vmem:[#allocation46_spill] sm:$0xff] %v3440_v62  ;;  %225 = vrot.lane.b32.xlu1 %v153_v24, %s2967_s11  ;;  %v3068_v62 = vmov 110  }
 0x122   :  { %2808 = vset.pattern.permute.xlu0 %v3057_v9  ;;  %v3464_v9 = vpop.permute.xlu0 %1085 }
 0x123   :  { %1449 = vperm.xlu0 %2808, %v3241_v18   ;;  %6003 = vst [vmem:[#allocation54_spill] sm:$0xff] %v3464_v9 }
 0x124   :  { %v3444_v5 = vpop.permute.xlu1 %1041  ;;  %235 = vrot.lane.b32.xlu1 %v153_v24, %s3056_s23 }
 0x125   :  { %5996 = vst [vmem:[#allocation47_spill] sm:$0xff] %v3444_v5  ;;  %v3067_v5 = vmov 101  }
 0x127   :  { %2811 = vset.pattern.permute.xlu0 %v3059_v21  ;;  %v3063_v21 = vmov 41  }
 0x128   :  { %1437 = vperm.xlu1 %2800, %v3241_v18   ;;  %1868 = vperm.xlu0 %2811, %v3241_v18  }
 0x129   :  { %v3450_v11 = vpop.permute.xlu1 %1077 }
 0x12a   :  { %5998 = vst [vmem:[#allocation49_spill] sm:$0xff] %v3450_v11 }
 0x12c   :  { %2801 = vset.pattern.permute.xlu1 %v3058_v17  ;;  %2814 = vset.pattern.permute.xlu0 %v3061_v42 }
 0x12d   :  { %1576 = vperm.xlu1 %2801, %v3241_v18   ;;  %2148 = vperm.xlu0 %2814, %v3241_v18  }
 0x12e   :  { %v3456_v24 = vpop.permute.xlu1 %1097 }
 0x12f   :  { %6000 = vst [vmem:[#allocation51_spill] sm:$0xff] %v3456_v24 }
 0x131   :  { %2803 = vset.pattern.permute.xlu1 %v3060_v36  ;;  %v3470_v36 = vpop.permute.xlu0 %1237 }
 0x132   :  { %1856 = vperm.xlu1 %2803, %v3241_v18   ;;  %6005 = vst [vmem:[#allocation56_spill] sm:$0xff] %v3470_v36 }
 0x133   :  { %v3462_v58 = vpop.permute.xlu1 %1229 }
 0x134   :  { %6002 = vst [vmem:[#allocation53_spill] sm:$0xff] %v3462_v58 }
 0x136   :  { %2804 = vset.pattern.permute.xlu1 %v3062_v0  ;;  %v3477_v0 = vpop.permute.xlu0 %1381 }
 0x137   :  { %1988 = vperm.xlu1 %2804, %v3241_v18  }
 0x138   :  { %v3467_v17 = vpop.permute.xlu1 %1109 }
 0x139   :  { %6004 = vst [vmem:[#allocation55_spill] sm:$0xff] %v3467_v17 }
 0x13b   :  { %2806 = vset.pattern.permute.xlu1 %v3063_v21  ;;  %v3482_v21 = vpop.permute.xlu0 %1261 }
 0x13c   :  { %1169 = vperm.xlu1 %2806, %v3241_v18   ;;  %6008 = vst [vmem:[#allocation59_spill] sm:$0xff] %v3482_v21 }
 0x13d   :  { %v3472_v42 = vpop.permute.xlu1 %1249 }
 0x13e   :  { %6006 = vst [vmem:[#allocation57_spill] sm:$0xff] %v3472_v42 }
 0x140   :  { %2807 = vset.pattern.permute.xlu1 %v3064_v1  ;;  %v3487_v1 = vpop.permute.xlu0 %1540 }
 0x141   :  { %1309 = vperm.xlu1 %2807, %v3241_v18   ;;  %6010 = vst [vmem:[#allocation61_spill] sm:$0xff] %v3487_v1 }
 0x142   :  { %v3475_v40 = vpop.permute.xlu1 %1389 }
 0x145   :  { %2809 = vset.pattern.permute.xlu1 %v3065_v35  ;;  %v3492_v35 = vpop.permute.xlu0 %1413 }
 0x146   :  { %1588 = vperm.xlu1 %2809, %v3241_v18   ;;  %6011 = vst [vmem:[#allocation62_spill] sm:$0xff] %v3492_v35 }
 0x147   :  { %v3480_v33 = vpop.permute.xlu1 %1121 }
 0x148   :  { %6007 = vst [vmem:[#allocation58_spill] sm:$0xff] %v3480_v33 }
 0x149   :  { %v3497_v14 = vpop.permute.xlu0 %1692 }
 0x14a   :  { %2810 = vset.pattern.permute.xlu1 %v3066_v32  ;;  %v3069_v32 = vmov 42   ;;  %6013 = vst [vmem:[#allocation64_spill] sm:$0xff] %v3497_v14 }
 0x14b   :  { %1728 = vperm.xlu1 %2810, %v3241_v18  }
 0x14c   :  { %v3485_v31 = vpop.permute.xlu1 %1401 }
 0x14d   :  { %6009 = vst [vmem:[#allocation60_spill] sm:$0xff] %v3485_v31 }
 0x14f   :  { %2812 = vset.pattern.permute.xlu1 %v3067_v5  ;;  %v3502_v5 = vpop.permute.xlu0 %1425 }
 0x150   :  { %2008 = vperm.xlu1 %2812, %v3241_v18   ;;  %6015 = vst [vmem:[#allocation66_spill] sm:$0xff] %v3502_v5 }
 0x151   :  { %v3490_v59 = vpop.permute.xlu1 %1532 }
 0x153   :  { %v3508_v35 = vpop.permute.xlu0 %1836 }
 0x154   :  { %2813 = vset.pattern.permute.xlu1 %v3068_v62  ;;  %v3070_v62 = vmov 62  }
 0x155   :  { %2140 = vperm.xlu1 %2813, %v3241_v18   ;;  %2817 = vset.pattern.permute.xlu0 %v3070_v62 }
 0x156   :  { %v3495_v57 = vpop.permute.xlu1 %1133 }
 0x157   :  { %6012 = vst [vmem:[#allocation63_spill] sm:$0xff] %v3495_v57 }
 0x159   :  { %2815 = vset.pattern.permute.xlu1 %v3069_v32 }
 0x15a   :  { %1181 = vperm.xlu1 %2815, %v3241_v18  }
 0x15b   :  { %v3500_v31 = vpop.permute.xlu1 %1273 }
 0x15c   :  { %6014 = vst [vmem:[#allocation65_spill] sm:$0xff] %v3500_v31 }
 0x15e   :  { %2816 = vset.pattern.permute.xlu1 %v3071_v30 }
 0x160   :  { %v3504_v27 = vpop.permute.xlu1 %1552 }
 0x161   :  { %6016 = vst [vmem:[#allocation67_spill] sm:$0xff] %v3504_v27 }
 0x165   :  { %v3506_v25 = vpop.permute.xlu1 %1684 }
 0x166   :  { %v163_v32 = vpop.permute.xlu0 %162 }
 0x167   :  { %166 = vst.msk [vmem:[#allocation2 + $0x8] sm:$0xff] %vm165_vm4, %v163_v32  ;;  %vm238_vm4 = vcmask 1048472  }
 0x16a   :  { %v3510_v22 = vpop.permute.xlu1 %1145  ;;  %v178_v15 = vpop.permute.xlu0 %177 }
 0x16b   :  { %6017 = vst [vmem:[#allocation68_spill] sm:$0xff] %v3510_v22 }
 0x16e   :  { %v188_v34 = vpop.permute.xlu0 %187 }
 0x16f   :  { %v3512_v19 = vpop.permute.xlu1 %1285  ;;  %191 = vst.msk [vmem:[#allocation2 + $0x10] sm:$0xff] %vm190_vm5, %v188_v34  ;;  %vm240_vm5 = vcmask 23552  }
 0x170   :  { %6018 = vst [vmem:[#allocation69_spill] sm:$0xff] %v3512_v19 }
 0x172   :  { %v198_v5 = vpop.permute.xlu0 %197 }
 0x174   :  { %v3514_v13 = vpop.permute.xlu1 %1564 }
 0x175   :  { %6019 = vst [vmem:[#allocation70_spill] sm:$0xff] %v3514_v13 }
 0x176   :  { %v209_v16 = vpop.permute.xlu0 %208 }
 0x177   :  { %214 = vst.msk [vmem:[#allocation2 + $0x18] sm:$0xff] %vm213_vm6, %v209_v16  ;;  %vm245_vm6 = vcmask 236648  }
 0x179   :  { %v3516_v27 = vpop.permute.xlu1 %1704 }
 0x17a   :  { %6020 = vst [vmem:[#allocation71_spill] sm:$0xff] %v3516_v27 }
 0x17e   :  { %v3518_v62 = vpop.permute.xlu1 %1844 }
 0x183   :  { %v3520_v22 = vpop.permute.xlu1 %1157 }
 0x184   :  { %6021 = vst [vmem:[#allocation72_spill] sm:$0xff] %v3520_v22  ;;  %v221_v22 = vpop.permute.xlu0 %220 }
 0x187   :  { %v168_v32 = vpop.permute.xlu1 %167 }
 0x188   :  { %171 = vst.msk [vmem:[#allocation2 + $0x8] sm:$0xff] %vm170_vm7, %v168_v32  ;;  %vm278_vm7 = vcmask 1039360  }
 0x18b   :  { %v173_v10 = vpop.permute.xlu1 %172 }
 0x18c   :  { %176 = vst.msk [vmem:[#allocation2 + $0x8] sm:$0xff] %vm175_vm8, %v173_v10  ;;  %vm309_vm8 = vcmask 1031168  }
 0x18d   :  { %181 = vst.msk [vmem:[#allocation2 + $0x8] sm:$0xff] %vm180_vm9, %v178_v15  ;;  %vm340_vm9 = vcmask 1022976  }
 0x18f   :  { %v183_v34 = vpop.permute.xlu1 %182 }
 0x190   :  { %186 = vst.msk [vmem:[#allocation2 + $0x8] sm:$0xff] %vm185_vm10, %v183_v34  ;;  %vm371_vm10 = vcmask 1014784  }
 0x193   :  { %v193_v13 = vpop.permute.xlu1 %192 }
 0x194   :  { %196 = vst.msk [vmem:[#allocation2 + $0x10] sm:$0xff] %vm195_vm11, %v193_v13  ;;  %v231_v13 = vpop.permute.xlu0 %230  ;;  %vm402_vm11 = vcmask 1006592  }
 0x195   :  { %201 = vst.msk [vmem:[#allocation2 + $0x10] sm:$0xff] %vm200_vm12, %v198_v5  ;;  %vm433_vm12 = vcmask 998400  }
 0x197   :  { %v204_v30 = vpop.permute.xlu1 %203  ;;  %v3522_v27 = vld [vmem:[#allocation2 + $0x8] sm:$0xff] }
 0x198   :  { %6022 = vst [vmem:[#allocation73_spill] sm:$0xff] %v3522_v27  ;;  %207 = vst.msk [vmem:[#allocation2 + $0x10] sm:$0xff] %vm206_vm13, %v204_v30  ;;  %268 = vrot.lane.b32.xlu0 %v3522_v27, %s2967_s11  ;;  %v243_v32 = vpop.permute.xlu0 %242  ;;  %vm464_vm13 = vcmask 990208  }
 0x199   :  { %254 = vst [vmem:[#allocation3 + $0x8] sm:$0xff] %v3522_v27  ;;  %212 = vst.msk [vmem:[#allocation2 + $0x10] sm:$0xff] %vm211_vm14, %v209_v16  ;;  %vm495_vm14 = vcmask 982016  }
 0x19b   :  { %v216_v10 = vpop.permute.xlu1 %215 }
 0x19c   :  { %219 = vst.msk [vmem:[#allocation2 + $0x18] sm:$0xff] %vm218_vm15, %v216_v10  ;;  %299 = vrot.lane.b32.xlu0 %v3522_v27, %s2969_s0  ;;  %vm526_vm15 = vcmask 973824  }
 0x19d   :  { %224 = vst.msk [vmem:[#allocation2 + $0x18] sm:$0xff] %vm223_vm0, %v221_v22  ;;  %vm557_vm0 = vcmask 965632  }
 0x19f   :  { %v226_v15 = vpop.permute.xlu1 %225 }
 0x1a0   :  { %229 = vst.msk [vmem:[#allocation2 + $0x18] sm:$0xff] %vm228_vm2, %v226_v15  ;;  %330 = vrot.lane.b32.xlu0 %v3522_v27, %s2970_s12  ;;  %v3531_v5 = vld [vmem:[#allocation2 + $0x10] sm:$0xff]  ;;  %v3072_v15 = vmov 92   ;;  %vm912_vm2 = vcmask 834560  }
 0x1a1   :  { %6023 = vst [vmem:[#allocation74_spill] sm:$0xff] %v3531_v5  ;;  %234 = vst.msk [vmem:[#allocation2 + $0x18] sm:$0xff] %vm233_vm3, %v231_v13  ;;  %v3607_v13 = vpop.permute.xlu0 %1297  ;;  %vm1064_vm3 = vcmask 621568  }
 0x1a2   :  { %255 = vst [vmem:[#allocation3 + $0x10] sm:$0xff] %v3531_v5  ;;  %6027 = vst [vmem:[#allocation78_spill] sm:$0xff] %v3607_v13 }
 0x1a3   :  { %v236_v16 = vpop.permute.xlu1 %235 }
 0x1a4   :  { %239 = vst.msk [vmem:[#allocation2 + $0x18] sm:$0xff] %vm238_vm4, %v236_v16  ;;  %361 = vrot.lane.b32.xlu0 %v3522_v27, %s2971_s17  ;;  %vm1216_vm4 = vcmask 408576  }
 0x1a5   :  { %241 = vst.msk [vmem:[#allocation2 + $0x20] sm:$0xff] %vm240_vm5, %v236_v16  ;;  %vm1368_vm5 = vcmask 195584  }
 0x1a6   :  { %246 = vst.msk [vmem:[#allocation2 + $0x20] sm:$0xff] %vm245_vm6, %v243_v32  ;;  %v3617_v32 = vpop.permute.xlu0 %1716  ;;  %vm1671_vm6 = vcmask 818176  }
 0x1a7   :  { %v3597_v30 = vpop.permute.xlu1 %1437  ;;  %6029 = vst [vmem:[#allocation80_spill] sm:$0xff] %v3617_v32  ;;  %v3075_v32 = vmov 103  }
 0x1a8   :  { %392 = vrot.lane.b32.xlu0 %v3522_v27, %s2972_s1  ;;  %6025 = vst [vmem:[#allocation76_spill] sm:$0xff] %v3597_v30  ;;  %v3073_v30 = vmov 43  }
 0x1aa   :  { %v3624_v13 = vpop.permute.xlu0 %1996 }
 0x1ab   :  { %v3538_v22 = vld [vmem:[#allocation2 + $0x18] sm:$0xff]  ;;  %6031 = vst [vmem:[#allocation82_spill] sm:$0xff] %v3624_v13 }
 0x1ac   :  { %6024 = vst [vmem:[#allocation75_spill] sm:$0xff] %v3538_v22  ;;  %423 = vrot.lane.b32.xlu0 %v3522_v27, %s2974_s2  ;;  %256 = vst [vmem:[#allocation3 + $0x18] sm:$0xff] %v3538_v22  ;;  %v3605_v10 = vpop.permute.xlu1 %1576 }
 0x1ad   :  { %v3542_v34 = vld [vmem:[#allocation2 + $0x20] sm:$0xff]  ;;  %6026 = vst [vmem:[#allocation77_spill] sm:$0xff] %v3605_v10 }
 0x1ae   :  { %274 = vrot.lane.b32.xlu1 %v3542_v34, %s2967_s11 }
 0x1b0   :  { %454 = vrot.lane.b32.xlu0 %v3522_v27, %s2975_s18 }
 0x1b1   :  { %v3612_v16 = vpop.permute.xlu1 %1856 }
 0x1b2   :  { %305 = vrot.lane.b32.xlu1 %v3542_v34, %s2969_s0  ;;  %6028 = vst [vmem:[#allocation79_spill] sm:$0xff] %v3612_v16 }
 0x1b4   :  { %485 = vrot.lane.b32.xlu0 %v3522_v27, %s2976_s19 }
 0x1b6   :  { %336 = vrot.lane.b32.xlu1 %v3542_v34, %s2970_s12  ;;  %v3622_v10 = vpop.permute.xlu1 %1988 }
 0x1b7   :  { %6030 = vst [vmem:[#allocation81_spill] sm:$0xff] %v3622_v10 }
 0x1b8   :  { %516 = vrot.lane.b32.xlu0 %v3522_v27, %s2977_s20 }
 0x1ba   :  { %367 = vrot.lane.b32.xlu1 %v3542_v34, %s2971_s17 }
 0x1bb   :  { %v3628_v16 = vpop.permute.xlu1 %1169 }
 0x1bc   :  { %547 = vrot.lane.b32.xlu0 %v3522_v27, %s2978_s21  ;;  %6032 = vst [vmem:[#allocation83_spill] sm:$0xff] %v3628_v16  ;;  %v3077_v16 = vmov 72  }
 0x1be   :  { %398 = vrot.lane.b32.xlu1 %v3542_v34, %s2972_s1 }
 0x1c0   :  { %272 = vrot.lane.b32.xlu0 %v3538_v22, %s2967_s11 }
 0x1c2   :  { %429 = vrot.lane.b32.xlu1 %v3542_v34, %s2974_s2 }
 0x1c4   :  { %303 = vrot.lane.b32.xlu0 %v3538_v22, %s2969_s0 }
 0x1c6   :  { %460 = vrot.lane.b32.xlu1 %v3542_v34, %s2975_s18 }
 0x1c8   :  { %334 = vrot.lane.b32.xlu0 %v3538_v22, %s2970_s12 }
 0x1ca   :  { %491 = vrot.lane.b32.xlu1 %v3542_v34, %s2976_s19 }
 0x1cc   :  { %365 = vrot.lane.b32.xlu0 %v3538_v22, %s2971_s17 }
 0x1ce   :  { %522 = vrot.lane.b32.xlu1 %v3542_v34, %s2977_s20 }
 0x1d0   :  { %396 = vrot.lane.b32.xlu0 %v3538_v22, %s2972_s1 }
 0x1d2   :  { %553 = vrot.lane.b32.xlu1 %v3542_v34, %s2978_s21 }
 0x1d4   :  { %427 = vrot.lane.b32.xlu0 %v3538_v22, %s2974_s2 }
 0x1d6   :  { %270 = vrot.lane.b32.xlu1 %v3531_v5, %s2967_s11  ;;  %s3132_s11 = smov 106  }
 0x1d8   :  { %458 = vrot.lane.b32.xlu0 %v3538_v22, %s2975_s18 }
 0x1da   :  { %301 = vrot.lane.b32.xlu1 %v3531_v5, %s2969_s0 }
 0x1dc   :  { %489 = vrot.lane.b32.xlu0 %v3538_v22, %s2976_s19 }
 0x1de   :  { %332 = vrot.lane.b32.xlu1 %v3531_v5, %s2970_s12 }
 0x1e0   :  { %520 = vrot.lane.b32.xlu0 %v3538_v22, %s2977_s20 }
 0x1e2   :  { %363 = vrot.lane.b32.xlu1 %v3531_v5, %s2971_s17 }
 0x1e4   :  { %551 = vrot.lane.b32.xlu0 %v3538_v22, %s2978_s21  ;;  %v3636_v22 = vpop.permute.xlu1 %1309 }
 0x1e5   :  { %6034 = vst [vmem:[#allocation85_spill] sm:$0xff] %v3636_v22  ;;  %v3650_v22 = vld [vmem:[%s5724_s3] sm:$0xff] }
 0x1e6   :  { %394 = vrot.lane.b32.xlu1 %v3531_v5, %s2972_s1  ;;  %s3096_s1 = smov 102  }
 0x1e8   :  { %1461 = vperm.xlu0 %2817, %v3241_v18  }
 0x1ea   :  { %425 = vrot.lane.b32.xlu1 %v3531_v5, %s2974_s2  ;;  %s3109_s2 = smov 76  }
 0x1ec   :  { %2820 = vset.pattern.permute.xlu0 %v3072_v15  ;;  %v3074_v15 = vmov 73  }
 0x1ed   :  { %1880 = vperm.xlu0 %2820, %v3241_v18  }
 0x1ee   :  { %456 = vrot.lane.b32.xlu1 %v3531_v5, %s2975_s18 }
 0x1f1   :  { %2823 = vset.pattern.permute.xlu0 %v3073_v30  ;;  %v3633_v30 = vpop.permute.xlu0 %1449 }
 0x1f2   :  { %487 = vrot.lane.b32.xlu1 %v3531_v5, %s2976_s19  ;;  %1193 = vperm.xlu0 %2823, %v3241_v18   ;;  %6033 = vst [vmem:[#allocation84_spill] sm:$0xff] %v3633_v30  ;;  %v3078_v30 = vmov 94  }
 0x1f5   :  { %v3639_v27 = vpop.permute.xlu0 %1868 }
 0x1f6   :  { %518 = vrot.lane.b32.xlu1 %v3531_v5, %s2977_s20  ;;  %2826 = vset.pattern.permute.xlu0 %v3074_v15  ;;  %6035 = vst [vmem:[#allocation86_spill] sm:$0xff] %v3639_v27  ;;  %v3076_v15 = vmov 64   ;;  %v3081_v27 = vmov 102   ;;  %s3111_s20 = smov 50  }
 0x1f7   :  { %1612 = vperm.xlu0 %2826, %v3241_v18  }
 0x1fa   :  { %549 = vrot.lane.b32.xlu1 %v3531_v5, %s2978_s21  ;;  %v3643_v5 = vpop.permute.xlu1 %1588 }
 0x1fb   :  { %2829 = vset.pattern.permute.xlu0 %v3075_v32  ;;  %6036 = vst [vmem:[#allocation87_spill] sm:$0xff] %v3643_v5  ;;  %v3645_v32 = vpop.permute.xlu0 %2148 }
 0x1fc   :  { %2032 = vperm.xlu0 %2829, %v3241_v18   ;;  %6037 = vst [vmem:[#allocation88_spill] sm:$0xff] %v3645_v32 }
 0x1fe   :  { %1321 = vperm.xlu1 %2816, %v3241_v18  }
 0x200   :  { %2832 = vset.pattern.permute.xlu0 %v3076_v15  ;;  %v3079_v15 = vmov 82  }
 0x201   :  { %1485 = vperm.xlu0 %2832, %v3241_v18  }
 0x202   :  { %2818 = vset.pattern.permute.xlu1 %v3077_v16  ;;  %v3654_v16 = vpop.permute.xlu1 %1728 }
 0x203   :  { %1600 = vperm.xlu1 %2818, %v3241_v18   ;;  %6038 = vst [vmem:[#allocation89_spill] sm:$0xff] %v3654_v16  ;;  %v3080_v18 = vmov 65   ;;  %v3669_v16 = vld [vmem:[#allocation2] sm:$0xff] }
 0x204   :  { %v1232_v32 = vmul.f32 %v3669_v16, %v3462_v58  ;;  %v3082_v58 = vmov 95  }
 0x205   :  { %2835 = vset.pattern.permute.xlu0 %v3078_v30 }
 0x206   :  { %1904 = vperm.xlu0 %2835, %v3650_v22   ;;  %v3685_v12 = vpop.permute.xlu1 %2008 }
 0x207   :  { %2819 = vset.pattern.permute.xlu1 %v3079_v15  ;;  %6041 = vst [vmem:[#allocation92_spill] sm:$0xff] %v3685_v12 }
 0x208   :  { %1740 = vperm.xlu1 %2819, %v3650_v22  }
 0x20a   :  { %2838 = vset.pattern.permute.xlu0 %v3080_v18  ;;  %v3656_v5 = vpop.permute.xlu0 %268 }
 0x20b   :  { %6039 = vst [vmem:[#allocation90_spill] sm:$0xff] %v3656_v5  ;;  %v3661_v30 = vsel %vm278_vm7, %v3280_v45, %v3656_v5  ;;  %1497 = vperm.xlu0 %2838, %v3650_v22   ;;  %v588_v5 = vmul.f32 %v3669_v16, %v3347_v20  ;;  %v3083_v20 = vmov 112  }
 0x20c   :  { %2821 = vset.pattern.permute.xlu1 %v3081_v27  ;;  %v1240_v15 = vmul.f32 %v3470_v36, %v3661_v30  ;;  %v1088_v18 = vmul.f32 %v3464_v9, %v3661_v30  ;;  %v936_v45 = vmul.f32 %v3418_v38, %v3661_v30  ;;  %v602_v27 = vmul.f32 %v3396_v51, %v3661_v30 }
 0x20d   :  { %2020 = vperm.xlu1 %2821, %v3650_v22   ;;  %v1080_v36 = vmul.f32 %v3669_v16, %v3450_v11  ;;  %v928_v9 = vmul.f32 %v3669_v16, %v3437_v61 }
 0x20e   :  { %v3681_v10 = vpop.permute.xlu0 %299  ;;  %v1244_v51 = vadd.f32 %v1240_v15, %v1232_v32 }
 0x20f   :  { %6040 = vst [vmem:[#allocation91_spill] sm:$0xff] %v3681_v10  ;;  %v3690_v38 = vsel %vm309_vm8, %v3284_v47, %v3681_v10  ;;  %2841 = vset.pattern.permute.xlu0 %v3082_v58  ;;  %v1092_v13 = vadd.f32 %v1088_v18, %v1080_v36  ;;  %v940_v61 = vadd.f32 %v936_v45, %v928_v9 }
 0x210   :  { %1916 = vperm.xlu0 %2841, %v3650_v22   ;;  %v1252_v11 = vmul.f32 %v3472_v42, %v3690_v38  ;;  %v1100_v12 = vmul.f32 %v3456_v24, %v3690_v38  ;;  %v948_v47 = vmul.f32 %v3422_v44, %v3690_v38  ;;  %v606_v58 = vadd.f32 %v602_v27, %v588_v5 }
 0x211   :  { %2822 = vset.pattern.permute.xlu1 %v3083_v20  ;;  %v620_v32 = vmul.f32 %v3356_v23, %v3690_v38  ;;  %v3084_v42 = vmov 76  }
 0x212   :  { %2160 = vperm.xlu1 %2822, %v3650_v22   ;;  %v3702_v15 = vpop.permute.xlu0 %330  ;;  %v1256_v20 = vadd.f32 %v1252_v11, %v1244_v51  ;;  %v1104_v10 = vadd.f32 %v1100_v12, %v1092_v13  ;;  %v952_v18 = vadd.f32 %v948_v47, %v940_v61  ;;  %v3715_v12 = vpop.permute.xlu1 %2140 }
 0x213   :  { %v3707_v36 = vsel %vm340_vm9, %v3288_v50, %v3702_v15  ;;  %v624_v24 = vadd.f32 %v620_v32, %v606_v58  ;;  %v3085_v50 = vmov 53  }
 0x214   :  { %2844 = vset.pattern.permute.xlu0 %v3084_v42  ;;  %v1264_v9 = vmul.f32 %v3482_v21, %v3707_v36  ;;  %v1112_v5 = vmul.f32 %v3467_v17, %v3707_v36  ;;  %v960_v51 = vmul.f32 %v3446_v6, %v3707_v36  ;;  %v638_v61 = vmul.f32 %v3363_v26, %v3707_v36  ;;  %v6051_v17 = vld [vmem:[#allocation10_spill] sm:$0xff] }
 0x215   :  { %1648 = vperm.xlu0 %2844, %v3650_v22   ;;  %v3086_v26 = vmov 106  }
 0x216   :  { %2824 = vset.pattern.permute.xlu1 %v3085_v50  ;;  %v3721_v11 = vpop.permute.xlu0 %361  ;;  %v1268_v42 = vadd.f32 %v1264_v9, %v1256_v20  ;;  %v1116_v13 = vadd.f32 %v1112_v5, %v1104_v10  ;;  %v964_v45 = vadd.f32 %v960_v51, %v952_v18  ;;  %v642_v47 = vadd.f32 %v638_v61, %v624_v24  ;;  %v3729_v23 = vpop.permute.xlu1 %1181 }
 0x217   :  { %1333 = vperm.xlu1 %2824, %v3650_v22   ;;  %v372_v27 = vsel %vm371_vm10, %v3292_v53, %v3721_v11  ;;  %6042 = vst [vmem:[#allocation93_spill] sm:$0xff] %v3729_v23  ;;  %v3087_v10 = vmov 63   ;;  %v784_v51 = vmul.f32 %v3385_v39, %v3661_v30  ;;  %v6065_v39 = vld [vmem:[#allocation73_spill] sm:$0xff] }
 0x218   :  { %v1276_v58 = vmul.f32 %v3500_v31, %v372_v27  ;;  %v1124_v32 = vmul.f32 %v3480_v33, %v372_v27  ;;  %v972_v50 = vmul.f32 %v3426_v49, %v372_v27  ;;  %v656_v20 = vmul.f32 %v3408_v28, %v372_v27 }
 0x219   :  { %2847 = vset.pattern.permute.xlu0 %v3086_v26  ;;  %v3095_v31 = vmov 74   ;;  %v3944_v21 = vmul.f32 %v3477_v0, %v6065_v39 }
 0x21a   :  { %2068 = vperm.xlu0 %2847, %v3650_v22   ;;  %v3733_v18 = vpop.permute.xlu0 %392  ;;  %v1280_v53 = vadd.f32 %v1276_v58, %v1268_v42  ;;  %v1128_v24 = vadd.f32 %v1124_v32, %v1116_v13  ;;  %v976_v26 = vadd.f32 %v972_v50, %v964_v45  ;;  %v660_v5 = vadd.f32 %v656_v20, %v642_v47 }
 0x21b   :  { %2825 = vset.pattern.permute.xlu1 %v3087_v10  ;;  %v403_v9 = vsel %vm402_vm11, %v3296_v56, %v3733_v18  ;;  %v776_v42 = vmul.f32 %v3669_v16, %v3382_v37  ;;  %v3088_v56 = vmov 97   ;;  %v796_v45 = vmul.f32 %v3424_v48, %v3690_v38 }
 0x21c   :  { %1473 = vperm.xlu1 %2825, %v3650_v22   ;;  %v1288_v61 = vmul.f32 %v3512_v19, %v403_v9  ;;  %v1136_v10 = vmul.f32 %v3495_v57, %v403_v9  ;;  %v984_v28 = vmul.f32 %v3430_v54, %v403_v9  ;;  %v674_v13 = vmul.f32 %v3370_v29, %v403_v9  ;;  %v582_v54 = vld [vmem:[#allocation3 + $0x28] sm:$0xff] }
 0x21d   :  { %v3089_v50 = vmov 83   ;;  %v1387_v38 = vmul.f32 %v3477_v0, %v3542_v34 }
 0x21e   :  { %2850 = vset.pattern.permute.xlu0 %v3088_v56  ;;  %v3747_v58 = vpop.permute.xlu0 %423  ;;  %v3751_v30 = vadd.f32 %v1288_v61, %v1280_v53  ;;  %v3753_v47 = vadd.f32 %v1136_v10, %v1128_v24  ;;  %v3755_v32 = vadd.f32 %v984_v28, %v976_v26  ;;  %v3767_v53 = vadd.f32 %v674_v13, %v660_v5 }
 0x21f   :  { %v3760_v16 = vsel %vm433_vm12, %v3302_v60, %v3747_v58  ;;  %1940 = vperm.xlu0 %2850, %v3650_v22   ;;  %v788_v60 = vadd.f32 %v784_v51, %v776_v42  ;;  %v808_v24 = vmul.f32 %v3388_v41, %v3707_v36  ;;  %v1842_v26 = vmul.f32 %v3508_v35, %v3542_v34 }
 0x220   :  { %6043 = vst [vmem:[#allocation94_spill] sm:$0xff] %v3755_v32  ;;  %2827 = vset.pattern.permute.xlu1 %v3089_v50  ;;  %v3763_v20 = vpop.permute.xlu1 %274  ;;  %6044 = vst [vmem:[#allocation95_spill] sm:$0xff] %v3767_v53  ;;  %v820_v36 = vmul.f32 %v3391_v43, %v372_v27  ;;  %v1690_v56 = vmul.f32 %v3506_v25, %v3542_v34  ;;  %v3090_v53 = vmov 98  }
 0x221   :  { %446 = vst [vmem:[#allocation3 + $0x120] sm:$0xff] %v3760_v16  ;;  %v3773_v28 = vsel %vm278_vm7, %v3763_v20, %v3306_v63  ;;  %1752 = vperm.xlu1 %2827, %v3650_v22   ;;  %v1538_v63 = vmul.f32 %v3490_v59, %v3542_v34  ;;  %v800_v51 = vadd.f32 %v796_v45, %v788_v60 }
 0x222   :  { %v1395_v5 = vmul.f32 %v3475_v40, %v3773_v28  ;;  %v1850_v61 = vmul.f32 %v3518_v62, %v3773_v28  ;;  %v1546_v10 = vmul.f32 %v3487_v1, %v3773_v28  ;;  %v3788_v13 = vpop.permute.xlu0 %454  ;;  %v1698_v42 = vmul.f32 %v3497_v14, %v3773_v28  ;;  %v6079_v1 = vld [vmem:[#allocation49_spill] sm:$0xff] }
 0x223   :  { %6045 = vst [vmem:[#allocation96_spill] sm:$0xff] %v3788_v13  ;;  %v3798_v50 = vsel %vm464_vm13, %v3310_v3, %v3788_v13  ;;  %2853 = vset.pattern.permute.xlu0 %v3090_v53  ;;  %v3091_v3 = vmov 93   ;;  %v812_v53 = vadd.f32 %v808_v24, %v800_v51  ;;  %v3099_v13 = vmov 114  }
 0x224   :  { %v3800_v29 = vpop.permute.xlu1 %305  ;;  %v3802_v57 = vadd.f32 %v1395_v5, %v1387_v38  ;;  %v3804_v45 = vadd.f32 %v1850_v61, %v1842_v26  ;;  %v3806_v27 = vadd.f32 %v1546_v10, %v1538_v63  ;;  %477 = vst [vmem:[#allocation3 + $0x150] sm:$0xff] %v3798_v50  ;;  %1952 = vperm.xlu0 %2853, %v3650_v22   ;;  %v3092_v63 = vmov 109  }
 0x225   :  { %v3812_v60 = vsel %vm309_vm8, %v3800_v29, %v3314_v4  ;;  %2828 = vset.pattern.permute.xlu1 %v3091_v3  ;;  %v832_v38 = vmul.f32 %v3428_v52, %v403_v9  ;;  %v824_v5 = vadd.f32 %v820_v36, %v812_v53  ;;  %v844_v61 = vmul.f32 %v3394_v46, %v3760_v16  ;;  %v6048_v3 = vld [vmem:[#allocation82_spill] sm:$0xff] }
 0x226   :  { %326 = vst [vmem:[#allocation3 + $0x80] sm:$0xff] %v3812_v60  ;;  %1892 = vperm.xlu1 %2828, %v3650_v22   ;;  %v3818_v26 = vpop.permute.xlu0 %485  ;;  %v3822_v4 = vadd.f32 %v1698_v42, %v1690_v56  ;;  %v856_v36 = vmul.f32 %v3402_v2, %v3798_v50  ;;  %v2002_v53 = vmul.f32 %v6048_v3, %v3773_v28  ;;  %v6053_v46 = vmov 0  }
 0x227   :  { %6046 = vst [vmem:[#allocation97_spill] sm:$0xff] %v3818_v26  ;;  %v3827_v10 = vsel %vm495_vm14, %v3322_v8, %v3818_v26  ;;  %v836_v51 = vadd.f32 %v832_v38, %v824_v5  ;;  %v3093_v8 = vmov 113   ;;  %v6049_v38 = vld [vmem:[#allocation11_spill] sm:$0xff]  ;;  %v3094_v52 = vmov 54  }
 0x228   :  { %v3829_v24 = vpop.permute.xlu1 %336  ;;  %508 = vst [vmem:[#allocation3 + $0x180] sm:$0xff] %v3827_v10  ;;  %2856 = vset.pattern.permute.xlu0 %v3092_v63  ;;  %v3974_v3 = vmul.f32 %v3506_v25, %v6065_v39  ;;  %v3978_v26 = vmul.f32 %v3382_v37, %v6065_v39 }
 0x229   :  { %v3835_v9 = vsel %vm340_vm9, %v3829_v24, %v3320_v7  ;;  %2104 = vperm.xlu0 %2856, %v3650_v22   ;;  %v848_v56 = vadd.f32 %v844_v61, %v836_v51  ;;  %v868_v7 = vmul.f32 %v3432_v55, %v3827_v10  ;;  %v6052_v55 = vld [vmem:[#allocation33_spill] sm:$0xff] }
 0x22a   :  { %357 = vst [vmem:[#allocation3 + $0xb0] sm:$0xff] %v3835_v9  ;;  %2830 = vset.pattern.permute.xlu1 %v3093_v8  ;;  %v3842_v42 = vpop.permute.xlu0 %516  ;;  %v6050_v8 = vld [vmem:[#allocation81_spill] sm:$0xff]  ;;  %6073 = vst [vmem:[#allocation73_spill] sm:$0xff] %v3974_v3  ;;  %v3994_v3 = vmul.f32 %v6079_v1, %v6065_v39 }
 0x22b   :  { %2172 = vperm.xlu1 %2830, %v3650_v22   ;;  %6047 = vst [vmem:[#allocation98_spill] sm:$0xff] %v3842_v42  ;;  %v3851_v5 = vsel %vm526_vm15, %v6049_v38, %v3842_v42  ;;  %v1994_v33 = vmul.f32 %v6050_v8, %v3542_v34  ;;  %v860_v51 = vadd.f32 %v856_v36, %v848_v56  ;;  %v6056_v56 = vld [vmem:[#allocation14_spill] sm:$0xff]  ;;  %v6071_v42 = vld [vmem:[#allocation19_spill] sm:$0xff] }
 0x22c   :  { %v368_v63 = vpop.permute.xlu1 %367  ;;  %539 = vst [vmem:[#allocation3 + $0x1b0] sm:$0xff] %v3851_v5  ;;  %v880_v2 = vmul.f32 %v6052_v55, %v3851_v5  ;;  %v2145_v38 = vmul.f32 %v3715_v12, %v3542_v34  ;;  %6080 = vst [vmem:[#allocation49_spill] sm:$0xff] %v3994_v3 }
 0x22d   :  { %v3858_v61 = vsel %vm371_vm10, %v368_v63, %v6051_v17  ;;  %2860 = vset.pattern.permute.xlu0 %v6053_v46  ;;  %v872_v41 = vadd.f32 %v868_v7, %v860_v51  ;;  %v3868_v19 = vadd.f32 %v2002_v53, %v1994_v33  ;;  %v6055_v17 = vld [vmem:[#allocation88_spill] sm:$0xff]  ;;  %v6058_v7 = vld [vmem:[#allocation35_spill] sm:$0xff] }
 0x22e   :  { %388 = vst [vmem:[#allocation3 + $0xe0] sm:$0xff] %v3858_v61  ;;  %v3866_v43 = vpop.permute.xlu0 %547  ;;  %v2153_v36 = vmul.f32 %v6055_v17, %v3773_v28 }
 0x22f   :  { %2831 = vset.pattern.permute.xlu1 %v3094_v52  ;;  %6054 = vst [vmem:[#allocation11_spill] sm:$0xff] %v3866_v43  ;;  %v3875_v55 = vsel %vm557_vm0, %v6056_v56, %v3866_v43  ;;  %v6057_v52 = vld [vmem:[#allocation12_spill] sm:$0xff]  ;;  %v884_v33 = vadd.f32 %v880_v2, %v872_v41  ;;  %v6060_v41 = vld [vmem:[#allocation13_spill] sm:$0xff] }
 0x230   :  { %1345 = vperm.xlu1 %2831, %v3650_v22   ;;  %v3878_v46 = vpop.permute.xlu1 %398  ;;  %570 = vst [vmem:[#allocation3 + $0x1e0] sm:$0xff] %v3875_v55  ;;  %v892_v28 = vmul.f32 %v6058_v7, %v3875_v55  ;;  %v3888_v53 = vadd.f32 %v2153_v36, %v2145_v38  ;;  %v6062_v36 = vld [vmem:[#allocation15_spill] sm:$0xff]  ;;  %v6069_v43 = vld [vmem:[#allocation53_spill] sm:$0xff] }
 0x231   :  { %v3884_v34 = vsel %vm402_vm11, %v3878_v46, %v6057_v52 }
 0x232   :  { %6059 = vst [vmem:[#allocation81_spill] sm:$0xff] %v3888_v53  ;;  %419 = vst [vmem:[#allocation3 + $0x110] sm:$0xff] %v3884_v34  ;;  %v3891_v51 = vpop.permute.xlu0 %272  ;;  %v896_v56 = vadd.f32 %v892_v28, %v884_v33  ;;  %v3097_v28 = vmov 84   ;;  %v6064_v53 = vld [vmem:[#allocation17_spill] sm:$0xff] }
 0x233   :  { %v3896_v48 = vsel %vm278_vm7, %v3891_v51, %v3763_v20 }
 0x234   :  { %2833 = vset.pattern.permute.xlu1 %v3095_v31  ;;  %v3898_v52 = vpop.permute.xlu1 %429  ;;  %294 = vst [vmem:[#allocation3 + $0x48] sm:$0xff] %v3896_v48  ;;  %904 = vrot.lane.b32.xlu0 %v896_v56, %s3096_s1 }
 0x235   :  { %v3904_v2 = vsel %vm433_vm12, %v3898_v52, %v6060_v41  ;;  %1624 = vperm.xlu1 %2833, %v3650_v22  }
 0x236   :  { %6061 = vst [vmem:[#allocation10_spill] sm:$0xff] %v3904_v2  ;;  %450 = vst [vmem:[#allocation3 + $0x140] sm:$0xff] %v3904_v2  ;;  %v3909_v20 = vpop.permute.xlu0 %303 }
 0x237   :  { %v3914_v31 = vsel %vm309_vm8, %v3909_v20, %v3800_v29 }
 0x238   :  { %v3916_v38 = vpop.permute.xlu1 %460  ;;  %325 = vst [vmem:[#allocation3 + $0x78] sm:$0xff] %v3914_v31 }
 0x239   :  { %v3922_v33 = vsel %vm464_vm13, %v3916_v38, %v6062_v36  ;;  %2834 = vset.pattern.permute.xlu1 %v3097_v28  ;;  %v3098_v28 = vmov 104  }
 0x23a   :  { %6063 = vst [vmem:[#allocation14_spill] sm:$0xff] %v3922_v33  ;;  %481 = vst [vmem:[#allocation3 + $0x170] sm:$0xff] %v3922_v33  ;;  %1764 = vperm.xlu1 %2834, %v3650_v22   ;;  %v3926_v56 = vpop.permute.xlu0 %334  ;;  %v3962_v33 = vmul.f32 %v6069_v43, %v6065_v39 }
 0x23b   :  { %v3931_v29 = vsel %vm340_vm9, %v3926_v56, %v3829_v24  ;;  %v3948_v24 = vmul.f32 %v3508_v35, %v6065_v39 }
 0x23c   :  { %v3933_v41 = vpop.permute.xlu1 %491  ;;  %356 = vst [vmem:[#allocation3 + $0xa8] sm:$0xff] %v3931_v29  ;;  %6070 = vst [vmem:[#allocation15_spill] sm:$0xff] %v3962_v33  ;;  %v6075_v33 = vld [vmem:[#allocation74_spill] sm:$0xff] }
 0x23d   :  { %v500_v36 = vsel %vm495_vm14, %v3933_v41, %v6064_v53  ;;  %6066 = vst [vmem:[#allocation12_spill] sm:$0xff] %v3948_v24  ;;  %v3982_v14 = vmul.f32 %v3477_v0, %v6075_v33 }
 0x23e   :  { %512 = vst [vmem:[#allocation3 + $0x1a0] sm:$0xff] %v500_v36  ;;  %2836 = vset.pattern.permute.xlu1 %v3098_v28  ;;  %v3940_v7 = vpop.permute.xlu0 %365  ;;  %v6068_v36 = vld [vmem:[#allocation45_spill] sm:$0xff] }
 0x23f   :  { %2044 = vperm.xlu1 %2836, %v3650_v22   ;;  %v3952_v32 = vsel %vm371_vm10, %v3940_v7, %v368_v63  ;;  %v3958_v28 = vmul.f32 %v6068_v36, %v6065_v39  ;;  %v3970_v63 = vmul.f32 %v3490_v59, %v6065_v39  ;;  %6074 = vst [vmem:[#allocation45_spill] sm:$0xff] %v3978_v26  ;;  %6076 = vst [vmem:[#allocation53_spill] sm:$0xff] %v3982_v14  ;;  %v6086_v26 = vld [vmem:[#allocation75_spill] sm:$0xff] }
 0x240   :  { %6067 = vst [vmem:[#allocation13_spill] sm:$0xff] %v3952_v32  ;;  %v3954_v53 = vpop.permute.xlu1 %522  ;;  %387 = vst [vmem:[#allocation3 + $0xd8] sm:$0xff] %v3952_v32  ;;  %v4000_v14 = vmul.f32 %v3490_v59, %v6075_v33  ;;  %v4012_v3 = vmul.f32 %v6068_v36, %v6075_v33  ;;  %v4040_v2 = vmul.f32 %v6069_v43, %v6086_v26 }
 0x241   :  { %v531_v24 = vsel %vm526_vm15, %v3954_v53, %v6071_v42  ;;  %6072 = vst [vmem:[#allocation17_spill] sm:$0xff] %v3970_v63  ;;  %v3986_v42 = vmul.f32 %v3508_v35, %v6075_v33  ;;  %v3990_v63 = vmul.f32 %v6069_v43, %v6075_v33  ;;  %v4057_v43 = vmul.f32 %v6068_v36, %v6086_v26 }
 0x242   :  { %543 = vst [vmem:[#allocation3 + $0x1d0] sm:$0xff] %v531_v24  ;;  %v3996_v24 = vpop.permute.xlu0 %396  ;;  %6081 = vst [vmem:[#allocation99_spill] sm:$0xff] %v4000_v14 }
 0x243   :  { %6077 = vst [vmem:[#allocation19_spill] sm:$0xff] %v3986_v42  ;;  %6078 = vst [vmem:[#allocation74_spill] sm:$0xff] %v3990_v63  ;;  %2837 = vset.pattern.permute.xlu1 %v3099_v13  ;;  %v4004_v42 = vmul.f32 %v3506_v25, %v6075_v33  ;;  %v4008_v63 = vmul.f32 %v3382_v37, %v6075_v33  ;;  %v4017_v13 = vsel %vm402_vm11, %v3996_v24, %v3878_v46  ;;  %v6089_v46 = vld [vmem:[#allocation21_spill] sm:$0xff] }
 0x244   :  { %6084 = vst [vmem:[#allocation102_spill] sm:$0xff] %v4012_v3  ;;  %6085 = vst [vmem:[#allocation103_spill] sm:$0xff] %v4017_v13  ;;  %2184 = vperm.xlu1 %2837, %v3650_v22   ;;  %v4020_v14 = vpop.permute.xlu1 %553  ;;  %v4032_v3 = vmul.f32 %v6079_v1, %v6075_v33 }
 0x245   :  { %6082 = vst [vmem:[#allocation100_spill] sm:$0xff] %v4004_v42  ;;  %6083 = vst [vmem:[#allocation101_spill] sm:$0xff] %v4008_v63  ;;  %v4024_v42 = vmul.f32 %v3477_v0, %v6086_v26  ;;  %v4028_v63 = vmul.f32 %v3508_v35, %v6086_v26  ;;  %v562_v49 = vsel %vm557_vm0, %v4020_v14, %v6089_v46  ;;  %v597_v35 = vld [vmem:[#allocation3 + $0x58] sm:$0xff] }
 0x246   :  { %6088 = vst [vmem:[#allocation104_spill] sm:$0xff] %v4032_v3  ;;  %418 = vst [vmem:[#allocation3 + $0x108] sm:$0xff] %v4017_v13  ;;  %v4044_v0 = vmul.f32 %v3490_v59, %v6086_v26  ;;  %v4049_v3 = vmul.f32 %v3506_v25, %v6086_v26  ;;  %v4053_v13 = vmul.f32 %v3382_v37, %v6086_v26  ;;  %v4068_v25 = vpop.permute.xlu0 %427 }
 0x247   :  { %6087 = vst [vmem:[#allocation75_spill] sm:$0xff] %v4028_v63  ;;  %6090 = vst [vmem:[#allocation21_spill] sm:$0xff] %v4040_v2  ;;  %v2146_v63 = vmul.f32 %v3715_v12, %v582_v54  ;;  %v2154_v46 = vmul.f32 %v6055_v17, %v597_v35  ;;  %v4062_v59 = vmul.f32 %v6050_v8, %v6065_v39  ;;  %v3100_v39 = vmov 75  }
 0x248   :  { %6091 = vst [vmem:[#allocation105_spill] sm:$0xff] %v4044_v0  ;;  %574 = vst [vmem:[#allocation3 + $0x200] sm:$0xff] %v562_v49  ;;  %v4066_v49 = vmul.f32 %v6050_v8, %v6075_v33  ;;  %v4072_v37 = vmul.f32 %v6079_v1, %v6086_v26  ;;  %v4076_v54 = vmul.f32 %v6050_v8, %v6086_v26  ;;  %2839 = vset.pattern.permute.xlu1 %v3100_v39  ;;  %v271_v35 = vpop.permute.xlu1 %270  ;;  %v6101_v8 = vld [vmem:[#allocation90_spill] sm:$0xff] }
 0x249   :  { %6092 = vst [vmem:[#allocation106_spill] sm:$0xff] %v4049_v3  ;;  %6093 = vst [vmem:[#allocation107_spill] sm:$0xff] %v4053_v13  ;;  %v4081_v36 = vsel %vm433_vm12, %v4068_v25, %v3898_v52  ;;  %v4089_v1 = vmul.f32 %v3715_v12, %v6086_v26  ;;  %v4098_v52 = vsel %vm278_vm7, %v271_v35, %v3891_v51  ;;  %1636 = vperm.xlu1 %2839, %v3650_v22   ;;  %v6114_v3 = vld [vmem:[#allocation83_spill] sm:$0xff] }
 0x24a   :  { %6094 = vst [vmem:[#allocation108_spill] sm:$0xff] %v4057_v43  ;;  %6095 = vst [vmem:[#allocation109_spill] sm:$0xff] %v4062_v59  ;;  %v4101_v39 = vadd.f32 %v2154_v46, %v2146_v63  ;;  %v6107_v63 = vld [vmem:[#allocation60_spill] sm:$0xff] }
 0x24b   :  { %6096 = vst [vmem:[#allocation110_spill] sm:$0xff] %v4066_v49  ;;  %6097 = vst [vmem:[#allocation111_spill] sm:$0xff] %v4072_v37  ;;  %v4085_v49 = vmul.f32 %v3715_v12, %v6075_v33  ;;  %v4094_v37 = vsel %vm278_vm7, %v6101_v8, %v271_v35  ;;  %v6104_v12 = vld [vmem:[#allocation68_spill] sm:$0xff]  ;;  %v4107_v33 = vpop.permute.xlu0 %458  ;;  %v6105_v8 = vld [vmem:[#allocation78_spill] sm:$0xff]  ;;  %v1407_v46 = vmul.f32 %v6107_v63, %v3812_v60  ;;  %vm1823_vm7 = vcmask 605184  }
 0x24c   :  { %6098 = vst [vmem:[#allocation112_spill] sm:$0xff] %v4076_v54  ;;  %6100 = vst [vmem:[#allocation114_spill] sm:$0xff] %v4089_v1  ;;  %v1148_v26 = vmul.f32 %v6104_v12, %v3760_v16  ;;  %v4114_v51 = vsel %vm464_vm13, %v4107_v33, %v3916_v38  ;;  %v302_v35 = vpop.permute.xlu1 %301  ;;  %v6109_v12 = vld [vmem:[#allocation91_spill] sm:$0xff] }
 0x24d   :  { %6099 = vst [vmem:[#allocation113_spill] sm:$0xff] %v4085_v49  ;;  %449 = vst [vmem:[#allocation3 + $0x138] sm:$0xff] %v4081_v36  ;;  %v1300_v49 = vmul.f32 %v6105_v8, %v3760_v16  ;;  %v4123_v43 = vsel %vm309_vm8, %v6109_v12, %v302_v35  ;;  %v4127_v8 = vsel %vm309_vm8, %v302_v35, %v3909_v20  ;;  %v6111_v38 = vld [vmem:[#allocation79_spill] sm:$0xff] }
 0x24e   :  { %6102 = vst [vmem:[#allocation90_spill] sm:$0xff] %v4098_v52  ;;  %6103 = vst [vmem:[#allocation115_spill] sm:$0xff] %v4101_v39  ;;  %v6108_v39 = vld [vmem:[#allocation72_spill] sm:$0xff]  ;;  %v1152_v13 = vadd.f32 %v1148_v26, %v3753_v47  ;;  %v6112_v12 = vld [vmem:[#allocation67_spill] sm:$0xff]  ;;  %v1411_v47 = vadd.f32 %v1407_v46, %v3802_v57 }
 0x24f   :  { %292 = vst [vmem:[#allocation3 + $0x38] sm:$0xff] %v4094_v37  ;;  %293 = vst [vmem:[#allocation3 + $0x40] sm:$0xff] %v4098_v52  ;;  %v1160_v59 = vmul.f32 %v6108_v39, %v3798_v50  ;;  %v3101_v52 = vmov 85   ;;  %v1862_v39 = vmul.f32 %v6111_v38, %v3812_v60  ;;  %v1558_v1 = vmul.f32 %v6112_v12, %v3812_v60  ;;  %v4137_v54 = vpop.permute.xlu0 %489  ;;  %v6116_v12 = vld [vmem:[#allocation71_spill] sm:$0xff]  ;;  %v6126_v38 = vld [vmem:[#allocation92_spill] sm:$0xff] }
 0x250   :  { %6106 = vst [vmem:[#allocation116_spill] sm:$0xff] %v4114_v51  ;;  %480 = vst [vmem:[#allocation3 + $0x168] sm:$0xff] %v4114_v51  ;;  %2840 = vset.pattern.permute.xlu1 %v3101_v52  ;;  %v1304_v20 = vadd.f32 %v1300_v49, %v3751_v30  ;;  %v6113_v52 = vld [vmem:[#allocation85_spill] sm:$0xff]  ;;  %v4147_v0 = vsel %vm495_vm14, %v4137_v54, %v3933_v41  ;;  %v333_v2 = vpop.permute.xlu1 %332  ;;  %v1710_v17 = vmul.f32 %v6116_v12, %v3812_v60  ;;  %v6118_v41 = vld [vmem:[#allocation62_spill] sm:$0xff] }
 0x251   :  { %6110 = vst [vmem:[#allocation91_spill] sm:$0xff] %v4127_v8  ;;  %323 = vst [vmem:[#allocation3 + $0x68] sm:$0xff] %v4123_v43  ;;  %1776 = vperm.xlu1 %2840, %v3650_v22   ;;  %v1312_v35 = vmul.f32 %v6113_v52, %v3798_v50  ;;  %v1164_v26 = vadd.f32 %v1160_v59, %v1152_v13  ;;  %v4155_v30 = vsel %vm340_vm9, %v3702_v15, %v333_v2  ;;  %v6119_v52 = vld [vmem:[#allocation70_spill] sm:$0xff]  ;;  %v3102_v13 = vmov 105  }
 0x252   :  { %324 = vst [vmem:[#allocation3 + $0x70] sm:$0xff] %v4127_v8  ;;  %v1172_v8 = vmul.f32 %v6114_v3, %v3827_v10  ;;  %6115 = vst [vmem:[#allocation117_spill] sm:$0xff] %v4147_v0  ;;  %v4159_v49 = vsel %vm340_vm9, %v333_v2, %v3926_v56  ;;  %v1419_v3 = vmul.f32 %v6118_v41, %v3835_v9  ;;  %v6120_v15 = vld [vmem:[#allocation86_spill] sm:$0xff]  ;;  %v6121_v56 = vld [vmem:[#allocation80_spill] sm:$0xff]  ;;  %vm1975_vm9 = vcmask 392192  }
 0x253   :  { %511 = vst [vmem:[#allocation3 + $0x198] sm:$0xff] %v4147_v0  ;;  %6117 = vst [vmem:[#allocation118_spill] sm:$0xff] %v4159_v49  ;;  %v1570_v57 = vmul.f32 %v6119_v52, %v3835_v9  ;;  %v1866_v59 = vadd.f32 %v1862_v39, %v3804_v45  ;;  %v1874_v46 = vmul.f32 %v6120_v15, %v3835_v9  ;;  %v4174_v12 = vpop.permute.xlu0 %520  ;;  %v6122_v52 = vld [vmem:[#allocation66_spill] sm:$0xff]  ;;  %v6123_v45 = vld [vmem:[#allocation77_spill] sm:$0xff] }
 0x254   :  { %354 = vst [vmem:[#allocation3 + $0x98] sm:$0xff] %v4155_v30  ;;  %355 = vst [vmem:[#allocation3 + $0xa0] sm:$0xff] %v4159_v49  ;;  %v1562_v2 = vadd.f32 %v1558_v1, %v3806_v27  ;;  %v1722_v0 = vmul.f32 %v6121_v56, %v3835_v9  ;;  %v1431_v51 = vmul.f32 %v6122_v52, %v3858_v61  ;;  %v364_v9 = vpop.permute.xlu1 %363  ;;  %v6125_v1 = vld [vmem:[#allocation89_spill] sm:$0xff] }
 0x255   :  { %2842 = vset.pattern.permute.xlu1 %v3102_v13  ;;  %v1176_v49 = vadd.f32 %v1172_v8, %v1164_v26  ;;  %v1184_v13 = vmul.f32 %v3729_v23, %v3851_v5  ;;  %v1582_v39 = vmul.f32 %v6123_v45, %v3858_v61  ;;  %v4185_v27 = vsel %vm526_vm15, %v4174_v12, %v3954_v53 }
 0x256   :  { %2056 = vperm.xlu1 %2842, %v3650_v22   ;;  %6124 = vst [vmem:[#allocation119_spill] sm:$0xff] %v4185_v27  ;;  %v1734_v56 = vmul.f32 %v6125_v1, %v3858_v61  ;;  %v1714_v15 = vadd.f32 %v1710_v17, %v3822_v4  ;;  %v2014_v8 = vmul.f32 %v6126_v38, %v3812_v60  ;;  %542 = vst [vmem:[#allocation3 + $0x1c8] sm:$0xff] %v4185_v27  ;;  %v3103_v27 = vmov 115   ;;  %v6129_v38 = vld [vmem:[#allocation76_spill] sm:$0xff] }
 0x257   :  { %v4195_v26 = vsel %vm371_vm10, %v3721_v11, %v364_v9  ;;  %v4199_v23 = vsel %vm371_vm10, %v364_v9, %v3940_v7  ;;  %v1423_v53 = vadd.f32 %v1419_v3, %v1411_v47  ;;  %v1574_v45 = vadd.f32 %v1570_v57, %v1562_v2  ;;  %v4207_v1 = vpop.permute.xlu0 %551 }
 0x258   :  { %6127 = vst [vmem:[#allocation120_spill] sm:$0xff] %v4199_v23  ;;  %385 = vst [vmem:[#allocation3 + $0xc8] sm:$0xff] %v4195_v26  ;;  %v4203_v4 = vadd.f32 %v1874_v46, %v1866_v59  ;;  %v4205_v17 = vadd.f32 %v1312_v35, %v1304_v20  ;;  %v1726_v60 = vadd.f32 %v1722_v0, %v1714_v15  ;;  %v395_v20 = vpop.permute.xlu1 %394  ;;  %v6131_v0 = vld [vmem:[#allocation87_spill] sm:$0xff] }
 0x259   :  { %386 = vst [vmem:[#allocation3 + $0xd0] sm:$0xff] %v4199_v23  ;;  %v1435_v11 = vadd.f32 %v1431_v51, %v1423_v53  ;;  %v1443_v7 = vmul.f32 %v6129_v38, %v3884_v34  ;;  %v4211_v9 = vadd.f32 %v1184_v13, %v1176_v49  ;;  %v1586_v3 = vadd.f32 %v1582_v39, %v1574_v45  ;;  %v6140_v39 = vld [vmem:[#allocation52_spill] sm:$0xff] }
 0x25a   :  { %6128 = vst [vmem:[#allocation121_spill] sm:$0xff] %v4205_v17  ;;  %2843 = vset.pattern.permute.xlu1 %v3103_v27  ;;  %v4216_v47 = vsel %vm557_vm0, %v4207_v1, %v4020_v14  ;;  %v1594_v35 = vmul.f32 %v6131_v0, %v3884_v34  ;;  %v4221_v57 = vadd.f32 %v1734_v56, %v1726_v60  ;;  %v6136_v34 = vld [vmem:[#allocation50_spill] sm:$0xff]  ;;  %v3104_v60 = vmov 86  }
 0x25b   :  { %6130 = vst [vmem:[#allocation122_spill] sm:$0xff] %v4216_v47  ;;  %2196 = vperm.xlu1 %2843, %v3650_v22   ;;  %v4224_v51 = vadd.f32 %v2014_v8, %v3868_v19  ;;  %573 = vst [vmem:[#allocation3 + $0x1f8] sm:$0xff] %v4216_v47  ;;  %v4229_v49 = vsel %vm402_vm11, %v3733_v18, %v395_v20  ;;  %v4233_v14 = vsel %vm402_vm11, %v395_v20, %v3996_v24  ;;  %v6137_v18 = vld [vmem:[#allocation36_spill] sm:$0xff]  ;;  %v6139_v56 = vld [vmem:[#allocation46_spill] sm:$0xff]  ;;  %vm2127_vm11 = vcmask 179200  }
 0x25c   :  { %6132 = vst [vmem:[#allocation87_spill] sm:$0xff] %v4221_v57  ;;  %6134 = vst [vmem:[#allocation124_spill] sm:$0xff] %v4229_v49  ;;  %v1394_v59 = vmul.f32 %v3475_v40, %v3896_v48  ;;  %v4239_v15 = vmul.f32 %v6136_v34, %v3760_v16  ;;  %v1392_v19 = vmul.f32 %v3475_v40, %v4094_v37  ;;  %v6138_v24 = vld [vmem:[#allocation44_spill] sm:$0xff]  ;;  %v6141_v8 = vld [vmem:[#allocation47_spill] sm:$0xff] }
 0x25d   :  { %6133 = vst [vmem:[#allocation123_spill] sm:$0xff] %v4224_v51  ;;  %6135 = vst [vmem:[#allocation125_spill] sm:$0xff] %v4233_v14  ;;  %v937_v46 = vmul.f32 %v6137_v18, %v4094_v37  ;;  %v4249_v2 = vmul.f32 %v6138_v24, %v3798_v50  ;;  %v4253_v13 = vmul.f32 %v6139_v56, %v3827_v10  ;;  %v426_v50 = vpop.permute.xlu1 %425  ;;  %v6146_v47 = vld [vmem:[#allocation56_spill] sm:$0xff] }
 0x25e   :  { %416 = vst [vmem:[#allocation3 + $0xf8] sm:$0xff] %v4229_v49  ;;  %417 = vst [vmem:[#allocation3 + $0x100] sm:$0xff] %v4233_v14  ;;  %v1406_v16 = vmul.f32 %v6107_v63, %v3914_v31  ;;  %v4257_v45 = vadd.f32 %v1443_v7, %v1435_v11  ;;  %v4261_v27 = vmul.f32 %v6140_v39, %v3851_v5 }
 0x25f   :  { %v4265_v53 = vmul.f32 %v6141_v8, %v3875_v55  ;;  %2845 = vset.pattern.permute.xlu1 %v3104_v60  ;;  %v1404_v10 = vmul.f32 %v6107_v63, %v4123_v43  ;;  %v1849_v20 = vmul.f32 %v3518_v62, %v3896_v48  ;;  %v949_v11 = vmul.f32 %v3422_v44, %v4123_v43  ;;  %v6151_v63 = vld [vmem:[#allocation103_spill] sm:$0xff] }
 0x260   :  { %v4273_v7 = vadd.f32 %v1594_v35, %v1586_v3  ;;  %v4277_v5 = vsel %vm433_vm12, %v3747_v58, %v426_v50  ;;  %v4281_v51 = vsel %vm433_vm12, %v426_v50, %v4068_v25  ;;  %1788 = vperm.xlu1 %2845, %v3650_v22   ;;  %v1398_v60 = vadd.f32 %v1394_v59, %v4024_v42  ;;  %v6144_v59 = vld [vmem:[#allocation10_spill] sm:$0xff] }
 0x261   :  { %6143 = vst [vmem:[#allocation127_spill] sm:$0xff] %v4281_v51  ;;  %v1418_v57 = vmul.f32 %v6118_v41, %v3931_v29  ;;  %447 = vst [vmem:[#allocation3 + $0x128] sm:$0xff] %v4277_v5  ;;  %v1396_v3 = vadd.f32 %v1392_v19, %v3944_v21  ;;  %v1416_v58 = vmul.f32 %v6118_v41, %v4155_v30  ;;  %v457_v21 = vpop.permute.xlu1 %456  ;;  %v3105_v41 = vmov 96  }
 0x262   :  { %6142 = vst [vmem:[#allocation126_spill] sm:$0xff] %v4273_v7  ;;  %448 = vst [vmem:[#allocation3 + $0x130] sm:$0xff] %v4281_v51  ;;  %v941_v35 = vadd.f32 %v937_v46, %v3958_v28  ;;  %v961_v25 = vmul.f32 %v3446_v6, %v4155_v30  ;;  %v1410_v50 = vadd.f32 %v1406_v16, %v1398_v60  ;;  %v6145_v7 = vld [vmem:[#allocation84_spill] sm:$0xff]  ;;  %vm2345_vm12 = vcmask 654336  }
 0x263   :  { %v1430_v42 = vmul.f32 %v6122_v52, %v3952_v32  ;;  %v1455_v17 = vmul.f32 %v6145_v7, %v6144_v59  ;;  %v4301_v51 = vmul.f32 %v6146_v47, %v3896_v48  ;;  %v1408_v19 = vadd.f32 %v1404_v10, %v1396_v3  ;;  %v6147_v46 = vld [vmem:[#allocation40_spill] sm:$0xff] }
 0x264   :  { %v1428_v14 = vmul.f32 %v6122_v52, %v4195_v26  ;;  %v953_v28 = vadd.f32 %v949_v11, %v941_v35  ;;  %v973_v23 = vmul.f32 %v6147_v46, %v4195_v26  ;;  %v6148_v16 = vld [vmem:[#allocation96_spill] sm:$0xff]  ;;  %v4313_v59 = vsel %vm464_vm13, %v457_v21, %v4107_v33  ;;  %2846 = vset.pattern.permute.xlu1 %v3105_v41  ;;  %v6152_v33 = vld [vmem:[#allocation42_spill] sm:$0xff] }
 0x265   :  { %v4309_v60 = vsel %vm464_vm13, %v6148_v16, %v457_v21  ;;  %6150 = vst [vmem:[#allocation56_spill] sm:$0xff] %v4313_v59  ;;  %v1422_v6 = vadd.f32 %v1418_v57, %v1410_v50  ;;  %v1442_v10 = vmul.f32 %v6129_v38, %v6151_v63  ;;  %479 = vst [vmem:[#allocation3 + $0x160] sm:$0xff] %v4313_v59  ;;  %1928 = vperm.xlu1 %2846, %v3650_v22   ;;  %v6153_v57 = vld [vmem:[#allocation61_spill] sm:$0xff]  ;;  %v6154_v46 = vld [vmem:[#allocation64_spill] sm:$0xff]  ;;  %vm2347_vm13 = vcmask 785408  }
 0x266   :  { %6149 = vst [vmem:[#allocation10_spill] sm:$0xff] %v4309_v60  ;;  %478 = vst [vmem:[#allocation3 + $0x158] sm:$0xff] %v4309_v60  ;;  %v1420_v11 = vadd.f32 %v1416_v58, %v1408_v19  ;;  %v1440_v3 = vmul.f32 %v6129_v38, %v4229_v49  ;;  %v965_v35 = vadd.f32 %v961_v25, %v953_v28  ;;  %v488_v58 = vpop.permute.xlu1 %487  ;;  %v6158_v38 = vld [vmem:[#allocation75_spill] sm:$0xff]  ;;  %v6159_v52 = vld [vmem:[#allocation82_spill] sm:$0xff] }
 0x267   :  { %v985_v21 = vmul.f32 %v6152_v33, %v4229_v49  ;;  %v1434_v16 = vadd.f32 %v1430_v42, %v1422_v6  ;;  %v1454_v41 = vmul.f32 %v6145_v7, %v4081_v36  ;;  %v4328_v50 = vmul.f32 %v6153_v57, %v3896_v48  ;;  %v6155_v42 = vld [vmem:[#allocation97_spill] sm:$0xff] }
 0x268   :  { %v4332_v59 = vmul.f32 %v6154_v46, %v3896_v48  ;;  %v1432_v19 = vadd.f32 %v1428_v14, %v1420_v11  ;;  %v1452_v25 = vmul.f32 %v6145_v7, %v4277_v5  ;;  %v977_v28 = vadd.f32 %v973_v23, %v965_v35 }
 0x269   :  { %v997_v6 = vmul.f32 %v6136_v34, %v4277_v5  ;;  %v4340_v33 = vsel %vm495_vm14, %v6155_v42, %v488_v58  ;;  %v4344_v57 = vsel %vm495_vm14, %v488_v58, %v4137_v54  ;;  %v1853_v46 = vadd.f32 %v1849_v20, %v6158_v38  ;;  %v6160_v38 = vld [vmem:[#allocation79_spill] sm:$0xff]  ;;  %v6161_v58 = vld [vmem:[#allocation86_spill] sm:$0xff] }
 0x26a   :  { %6156 = vst [vmem:[#allocation96_spill] sm:$0xff] %v4340_v33  ;;  %6157 = vst [vmem:[#allocation103_spill] sm:$0xff] %v4344_v57  ;;  %v4349_v14 = vmul.f32 %v6159_v52, %v3896_v48  ;;  %v3106_v23 = vmov 116   ;;  %v1444_v11 = vadd.f32 %v1440_v3, %v1432_v19  ;;  %v1446_v35 = vadd.f32 %v1442_v10, %v1434_v16  ;;  %v4363_v16 = vpop.permute.xlu0 %1461 }
 0x26b   :  { %509 = vst [vmem:[#allocation3 + $0x188] sm:$0xff] %v4340_v33  ;;  %510 = vst [vmem:[#allocation3 + $0x190] sm:$0xff] %v4344_v57  ;;  %2848 = vset.pattern.permute.xlu1 %v3106_v23  ;;  %v1847_v42 = vmul.f32 %v3518_v62, %v4094_v37  ;;  %v989_v34 = vadd.f32 %v985_v21, %v977_v28  ;;  %v1459_v54 = vadd.f32 %v1455_v17, %v4257_v45  ;;  %v519_v23 = vpop.permute.xlu1 %518  ;;  %v6163_v28 = vld [vmem:[#allocation98_spill] sm:$0xff]  ;;  %v3107_v7 = vmov 87  }
 0x26c   :  { %2208 = vperm.xlu1 %2848, %v3650_v22   ;;  %v1861_v20 = vmul.f32 %v6160_v38, %v3914_v31  ;;  %v1873_v52 = vmul.f32 %v6161_v58, %v3931_v29  ;;  %v1009_v57 = vmul.f32 %v6138_v24, %v4309_v60  ;;  %v1456_v3 = vadd.f32 %v1452_v25, %v1444_v11  ;;  %v6165_v25 = vld [vmem:[#allocation116_spill] sm:$0xff] }
 0x26d   :  { %v1458_v10 = vadd.f32 %v1454_v41, %v1446_v35  ;;  %6162 = vst [vmem:[#allocation97_spill] sm:$0xff] %v4363_v16  ;;  %v1859_v21 = vmul.f32 %v6160_v38, %v4123_v43  ;;  %v1001_v19 = vadd.f32 %v997_v6, %v989_v34  ;;  %v4369_v17 = vsel %vm526_vm15, %v6163_v28, %v519_v23  ;;  %v6166_v6 = vld [vmem:[#allocation14_spill] sm:$0xff]  ;;  %v6167_v35 = vld [vmem:[#allocation12_spill] sm:$0xff] }
 0x26e   :  { %v4373_v45 = vsel %vm526_vm15, %v519_v23, %v4174_v12  ;;  %v1464_v24 = vmul.f32 %v4363_v16, %v4309_v60  ;;  %v1021_v41 = vmul.f32 %v6139_v56, %v4340_v33  ;;  %540 = vst [vmem:[#allocation3 + $0x1b8] sm:$0xff] %v4369_v17  ;;  %v1466_v34 = vmul.f32 %v4363_v16, %v6165_v25 }
 0x26f   :  { %6164 = vst [vmem:[#allocation75_spill] sm:$0xff] %v4373_v45  ;;  %541 = vst [vmem:[#allocation3 + $0x1c0] sm:$0xff] %v4373_v45  ;;  %v1467_v11 = vmul.f32 %v4363_v16, %v6166_v6  ;;  %v1851_v28 = vadd.f32 %v1847_v42, %v6167_v35  ;;  %v1871_v12 = vmul.f32 %v6161_v58, %v4155_v30  ;;  %v550_v6 = vpop.permute.xlu1 %549  ;;  %v6171_v35 = vld [vmem:[#allocation88_spill] sm:$0xff]  ;;  %vm2349_vm14 = vcmask 916480  }
 0x270   :  { %v4388_v23 = vadd.f32 %v1464_v24, %v1456_v3  ;;  %2849 = vset.pattern.permute.xlu1 %v3107_v7  ;;  %v1865_v56 = vadd.f32 %v1861_v20, %v1853_v46  ;;  %v1013_v33 = vadd.f32 %v1009_v57, %v1001_v19  ;;  %v1033_v45 = vmul.f32 %v6140_v39, %v4369_v17  ;;  %v6172_v24 = vld [vmem:[#allocation11_spill] sm:$0xff]  ;;  %v4407_v57 = vpop.permute.xlu0 %1880 }
 0x271   :  { %v4392_v60 = vadd.f32 %v1466_v34, %v1458_v10  ;;  %v4394_v25 = vadd.f32 %v1467_v11, %v1459_v54  ;;  %1800 = vperm.xlu1 %2849, %v3650_v22   ;;  %v1863_v42 = vadd.f32 %v1859_v21, %v1851_v28  ;;  %v2152_v16 = vmul.f32 %v6171_v35, %v3896_v48 }
 0x272   :  { %6168 = vst [vmem:[#allocation79_spill] sm:$0xff] %v4388_v23  ;;  %v4401_v3 = vsel %vm557_vm0, %v6172_v24, %v550_v6  ;;  %v4405_v7 = vsel %vm557_vm0, %v550_v6, %v4207_v1  ;;  %v1877_v46 = vadd.f32 %v1873_v52, %v1865_v56  ;;  %v1025_v54 = vadd.f32 %v1021_v41, %v1013_v33  ;;  %v6175_v56 = vld [vmem:[#allocation57_spill] sm:$0xff]  ;;  %v6176_v41 = vld [vmem:[#allocation67_spill] sm:$0xff] }
 0x273   :  { %6169 = vst [vmem:[#allocation86_spill] sm:$0xff] %v4392_v60  ;;  %6170 = vst [vmem:[#allocation98_spill] sm:$0xff] %v4394_v25  ;;  %v1875_v20 = vadd.f32 %v1871_v12, %v1863_v42  ;;  %v1883_v10 = vmul.f32 %v4407_v57, %v4195_v26  ;;  %v1885_v21 = vmul.f32 %v4407_v57, %v3952_v32  ;;  %v3108_v12 = vmov 107   ;;  %v6181_v24 = vld [vmem:[#allocation21_spill] sm:$0xff] }
 0x274   :  { %6173 = vst [vmem:[#allocation12_spill] sm:$0xff] %v4401_v3  ;;  %6174 = vst [vmem:[#allocation11_spill] sm:$0xff] %v4405_v7  ;;  %v1886_v19 = vmul.f32 %v4407_v57, %v3858_v61  ;;  %v1037_v1 = vadd.f32 %v1033_v45, %v1025_v54  ;;  %v1045_v52 = vmul.f32 %v6141_v8, %v4401_v3  ;;  %v6180_v61 = vld [vmem:[#allocation71_spill] sm:$0xff]  ;;  %v6182_v60 = vld [vmem:[#allocation105_spill] sm:$0xff]  ;;  %v3110_v23 = vmov 117  }
 0x275   :  { %571 = vst [vmem:[#allocation3 + $0x1e8] sm:$0xff] %v4401_v3  ;;  %572 = vst [vmem:[#allocation3 + $0x1f0] sm:$0xff] %v4405_v7  ;;  %v1255_v33 = vmul.f32 %v6175_v56, %v3914_v31  ;;  %v1557_v34 = vmul.f32 %v6176_v41, %v3914_v31  ;;  %v4423_v6 = vadd.f32 %v1883_v10, %v1875_v20  ;;  %2851 = vset.pattern.permute.xlu1 %v3108_v12  ;;  %v6183_v10 = vld [vmem:[#allocation94_spill] sm:$0xff]  ;;  %v6199_v8 = vld [vmem:[#allocation107_spill] sm:$0xff]  ;;  %vm2379_vm15 = vcmask 31744  }
 0x276   :  { %v4425_v11 = vadd.f32 %v1885_v21, %v1877_v46  ;;  %v4428_v28 = vadd.f32 %v1886_v19, %v4203_v4  ;;  %v1709_v45 = vmul.f32 %v6180_v61, %v3914_v31  ;;  %2080 = vperm.xlu1 %2851, %v3650_v22   ;;  %v1049_v42 = vadd.f32 %v1045_v52, %v1037_v1  ;;  %v4439_v21 = vpop.permute.xlu0 %1193  ;;  %v6184_v4 = vld [vmem:[#allocation59_spill] sm:$0xff]  ;;  %v6185_v12 = vld [vmem:[#allocation106_spill] sm:$0xff]  ;;  %v6187_v1 = vld [vmem:[#allocation92_spill] sm:$0xff] }
 0x277   :  { %6177 = vst [vmem:[#allocation57_spill] sm:$0xff] %v4423_v6  ;;  %v1247_v54 = vadd.f32 %v4301_v51, %v6181_v24  ;;  %v1549_v20 = vadd.f32 %v4328_v50, %v6182_v60  ;;  %v1000_v46 = vadd.f32 %v4239_v15, %v6183_v10  ;;  %v1267_v19 = vmul.f32 %v6184_v4, %v3931_v29  ;;  %v6188_v52 = vld [vmem:[#allocation26_spill] sm:$0xff] }
 0x278   :  { %6178 = vst [vmem:[#allocation67_spill] sm:$0xff] %v4425_v11  ;;  %6179 = vst [vmem:[#allocation128_spill] sm:$0xff] %v4428_v28  ;;  %v1701_v28 = vadd.f32 %v4332_v59, %v6185_v12  ;;  %v6186_v11 = vld [vmem:[#allocation112_spill] sm:$0xff]  ;;  %v2013_v51 = vmul.f32 %v6187_v1, %v3914_v31  ;;  %v1196_v60 = vmul.f32 %v4439_v21, %v3875_v55  ;;  %1058 = vrot.lane.b32.xlu0 %v1049_v42, %s3109_s2  ;;  %v6189_v10 = vld [vmem:[#allocation70_spill] sm:$0xff] }
 0x279   :  { %v2005_v22 = vadd.f32 %v4349_v14, %v6186_v11  ;;  %v1259_v15 = vadd.f32 %v1255_v33, %v1247_v54  ;;  %v1561_v50 = vadd.f32 %v1557_v34, %v1549_v20  ;;  %v787_v24 = vmul.f32 %v6188_v52, %v3896_v48  ;;  %v6190_v14 = vld [vmem:[#allocation80_spill] sm:$0xff]  ;;  %v6191_v6 = vld [vmem:[#allocation114_spill] sm:$0xff]  ;;  %v6193_v55 = vld [vmem:[#allocation65_spill] sm:$0xff] }
 0x27a   :  { %v1569_v59 = vmul.f32 %v6189_v10, %v3931_v29  ;;  %v1713_v12 = vadd.f32 %v1709_v45, %v1701_v28  ;;  %v1721_v11 = vmul.f32 %v6190_v14, %v3931_v29  ;;  %v4459_v25 = vadd.f32 %v2152_v16, %v6191_v6  ;;  %2852 = vset.pattern.permute.xlu1 %v3110_v23  ;;  %v6194_v54 = vld [vmem:[#allocation39_spill] sm:$0xff]  ;;  %v4470_v28 = vld [vmem:[%s5724_s3] sm:$0xff]  ;;  %v6195_v23 = vld [vmem:[#allocation77_spill] sm:$0xff]  ;;  %s3116_s3 = smov 24  }
 0x27b   :  { %v1279_v42 = vmul.f32 %v6193_v55, %v3952_v32  ;;  %v1200_v33 = vadd.f32 %v1196_v60, %v4211_v9  ;;  %v1012_v34 = vadd.f32 %v4249_v2, %v1000_v46  ;;  %v799_v20 = vmul.f32 %v6194_v54, %v3914_v31  ;;  %2220 = vperm.xlu1 %2852, %v4470_v28   ;;  %v6196_v45 = vld [vmem:[#allocation89_spill] sm:$0xff] }
 0x27c   :  { %6192 = vst [vmem:[#allocation71_spill] sm:$0xff] %v4459_v25  ;;  %v1271_v16 = vadd.f32 %v1267_v19, %v1259_v15  ;;  %v1581_v6 = vmul.f32 %v6195_v23, %v3952_v32  ;;  %v1733_v25 = vmul.f32 %v6196_v45, %v3952_v32  ;;  %v4477_v9 = vadd.f32 %v2013_v51, %v2005_v22  ;;  %v6198_v2 = vld [vmem:[#allocation69_spill] sm:$0xff]  ;;  %v6200_v19 = vld [vmem:[#allocation27_spill] sm:$0xff] }
 0x27d   :  { %v1291_v46 = vmul.f32 %v6198_v2, %v6151_v63  ;;  %1208 = vrot.lane.b32.xlu0 %v1200_v33, %s3111_s20  ;;  %v1024_v60 = vadd.f32 %v4253_v13, %v1012_v34  ;;  %v791_v39 = vadd.f32 %v787_v24, %v6199_v8  ;;  %v811_v15 = vmul.f32 %v6200_v19, %v3931_v29  ;;  %v6201_v33 = vld [vmem:[#allocation28_spill] sm:$0xff] }
 0x27e   :  { %6197 = vst [vmem:[#allocation21_spill] sm:$0xff] %v4477_v9  ;;  %v1573_v35 = vadd.f32 %v1569_v59, %v1561_v50  ;;  %v1593_v7 = vmul.f32 %v6131_v0, %v6151_v63  ;;  %v1725_v1 = vadd.f32 %v1721_v11, %v1713_v12  ;;  %v785_v22 = vmul.f32 %v6188_v52, %v4094_v37  ;;  %v6203_v11 = vld [vmem:[#allocation41_spill] sm:$0xff] }
 0x27f   :  { %v1283_v51 = vadd.f32 %v1279_v42, %v1271_v16  ;;  %v1036_v9 = vadd.f32 %v4261_v27, %v1024_v60  ;;  %v803_v45 = vadd.f32 %v799_v20, %v791_v39  ;;  %v823_v13 = vmul.f32 %v6201_v33, %v3952_v32  ;;  %v6207_v20 = vld [vmem:[#allocation45_spill] sm:$0xff]  ;;  %v6210_v60 = vld [vmem:[#allocation108_spill] sm:$0xff] }
 0x280   :  { %v3112_v34 = vmov 108   ;;  %v1585_v8 = vadd.f32 %v1581_v6, %v1573_v35  ;;  %v4493_v24 = vadd.f32 %v1733_v25, %v1725_v1  ;;  %v797_v50 = vmul.f32 %v6194_v54, %v4123_v43  ;;  %v6205_v25 = vld [vmem:[#allocation90_spill] sm:$0xff] }
 0x281   :  { %2854 = vset.pattern.permute.xlu1 %v3112_v34  ;;  %v939_v59 = vmul.f32 %v6137_v18, %v3896_v48  ;;  %v4500_v12 = vadd.f32 %v1291_v46, %v1283_v51  ;;  %v4503_v39 = vadd.f32 %v4265_v53, %v1036_v9  ;;  %v815_v27 = vadd.f32 %v811_v15, %v803_v45  ;;  %v4518_v53 = vpop.permute.xlu1 %1321  ;;  %v6212_v15 = vld [vmem:[#allocation91_spill] sm:$0xff]  ;;  %v6214_v34 = vld [vmem:[#allocation78_spill] sm:$0xff] }
 0x282   :  { %6202 = vst [vmem:[#allocation105_spill] sm:$0xff] %v4493_v24  ;;  %2092 = vperm.xlu1 %2854, %v4470_v28   ;;  %v4507_v42 = vmul.f32 %v6203_v11, %v6151_v63  ;;  %v1393_v35 = vmul.f32 %v3475_v40, %v6205_v25  ;;  %v4511_v1 = vadd.f32 %v1593_v7, %v1585_v8  ;;  %6208 = vst [vmem:[#allocation106_spill] sm:$0xff] %v4518_v53  ;;  %v3113_v8 = vmov 118   ;;  %v6220_v24 = vld [vmem:[#allocation62_spill] sm:$0xff] }
 0x283   :  { %v789_v16 = vadd.f32 %v785_v22, %v6207_v20  ;;  %v809_v48 = vmul.f32 %v6200_v19, %v4155_v30  ;;  %v1848_v6 = vmul.f32 %v3518_v62, %v6205_v25  ;;  %v1241_v45 = vmul.f32 %v6146_v47, %v4094_v37  ;;  %v6213_v22 = vld [vmem:[#allocation60_spill] sm:$0xff]  ;;  %v6239_v19 = vld [vmem:[#allocation125_spill] sm:$0xff] }
 0x284   :  { %6204 = vst [vmem:[#allocation94_spill] sm:$0xff] %v4507_v42  ;;  %6206 = vst [vmem:[#allocation59_spill] sm:$0xff] %v4511_v1  ;;  %v4522_v63 = vadd.f32 %v823_v13, %v815_v27  ;;  %v4526_v40 = vmul.f32 %v3422_v44, %v3914_v31  ;;  %v1242_v7 = vmul.f32 %v6146_v47, %v6205_v25  ;;  %v6215_v47 = vld [vmem:[#allocation48_spill] sm:$0xff]  ;;  %v6217_v27 = vld [vmem:[#allocation53_spill] sm:$0xff] }
 0x285   :  { %v801_v9 = vadd.f32 %v797_v50, %v789_v16  ;;  %v821_v46 = vmul.f32 %v6201_v33, %v4195_v26  ;;  %v4533_v62 = vadd.f32 %v939_v59, %v6210_v60  ;;  %v1405_v51 = vmul.f32 %v6213_v22, %v6212_v15  ;;  %v6219_v22 = vld [vmem:[#allocation118_spill] sm:$0xff]  ;;  %v6230_v33 = vld [vmem:[#allocation55_spill] sm:$0xff] }
 0x286   :  { %6209 = vst [vmem:[#allocation112_spill] sm:$0xff] %v4526_v40  ;;  %v1860_v13 = vmul.f32 %v6160_v38, %v6212_v15  ;;  %v4541_v31 = vmul.f32 %v6214_v34, %v4081_v36  ;;  %2855 = vset.pattern.permute.xlu1 %v3113_v8  ;;  %v4545_v50 = vmul.f32 %v6215_v47, %v3931_v29  ;;  %v6218_v38 = vld [vmem:[#allocation54_spill] sm:$0xff]  ;;  %v6221_v40 = vld [vmem:[#allocation19_spill] sm:$0xff] }
 0x287   :  { %6211 = vst [vmem:[#allocation26_spill] sm:$0xff] %v4533_v62  ;;  %v1397_v20 = vadd.f32 %v1393_v35, %v6217_v27  ;;  %2232 = vperm.xlu1 %2855, %v4470_v28   ;;  %v813_v59 = vadd.f32 %v809_v48, %v801_v9  ;;  %v833_v16 = vmul.f32 %v6203_v11, %v4229_v49  ;;  %v6222_v62 = vld [vmem:[#allocation15_spill] sm:$0xff]  ;;  %v6223_v35 = vld [vmem:[#allocation74_spill] sm:$0xff]  ;;  %v6225_v9 = vld [vmem:[#allocation29_spill] sm:$0xff] }
 0x288   :  { %6216 = vst [vmem:[#allocation70_spill] sm:$0xff] %v4545_v50  ;;  %v1089_v60 = vmul.f32 %v6218_v38, %v4094_v37  ;;  %v1417_v1 = vmul.f32 %v6220_v24, %v6219_v22  ;;  %v1852_v8 = vadd.f32 %v1848_v6, %v6221_v40  ;;  %v1245_v32 = vadd.f32 %v1241_v45, %v6222_v62  ;;  %v4560_v50 = vpop.permute.xlu1 %1600  ;;  %v6226_v38 = vld [vmem:[#allocation51_spill] sm:$0xff]  ;;  %v6227_v62 = vld [vmem:[#allocation10_spill] sm:$0xff] }
 0x289   :  { %v1253_v29 = vmul.f32 %v6175_v56, %v4123_v43  ;;  %v1246_v27 = vadd.f32 %v1242_v7, %v6223_v35  ;;  %6224 = vst [vmem:[#allocation80_spill] sm:$0xff] %v4560_v50  ;;  %v825_v48 = vadd.f32 %v821_v46, %v813_v59  ;;  %v845_v47 = vmul.f32 %v6225_v9, %v4277_v5  ;;  %v6228_v35 = vld [vmem:[#allocation31_spill] sm:$0xff]  ;;  %v6229_v59 = vld [vmem:[#allocation49_spill] sm:$0xff] }
 0x28a   :  { %v1101_v11 = vmul.f32 %v6226_v38, %v4123_v43  ;;  %v1409_v44 = vadd.f32 %v1405_v51, %v1397_v20  ;;  %v1864_v24 = vadd.f32 %v1860_v13, %v1852_v8  ;;  %v1872_v6 = vmul.f32 %v6161_v58, %v6219_v22  ;;  %v6231_v20 = vld [vmem:[#allocation96_spill] sm:$0xff] }
 0x28b   :  { %v1254_v45 = vmul.f32 %v6175_v56, %v6212_v15  ;;  %v3114_v40 = vmov 119   ;;  %v837_v7 = vadd.f32 %v833_v16, %v825_v48  ;;  %v857_v46 = vmul.f32 %v6228_v35, %v6227_v62  ;;  %v6232_v16 = vld [vmem:[#allocation43_spill] sm:$0xff] }
 0x28c   :  { %2857 = vset.pattern.permute.xlu1 %v3114_v40  ;;  %v1093_v50 = vadd.f32 %v1089_v60, %v6229_v59  ;;  %v1113_v53 = vmul.f32 %v6230_v33, %v4155_v30  ;;  %v1421_v38 = vadd.f32 %v1417_v1, %v1409_v44  ;;  %v1257_v51 = vadd.f32 %v1253_v29, %v1245_v32  ;;  %v6233_v60 = vld [vmem:[#allocation58_spill] sm:$0xff]  ;;  %v6234_v59 = vld [vmem:[#allocation120_spill] sm:$0xff]  ;;  %v4590_v29 = vpop.permute.xlu1 %1740 }
 0x28d   :  { %v1265_v13 = vmul.f32 %v6184_v4, %v4155_v30  ;;  %v1266_v58 = vmul.f32 %v6184_v4, %v6219_v22  ;;  %2244 = vperm.xlu1 %2857, %v4470_v28   ;;  %v849_v56 = vadd.f32 %v845_v47, %v837_v7  ;;  %v869_v8 = vmul.f32 %v6232_v16, %v6231_v20  ;;  %v6235_v33 = vld [vmem:[#allocation66_spill] sm:$0xff]  ;;  %v6237_v7 = vld [vmem:[#allocation33_spill] sm:$0xff]  ;;  %v6240_v16 = vld [vmem:[#allocation76_spill] sm:$0xff] }
 0x28e   :  { %v1105_v48 = vadd.f32 %v1101_v11, %v1093_v50  ;;  %v1125_v40 = vmul.f32 %v6233_v60, %v4195_v26  ;;  %v1429_v44 = vmul.f32 %v6235_v33, %v6234_v59  ;;  %v1258_v32 = vadd.f32 %v1254_v45, %v1246_v27  ;;  %6236 = vst [vmem:[#allocation114_spill] sm:$0xff] %v4590_v29  ;;  %v6238_v50 = vld [vmem:[#allocation63_spill] sm:$0xff] }
 0x28f   :  { %v1277_v1 = vmul.f32 %v6193_v55, %v4195_v26  ;;  %v1278_v4 = vmul.f32 %v6193_v55, %v6234_v59  ;;  %v861_v47 = vadd.f32 %v857_v46, %v849_v56  ;;  %v881_v18 = vmul.f32 %v6237_v7, %v4369_v17  ;;  %v6241_v46 = vld [vmem:[#allocation35_spill] sm:$0xff] }
 0x290   :  { %v1117_v11 = vadd.f32 %v1113_v53, %v1105_v48  ;;  %v1137_v60 = vmul.f32 %v6238_v50, %v4229_v49  ;;  %v1441_v33 = vmul.f32 %v6240_v16, %v6239_v19  ;;  %v4598_v27 = vadd.f32 %v1872_v6, %v1864_v24  ;;  %v6242_v53 = vld [vmem:[#allocation68_spill] sm:$0xff] }
 0x291   :  { %v1269_v45 = vadd.f32 %v1265_v13, %v1257_v51  ;;  %v1270_v54 = vadd.f32 %v1266_v58, %v1258_v32  ;;  %v3115_v35 = vmov 120   ;;  %v873_v55 = vadd.f32 %v869_v8, %v861_v47  ;;  %v6244_v13 = vld [vmem:[#allocation72_spill] sm:$0xff]  ;;  %v6245_v8 = vld [vmem:[#allocation127_spill] sm:$0xff] }
 0x292   :  { %2858 = vset.pattern.permute.xlu1 %v3115_v35  ;;  %v893_v56 = vmul.f32 %v6241_v46, %v4401_v3  ;;  %v1129_v29 = vadd.f32 %v1125_v40, %v1117_v11  ;;  %v1149_v48 = vmul.f32 %v6242_v53, %v4277_v5  ;;  %v1433_v50 = vadd.f32 %v1429_v44, %v1421_v38  ;;  %v4609_v35 = vpop.permute.xlu1 %2020  ;;  %v6246_v40 = vld [vmem:[#allocation84_spill] sm:$0xff]  ;;  %v6248_v44 = vld [vmem:[#allocation85_spill] sm:$0xff] }
 0x293   :  { %2256 = vperm.xlu1 %2858, %v4470_v28   ;;  %v1281_v7 = vadd.f32 %v1277_v1, %v1269_v45  ;;  %v1282_v42 = vadd.f32 %v1278_v4, %v1270_v54  ;;  %v1289_v24 = vmul.f32 %v6198_v2, %v4229_v49  ;;  %v1290_v6 = vmul.f32 %v6198_v2, %v6239_v19  ;;  %v6247_v38 = vld [vmem:[#allocation116_spill] sm:$0xff]  ;;  %v6249_v4 = vld [vmem:[#allocation61_spill] sm:$0xff] }
 0x294   :  { %6243 = vst [vmem:[#allocation65_spill] sm:$0xff] %v4609_v35  ;;  %v885_v28 = vadd.f32 %v881_v18, %v873_v55  ;;  %v1141_v51 = vadd.f32 %v1137_v60, %v1129_v29  ;;  %v1161_v58 = vmul.f32 %v6244_v13, %v6227_v62  ;;  %v1445_v16 = vadd.f32 %v1441_v33, %v1433_v50  ;;  %v6250_v18 = vld [vmem:[#allocation83_spill] sm:$0xff] }
 0x295   :  { %v1453_v32 = vmul.f32 %v6246_v40, %v6245_v8  ;;  %v1307_v54 = vadd.f32 %v4541_v31, %v4500_v12  ;;  %v1315_v1 = vmul.f32 %v6248_v44, %v6247_v38  ;;  %v1543_v2 = vmul.f32 %v6249_v4, %v4094_v37 }
 0x296   :  { %v897_v47 = vadd.f32 %v893_v56, %v885_v28  ;;  %v1153_v11 = vadd.f32 %v1149_v48, %v1141_v51  ;;  %v1173_v60 = vmul.f32 %v6250_v18, %v6231_v20  ;;  %v6251_v29 = vmov 0   ;;  %v6252_v48 = vld [vmem:[#allocation93_spill] sm:$0xff]  ;;  %v4641_v40 = vpop.permute.xlu1 %2160 }
 0x297   :  { %2859 = vset.pattern.permute.xlu1 %v6251_v29  ;;  %v1293_v50 = vadd.f32 %v1289_v24, %v1281_v7  ;;  %v1301_v33 = vmul.f32 %v6214_v34, %v4277_v5  ;;  %v1302_v12 = vmul.f32 %v6214_v34, %v6245_v8  ;;  %v1544_v31 = vmul.f32 %v6249_v4, %v6205_v25 }
 0x298   :  { %v1294_v45 = vadd.f32 %v1290_v6, %v1282_v42  ;;  %v1555_v55 = vmul.f32 %v6176_v41, %v4123_v43  ;;  %906 = vrot.lane.b32.xlu1 %v897_v47, %s3096_s1  ;;  %v1165_v56 = vadd.f32 %v1161_v58, %v1153_v11  ;;  %v1185_v28 = vmul.f32 %v6252_v48, %v4369_v17  ;;  %v6254_v6 = vld [vmem:[#allocation17_spill] sm:$0xff]  ;;  %v6255_v11 = vld [vmem:[#allocation56_spill] sm:$0xff] }
 0x299   :  { %v1457_v7 = vadd.f32 %v1453_v32, %v1445_v16  ;;  %v1313_v24 = vmul.f32 %v6248_v44, %v6227_v62  ;;  %v4637_v51 = vadd.f32 %v1315_v1, %v1307_v54  ;;  %v1556_v34 = vmul.f32 %v6176_v41, %v6212_v15  ;;  %6253 = vst [vmem:[#allocation77_spill] sm:$0xff] %v4641_v40  ;;  %v6256_v1 = vld [vmem:[#allocation99_spill] sm:$0xff] }
 0x29a   :  { %v1197_v42 = vmul.f32 %v4439_v21, %v4401_v3  ;;  %v1547_v4 = vadd.f32 %v1543_v2, %v6254_v6  ;;  %v1567_v58 = vmul.f32 %v6189_v10, %v4155_v30  ;;  %v1177_v47 = vadd.f32 %v1173_v60, %v1165_v56 }
 0x29b   :  { %v1305_v16 = vadd.f32 %v1301_v33, %v1293_v50  ;;  %v1306_v32 = vadd.f32 %v1302_v12, %v1294_v45  ;;  %v1314_v54 = vmul.f32 %v6248_v44, %v6255_v11  ;;  %v1548_v29 = vadd.f32 %v1544_v31, %v6256_v1  ;;  %v6257_v50 = vld [vmem:[#allocation64_spill] sm:$0xff]  ;;  %v6258_v12 = vld [vmem:[#allocation97_spill] sm:$0xff] }
 0x29c   :  { %v1559_v35 = vadd.f32 %v1555_v55, %v1547_v4  ;;  %v1568_v41 = vmul.f32 %v6189_v10, %v6219_v22  ;;  %v1579_v40 = vmul.f32 %v6195_v23, %v4195_v26  ;;  %1056 = vrot.lane.b32.xlu1 %v4503_v39, %s3109_s2  ;;  %v1189_v2 = vadd.f32 %v1185_v28, %v1177_v47  ;;  %v4667_v55 = vpop.permute.xlu1 %1333 }
 0x29d   :  { %v4657_v6 = vadd.f32 %v1313_v24, %v1305_v16  ;;  %v1560_v60 = vadd.f32 %v1556_v34, %v1548_v29  ;;  %v1695_v33 = vmul.f32 %v6257_v50, %v4094_v37  ;;  %v1696_v44 = vmul.f32 %v6257_v50, %v6205_v25  ;;  %6259 = vst [vmem:[#allocation69_spill] sm:$0xff] %v4667_v55 }
 0x29e   :  { %v1465_v31 = vmul.f32 %v6258_v12, %v6255_v11  ;;  %v1571_v10 = vadd.f32 %v1567_v58, %v1559_v35  ;;  %v1580_v45 = vmul.f32 %v6195_v23, %v6234_v59  ;;  %v1201_v39 = vadd.f32 %v1197_v42, %v1189_v2  ;;  %v6260_v58 = vld [vmem:[#allocation73_spill] sm:$0xff]  ;;  %v6266_v12 = vld [vmem:[#allocation92_spill] sm:$0xff] }
 0x29f   :  { %v4669_v56 = vadd.f32 %v1314_v54, %v1306_v32  ;;  %v1591_v28 = vmul.f32 %v6131_v0, %v4229_v49  ;;  %v1707_v24 = vmul.f32 %v6180_v61, %v4123_v43  ;;  %v1708_v34 = vmul.f32 %v6180_v61, %v6212_v15  ;;  %v6261_v32 = vld [vmem:[#allocation100_spill] sm:$0xff] }
 0x2a0   :  { %v1572_v4 = vadd.f32 %v1568_v41, %v1560_v60  ;;  %v1583_v47 = vadd.f32 %v1579_v40, %v1571_v10  ;;  %v1592_v35 = vmul.f32 %v6131_v0, %v6239_v19  ;;  %v1719_v23 = vmul.f32 %v6190_v14, %v4155_v30  ;;  %1210 = vrot.lane.b32.xlu1 %v1201_v39, %s3111_s20  ;;  %v1613_v40 = vpop.permute.xlu0 %1612  ;;  %v6263_v0 = vld [vmem:[#allocation82_spill] sm:$0xff] }
 0x2a1   :  { %v1884_v42 = vmul.f32 %v4407_v57, %v6234_v59  ;;  %v1699_v16 = vadd.f32 %v1695_v33, %v6260_v58  ;;  %v1700_v54 = vadd.f32 %v1696_v44, %v6261_v32  ;;  %v1720_v61 = vmul.f32 %v6190_v14, %v6219_v22  ;;  %v6264_v57 = vld [vmem:[#allocation89_spill] sm:$0xff]  ;;  %v4698_v44 = vpop.permute.xlu1 %1473  ;;  %v6272_v58 = vld [vmem:[#allocation88_spill] sm:$0xff]  ;;  %v6273_v32 = vld [vmem:[#allocation122_spill] sm:$0xff] }
 0x2a2   :  { %v4688_v1 = vadd.f32 %v1465_v31, %v1457_v7  ;;  %v1584_v29 = vadd.f32 %v1580_v45, %v1572_v4  ;;  %v1999_v41 = vmul.f32 %v6263_v0, %v4094_v37  ;;  %v2000_v30 = vmul.f32 %v6263_v0, %v6205_v25  ;;  %6265 = vst [vmem:[#allocation90_spill] sm:$0xff] %v4698_v44  ;;  %v6268_v45 = vld [vmem:[#allocation11_spill] sm:$0xff]  ;;  %v6270_v4 = vld [vmem:[#allocation109_spill] sm:$0xff] }
 0x2a3   :  { %v1711_v2 = vadd.f32 %v1707_v24, %v1699_v16  ;;  %v1712_v60 = vadd.f32 %v1708_v34, %v1700_v54  ;;  %v1731_v50 = vmul.f32 %v6264_v57, %v4195_v26  ;;  %v1732_v33 = vmul.f32 %v6264_v57, %v6234_v59 }
 0x2a4   :  { %6262 = vst [vmem:[#allocation107_spill] sm:$0xff] %v4688_v1  ;;  %v4700_v14 = vadd.f32 %v1591_v28, %v1583_v47  ;;  %v4702_v7 = vadd.f32 %v1592_v35, %v1584_v29  ;;  %v2011_v37 = vmul.f32 %v6266_v12, %v4123_v43  ;;  %v2012_v31 = vmul.f32 %v6266_v12, %v6212_v15  ;;  %v6271_v47 = vld [vmem:[#allocation110_spill] sm:$0xff] }
 0x2a5   :  { %v4709_v10 = vadd.f32 %v1884_v42, %v4598_v27  ;;  %v4713_v39 = vmul.f32 %v4439_v21, %v6268_v45  ;;  %v1723_v24 = vadd.f32 %v1719_v23, %v1711_v2  ;;  %v1724_v34 = vadd.f32 %v1720_v61, %v1712_v60  ;;  %v4731_v61 = vpop.permute.xlu0 %2032 }
 0x2a6   :  { %v2003_v28 = vadd.f32 %v1999_v41, %v6270_v4  ;;  %v2004_v35 = vadd.f32 %v2000_v30, %v6271_v47  ;;  %v2151_v16 = vmul.f32 %v6272_v58, %v6205_v25  ;;  %v847_v43 = vmul.f32 %v6225_v9, %v4081_v36  ;;  %v4737_v41 = vpop.permute.xlu1 %1752  ;;  %v6280_v30 = vld [vmem:[#allocation94_spill] sm:$0xff]  ;;  %v6290_v4 = vld [vmem:[#allocation117_spill] sm:$0xff] }
 0x2a7   :  { %6267 = vst [vmem:[#allocation45_spill] sm:$0xff] %v4709_v10  ;;  %6269 = vst [vmem:[#allocation108_spill] sm:$0xff] %v4713_v39  ;;  %v4723_v27 = vmul.f32 %v4439_v21, %v6273_v32  ;;  %v4725_v42 = vadd.f32 %v1731_v50, %v1723_v24  ;;  %v4727_v54 = vadd.f32 %v1732_v33, %v1724_v34  ;;  %v6281_v21 = vld [vmem:[#allocation31_spill] sm:$0xff]  ;;  %v6288_v24 = vld [vmem:[#allocation113_spill] sm:$0xff] }
 0x2a8   :  { %v786_v23 = vmul.f32 %v6188_v52, %v6205_v25  ;;  %v4733_v29 = vadd.f32 %v2011_v37, %v2003_v28  ;;  %v4735_v0 = vadd.f32 %v2012_v31, %v2004_v35  ;;  %6279 = vst [vmem:[#allocation62_spill] sm:$0xff] %v4737_v41  ;;  %v839_v2 = vadd.f32 %v6280_v30, %v4522_v63  ;;  %v6285_v33 = vld [vmem:[#allocation39_spill] sm:$0xff]  ;;  %v6286_v37 = vld [vmem:[#allocation14_spill] sm:$0xff]  ;;  %v6293_v35 = vld [vmem:[#allocation101_spill] sm:$0xff] }
 0x2a9   :  { %6274 = vst [vmem:[#allocation91_spill] sm:$0xff] %v4723_v27  ;;  %6275 = vst [vmem:[#allocation60_spill] sm:$0xff] %v4725_v42  ;;  %v859_v60 = vmul.f32 %v6281_v21, %v6247_v38  ;;  %v4744_v57 = vmul.f32 %v1613_v40, %v6227_v62  ;;  %v4747_v50 = vmul.f32 %v1613_v40, %v6255_v11  ;;  %v6291_v28 = vld [vmem:[#allocation43_spill] sm:$0xff]  ;;  %v6296_v41 = vld [vmem:[#allocation106_spill] sm:$0xff]  ;;  %v4841_v1 = vpop.permute.xlu0 %1485 }
 0x2aa   :  { %6276 = vst [vmem:[#allocation78_spill] sm:$0xff] %v4727_v54  ;;  %6277 = vst [vmem:[#allocation53_spill] sm:$0xff] %v4733_v29  ;;  %v4750_v52 = vmul.f32 %v1613_v40, %v6247_v38  ;;  %v798_v12 = vmul.f32 %v6285_v33, %v6212_v15  ;;  %v4755_v31 = vmul.f32 %v1613_v40, %v6286_v37  ;;  %v6294_v30 = vld [vmem:[#allocation27_spill] sm:$0xff]  ;;  %v6295_v33 = vld [vmem:[#allocation36_spill] sm:$0xff] }
 0x2ab   :  { %6278 = vst [vmem:[#allocation118_spill] sm:$0xff] %v4735_v0  ;;  %6282 = vst [vmem:[#allocation19_spill] sm:$0xff] %v4744_v57  ;;  %v4758_v63 = vadd.f32 %v2151_v16, %v6288_v24  ;;  %v851_v34 = vadd.f32 %v847_v43, %v839_v2  ;;  %v871_v62 = vmul.f32 %v6291_v28, %v6290_v4  ;;  %v2866_v37 = vld [vmem:[#allocation3 + $0x180] sm:$0xff]  ;;  %v6297_v24 = vld [vmem:[#allocation119_spill] sm:$0xff] }
 0x2ac   :  { %6283 = vst [vmem:[#allocation15_spill] sm:$0xff] %v4747_v50  ;;  %6284 = vst [vmem:[#allocation74_spill] sm:$0xff] %v4750_v52  ;;  %v4764_v47 = vmul.f32 %v4731_v61, %v4195_v26  ;;  %v790_v58 = vadd.f32 %v786_v23, %v6293_v35  ;;  %v810_v10 = vmul.f32 %v6294_v30, %v6219_v22  ;;  %v4780_v23 = vpop.permute.xlu1 %1892  ;;  %v6301_v30 = vld [vmem:[#allocation28_spill] sm:$0xff]  ;;  %v6317_v42 = vld [vmem:[#allocation50_spill] sm:$0xff] }
 0x2ad   :  { %6287 = vst [vmem:[#allocation29_spill] sm:$0xff] %v4755_v31  ;;  %6289 = vst [vmem:[#allocation10_spill] sm:$0xff] %v4758_v63  ;;  %v938_v40 = vmul.f32 %v6295_v33, %v6205_v25  ;;  %v1324_v16 = vmul.f32 %v2866_v37, %v6296_v41  ;;  %v1325_v43 = vmul.f32 %v6296_v41, %v6231_v20  ;;  %v6298_v63 = vld [vmem:[#allocation33_spill] sm:$0xff]  ;;  %v6302_v33 = vld [vmem:[#allocation38_spill] sm:$0xff] }
 0x2ae   :  { %6292 = vst [vmem:[#allocation49_spill] sm:$0xff] %v4764_v47  ;;  %v863_v2 = vadd.f32 %v859_v60, %v851_v34  ;;  %v883_v0 = vmul.f32 %v6298_v63, %v6297_v24  ;;  %v4778_v26 = vmul.f32 %v4731_v61, %v6234_v59  ;;  %6300 = vst [vmem:[#allocation66_spill] sm:$0xff] %v4780_v23  ;;  %v6303_v47 = vld [vmem:[#allocation13_spill] sm:$0xff]  ;;  %v6305_v60 = vld [vmem:[#allocation103_spill] sm:$0xff] }
 0x2af   :  { %v802_v35 = vadd.f32 %v798_v12, %v790_v58  ;;  %v822_v25 = vmul.f32 %v6301_v30, %v6234_v59  ;;  %v950_v37 = vmul.f32 %v6302_v33, %v6212_v15  ;;  %v4788_v29 = vmul.f32 %v4731_v61, %v6303_v47  ;;  %v6306_v58 = vld [vmem:[#allocation41_spill] sm:$0xff]  ;;  %v6307_v31 = vld [vmem:[#allocation102_spill] sm:$0xff]  ;;  %v6308_v33 = vld [vmem:[#allocation48_spill] sm:$0xff] }
 0x2b0   :  { %6299 = vst [vmem:[#allocation120_spill] sm:$0xff] %v4778_v26  ;;  %v4792_v34 = vmul.f32 %v6296_v41, %v6305_v60  ;;  %v4796_v26 = vmul.f32 %v6296_v41, %v6290_v4  ;;  %v875_v23 = vadd.f32 %v871_v62, %v863_v2  ;;  %v834_v30 = vmul.f32 %v6306_v58, %v6239_v19  ;;  %v6309_v47 = vld [vmem:[#allocation121_spill] sm:$0xff]  ;;  %v6310_v2 = vld [vmem:[#allocation40_spill] sm:$0xff]  ;;  %v4814_v58 = vpop.permute.xlu1 %2172 }
 0x2b1   :  { %6304 = vst [vmem:[#allocation125_spill] sm:$0xff] %v4788_v29  ;;  %v814_v12 = vadd.f32 %v810_v10, %v802_v35  ;;  %v942_v52 = vadd.f32 %v938_v40, %v6307_v31  ;;  %v962_v39 = vmul.f32 %v6308_v33, %v6219_v22  ;;  %v1328_v29 = vadd.f32 %v1324_v16, %v6309_v47  ;;  %v2867_v31 = vld [vmem:[#allocation3 + $0x1b0] sm:$0xff] }
 0x2b2   :  { %v1329_v50 = vadd.f32 %v1325_v43, %v4657_v6  ;;  %v887_v57 = vadd.f32 %v883_v0, %v875_v23  ;;  %v895_v54 = vmul.f32 %v6241_v46, %v6273_v32  ;;  %v846_v10 = vmul.f32 %v6225_v9, %v6245_v8  ;;  %6311 = vst [vmem:[#allocation76_spill] sm:$0xff] %v4814_v58  ;;  %v6312_v0 = vld [vmem:[#allocation42_spill] sm:$0xff]  ;;  %v6316_v58 = vld [vmem:[#allocation75_spill] sm:$0xff] }
 0x2b3   :  { %v826_v41 = vadd.f32 %v822_v25, %v814_v12  ;;  %v954_v62 = vadd.f32 %v950_v37, %v942_v52  ;;  %v974_v35 = vmul.f32 %v6310_v2, %v6234_v59  ;;  %v1336_v40 = vmul.f32 %v2867_v31, %v4667_v55  ;;  %v6313_v52 = vld [vmem:[#allocation26_spill] sm:$0xff]  ;;  %v6314_v25 = vld [vmem:[#allocation112_spill] sm:$0xff]  ;;  %v4822_v12 = vld [vmem:[#allocation3 + $0xd8] sm:$0xff] }
 0x2b4   :  { %v1337_v16 = vmul.f32 %v4667_v55, %v4369_v17  ;;  %v858_v6 = vmul.f32 %v6281_v21, %v6255_v11  ;;  %v986_v43 = vmul.f32 %v6312_v0, %v6239_v19  ;;  %v955_v37 = vadd.f32 %v6314_v25, %v6313_v52  ;;  %6315 = vst [vmem:[#allocation35_spill] sm:$0xff] %v4822_v12  ;;  %v4833_v52 = vld [vmem:[#allocation3 + $0x108] sm:$0xff]  ;;  %v4843_v20 = vpop.permute.xlu1 %1345 }
 0x2b5   :  { %v838_v23 = vadd.f32 %v834_v30, %v826_v41  ;;  %v966_v9 = vadd.f32 %v962_v39, %v954_v62  ;;  %v975_v33 = vmul.f32 %v4822_v12, %v6310_v2  ;;  %v899_v47 = vadd.f32 %v895_v54, %v887_v57  ;;  %v6318_v41 = vld [vmem:[#allocation70_spill] sm:$0xff]  ;;  %6319 = vst [vmem:[#allocation68_spill] sm:$0xff] %v4833_v52 }
 0x2b6   :  { %v870_v31 = vmul.f32 %v6291_v28, %v6305_v60  ;;  %v882_v21 = vmul.f32 %v6298_v63, %v6316_v58  ;;  %v998_v27 = vmul.f32 %v6317_v42, %v6245_v8  ;;  %v967_v62 = vadd.f32 %v6318_v41, %v955_v37  ;;  %v6320_v28 = vld [vmem:[#allocation44_spill] sm:$0xff]  ;;  %6321 = vst [vmem:[#allocation72_spill] sm:$0xff] %v4843_v20 }
 0x2b7   :  { %v850_v30 = vadd.f32 %v846_v10, %v838_v23  ;;  %v978_v39 = vadd.f32 %v974_v35, %v966_v9  ;;  %v987_v25 = vmul.f32 %v4833_v52, %v6312_v0  ;;  %v1341_v2 = vadd.f32 %v1337_v16, %v1329_v50  ;;  %v2870_v37 = vld [vmem:[#allocation3 + $0x1e0] sm:$0xff]  ;;  %v4852_v16 = vld [vmem:[#allocation3 + $0x48] sm:$0xff]  ;;  %v6324_v0 = vld [vmem:[#allocation54_spill] sm:$0xff] }
 0x2b8   :  { %v1340_v54 = vadd.f32 %v1336_v40, %v1328_v29  ;;  %v894_v57 = vmul.f32 %v6241_v46, %v6268_v45  ;;  %v1010_v63 = vmul.f32 %v6320_v28, %v6255_v11  ;;  %v979_v23 = vadd.f32 %v975_v33, %v967_v62  ;;  %v6322_v46 = vld [vmem:[#allocation46_spill] sm:$0xff]  ;;  %6323 = vst [vmem:[#allocation127_spill] sm:$0xff] %v4852_v16 }
 0x2b9   :  { %v862_v10 = vadd.f32 %v858_v6, %v850_v30  ;;  %v990_v35 = vadd.f32 %v986_v43, %v978_v39  ;;  %v999_v9 = vmul.f32 %v6317_v42, %v4081_v36  ;;  %v1348_v50 = vmul.f32 %v2870_v37, %v4843_v20  ;;  %v6325_v39 = vld [vmem:[#allocation52_spill] sm:$0xff]  ;;  %v4860_v37 = vld [vmem:[#allocation3 + $0x78] sm:$0xff] }
 0x2ba   :  { %v1349_v29 = vmul.f32 %v4843_v20, %v4401_v3  ;;  %v1022_v40 = vmul.f32 %v6322_v46, %v6305_v60  ;;  %v1091_v41 = vmul.f32 %v4852_v16, %v6324_v0  ;;  %v991_v33 = vadd.f32 %v987_v25, %v979_v23  ;;  %6326 = vst [vmem:[#allocation84_spill] sm:$0xff] %v4860_v37  ;;  %v6327_v3 = vld [vmem:[#allocation51_spill] sm:$0xff] }
 0x2bb   :  { %v874_v6 = vadd.f32 %v870_v31, %v862_v10  ;;  %v1002_v43 = vadd.f32 %v998_v27, %v990_v35  ;;  %v1011_v36 = vmul.f32 %v6320_v28, %v6247_v38  ;;  %v1352_v30 = vadd.f32 %v1348_v50, %v1340_v54  ;;  %v4866_v31 = vpop.permute.xlu1 %1624  ;;  %v6328_v38 = vld [vmem:[#allocation111_spill] sm:$0xff] }
 0x2bc   :  { %v1353_v42 = vadd.f32 %v1349_v29, %v1341_v2  ;;  %v1034_v62 = vmul.f32 %v6325_v39, %v6316_v58  ;;  %v1103_v20 = vmul.f32 %v4860_v37, %v6327_v3  ;;  %v1003_v44 = vadd.f32 %v999_v9, %v991_v33  ;;  %v4871_v2 = vld [vmem:[#allocation3 + $0xa8] sm:$0xff]  ;;  %v6330_v54 = vld [vmem:[#allocation55_spill] sm:$0xff] }
 0x2bd   :  { %v886_v55 = vadd.f32 %v882_v21, %v874_v6  ;;  %v1014_v49 = vadd.f32 %v1010_v63, %v1002_v43  ;;  %v1023_v27 = vmul.f32 %v6322_v46, %v6290_v4  ;;  %1360 = vrot.lane.b32.xlu0 %v1352_v30, %s3116_s3  ;;  %v1095_v25 = vadd.f32 %v1091_v41, %v6328_v38  ;;  %v4875_v21 = vld [vmem:[#allocation3 + $0x40] sm:$0xff]  ;;  %v4879_v4 = vpop.permute.xlu0 %1904  ;;  %v6332_v35 = vld [vmem:[#allocation47_spill] sm:$0xff]  ;;  %v6333_v41 = vld [vmem:[#allocation58_spill] sm:$0xff] }
 0x2be   :  { %1362 = vrot.lane.b32.xlu1 %v1353_v42, %s3116_s3  ;;  %6329 = vst [vmem:[#allocation116_spill] sm:$0xff] %v4871_v2  ;;  %v1115_v28 = vmul.f32 %v4871_v2, %v6330_v54  ;;  %6331 = vst [vmem:[#allocation85_spill] sm:$0xff] %v4875_v21  ;;  %v1090_v63 = vmul.f32 %v4875_v21, %v6324_v0  ;;  %v1046_v23 = vmul.f32 %v6332_v35, %v6268_v45  ;;  %v4910_v30 = vld [vmem:[#allocation3 + $0x138] sm:$0xff]  ;;  %v6355_v21 = vld [vmem:[#allocation60_spill] sm:$0xff] }
 0x2bf   :  { %v1026_v10 = vadd.f32 %v1022_v40, %v1014_v49  ;;  %v1015_v9 = vadd.f32 %v1011_v36, %v1003_v44  ;;  %v1035_v50 = vmul.f32 %v6325_v39, %v6297_v24  ;;  %v898_v29 = vadd.f32 %v894_v57, %v886_v55  ;;  %v6334_v40 = vld [vmem:[#allocation63_spill] sm:$0xff]  ;;  %v4898_v36 = vld [vmem:[#allocation3 + $0xe0] sm:$0xff]  ;;  %6337 = vst [vmem:[#allocation83_spill] sm:$0xff] %v4910_v30 }
 0x2c0   :  { %v1107_v46 = vadd.f32 %v1103_v20, %v1095_v25  ;;  %v1127_v6 = vmul.f32 %v4822_v12, %v6333_v41  ;;  %v1102_v43 = vmul.f32 %v6327_v3, %v6212_v15  ;;  %v1047_v49 = vmul.f32 %v6332_v35, %v6273_v32  ;;  %v6335_v20 = vld [vmem:[#allocation104_spill] sm:$0xff]  ;;  %6336 = vst [vmem:[#allocation61_spill] sm:$0xff] %v4898_v36  ;;  %v4908_v32 = vpop.permute.xlu1 %1764 }
 0x2c1   :  { %v1038_v33 = vadd.f32 %v1034_v62, %v1026_v10  ;;  %v1027_v0 = vadd.f32 %v1023_v27, %v1015_v9  ;;  %v1139_v42 = vmul.f32 %v4833_v52, %v6334_v40  ;;  %908 = vrot.lane.b32.xlu0 %v898_v29, %s3096_s1  ;;  %v1094_v44 = vadd.f32 %v1090_v63, %v6335_v20  ;;  %v4927_v10 = vld [vmem:[#allocation3 + $0x168] sm:$0xff] }
 0x2c2   :  { %910 = vrot.lane.b32.xlu1 %v899_v47, %s3096_s1  ;;  %v1119_v55 = vadd.f32 %v1115_v28, %v1107_v46  ;;  %v1114_v57 = vmul.f32 %v6330_v54, %v6219_v22  ;;  %v4902_v3 = vmul.f32 %v4898_v36, %v4731_v61  ;;  %v4906_v15 = vadd.f32 %v4792_v34, %v4669_v56  ;;  %v6338_v56 = vld [vmem:[#allocation80_spill] sm:$0xff]  ;;  %v4924_v54 = vpop.permute.xlu0 %1497 }
 0x2c3   :  { %v1039_v47 = vadd.f32 %v1035_v50, %v1027_v0  ;;  %v1151_v39 = vmul.f32 %v4910_v30, %v6242_v53  ;;  %v1050_v62 = vadd.f32 %v1046_v23, %v1038_v33  ;;  %v1106_v27 = vadd.f32 %v1102_v43, %v1094_v44  ;;  %6339 = vst [vmem:[#allocation93_spill] sm:$0xff] %v4927_v10  ;;  %v4943_v50 = vld [vmem:[#allocation3 + $0x140] sm:$0xff] }
 0x2c4   :  { %v1131_v22 = vadd.f32 %v1127_v6, %v1119_v55  ;;  %v1126_v38 = vmul.f32 %v6333_v41, %v6234_v59  ;;  %v4918_v61 = vadd.f32 %v4796_v26, %v4637_v51  ;;  %v1603_v34 = vmul.f32 %v6338_v56, %v4277_v5  ;;  %v4948_v46 = vpop.permute.xlu1 %2044  ;;  %v4950_v6 = vld [vmem:[#allocation3 + $0x198] sm:$0xff] }
 0x2c5   :  { %v1604_v25 = vmul.f32 %v6338_v56, %v6245_v8  ;;  %v1051_v28 = vadd.f32 %v1047_v49, %v1039_v47  ;;  %v1163_v59 = vmul.f32 %v4927_v10, %v6244_v13  ;;  %v1118_v35 = vadd.f32 %v1114_v57, %v1106_v27  ;;  %6340 = vst [vmem:[#allocation17_spill] sm:$0xff] %v4948_v46 }
 0x2c6   :  { %1060 = vrot.lane.b32.xlu1 %v1050_v62, %s3109_s2  ;;  %v1143_v63 = vadd.f32 %v1139_v42, %v1131_v22  ;;  %v1138_v51 = vmul.f32 %v6334_v40, %v6239_v19  ;;  %v4935_v26 = vmul.f32 %v4841_v1, %v4369_v17  ;;  %v4939_v23 = vmul.f32 %v4841_v1, %v6316_v58  ;;  %v4960_v40 = vld [vmem:[#allocation3 + $0x1d0] sm:$0xff] }
 0x2c7   :  { %v1605_v9 = vmul.f32 %v4910_v30, %v6338_v56  ;;  %v1606_v29 = vmul.f32 %v4943_v50, %v6338_v56  ;;  %1062 = vrot.lane.b32.xlu0 %v1051_v28, %s3109_s2  ;;  %v1175_v43 = vmul.f32 %v4950_v6, %v6250_v18  ;;  %v1130_v33 = vadd.f32 %v1126_v38, %v1118_v35  ;;  %v6342_v22 = vld [vmem:[#allocation126_spill] sm:$0xff]  ;;  %v5000_v35 = vld [vmem:[#allocation3 + $0x1c8] sm:$0xff] }
 0x2c8   :  { %v1155_v41 = vadd.f32 %v1151_v39, %v1143_v63  ;;  %v1150_v0 = vmul.f32 %v6242_v53, %v6245_v8  ;;  %v4958_v49 = vmul.f32 %v4841_v1, %v6297_v24  ;;  %v4964_v42 = vmul.f32 %v4960_v40, %v4841_v1  ;;  %v6341_v39 = vld [vmem:[#allocation59_spill] sm:$0xff] }
 0x2c9   :  { %v1607_v55 = vadd.f32 %v1603_v34, %v4700_v14  ;;  %v1608_v20 = vadd.f32 %v1604_v25, %v4702_v7  ;;  %v1187_v57 = vmul.f32 %v6252_v48, %v6297_v24  ;;  %v1142_v47 = vadd.f32 %v1138_v51, %v1130_v33  ;;  %v4982_v7 = vpop.permute.xlu0 %1916  ;;  %v6344_v24 = vld [vmem:[#allocation90_spill] sm:$0xff]  ;;  %v6349_v51 = vld [vmem:[#allocation69_spill] sm:$0xff] }
 0x2ca   :  { %v1167_v44 = vadd.f32 %v1163_v59, %v1155_v41  ;;  %v1162_v53 = vmul.f32 %v6244_v13, %v6255_v11  ;;  %v1609_v62 = vadd.f32 %v1605_v9, %v6341_v39  ;;  %v1610_v27 = vadd.f32 %v1606_v29, %v6342_v22  ;;  %v6347_v25 = vld [vmem:[#allocation114_spill] sm:$0xff]  ;;  %v4998_v59 = vpop.permute.xlu1 %2184  ;;  %v5004_v9 = vld [vmem:[#allocation3 + $0x1a0] sm:$0xff]  ;;  %v5021_v22 = vld [vmem:[#allocation3 + $0x1f8] sm:$0xff] }
 0x2cb   :  { %v4976_v1 = vmul.f32 %v4879_v4, %v4277_v5  ;;  %v4980_v14 = vmul.f32 %v4879_v4, %v6245_v8  ;;  %v1477_v38 = vmul.f32 %v6344_v24, %v6305_v60  ;;  %v1154_v34 = vadd.f32 %v1150_v0, %v1142_v47  ;;  %v6346_v5 = vld [vmem:[#allocation124_spill] sm:$0xff]  ;;  %6348 = vst [vmem:[#allocation64_spill] sm:$0xff] %v4998_v59  ;;  %v5012_v33 = vld [vmem:[#allocation3 + $0x110] sm:$0xff]  ;;  %v6357_v59 = vld [vmem:[#allocation19_spill] sm:$0xff] }
 0x2cc   :  { %v1179_v56 = vadd.f32 %v1175_v43, %v1167_v44  ;;  %v1174_v13 = vmul.f32 %v6250_v18, %v6305_v60  ;;  %v4990_v11 = vmul.f32 %v4910_v30, %v4879_v4  ;;  %v1743_v28 = vmul.f32 %v6347_v25, %v6346_v5  ;;  %v6351_v44 = vld [vmem:[#allocation96_spill] sm:$0xff] }
 0x2cd   :  { %6343 = vst [vmem:[#allocation56_spill] sm:$0xff] %v4980_v14  ;;  %v1744_v8 = vmul.f32 %v6347_v25, %v6239_v19  ;;  %v1745_v63 = vmul.f32 %v4833_v52, %v6347_v25  ;;  %v1339_v18 = vmul.f32 %v5000_v35, %v6349_v51  ;;  %v1166_v41 = vadd.f32 %v1162_v53, %v1154_v34  ;;  %v5032_v12 = vpop.permute.xlu0 %1648 }
 0x2ce   :  { %6345 = vst [vmem:[#allocation99_spill] sm:$0xff] %v4990_v11  ;;  %v1191_v29 = vadd.f32 %v1187_v57, %v1179_v56  ;;  %v1186_v43 = vmul.f32 %v6252_v48, %v6316_v58  ;;  %v5010_v19 = vmul.f32 %v4943_v50, %v4879_v4  ;;  %v1746_v0 = vmul.f32 %v5012_v33, %v6347_v25  ;;  %v6352_v57 = vld [vmem:[#allocation107_spill] sm:$0xff]  ;;  %v6353_v48 = vld [vmem:[#allocation72_spill] sm:$0xff]  ;;  %v6356_v25 = vld [vmem:[#allocation78_spill] sm:$0xff] }
 0x2cf   :  { %v1476_v47 = vmul.f32 %v6344_v24, %v6351_v44  ;;  %v1479_v39 = vmul.f32 %v6344_v24, %v5004_v9  ;;  %v1481_v53 = vadd.f32 %v1477_v38, %v6352_v57  ;;  %v1351_v56 = vmul.f32 %v5021_v22, %v6353_v48  ;;  %v6354_v4 = vld [vmem:[#allocation91_spill] sm:$0xff]  ;;  %v6359_v57 = vld [vmem:[#allocation105_spill] sm:$0xff] }
 0x2d0   :  { %6350 = vst [vmem:[#allocation97_spill] sm:$0xff] %v5010_v19  ;;  %v1203_v34 = vadd.f32 %v6354_v4, %v1191_v29  ;;  %v1178_v5 = vadd.f32 %v1174_v13, %v1166_v41  ;;  %v5027_v16 = vadd.f32 %v1743_v28, %v6355_v21  ;;  %v5030_v36 = vadd.f32 %v1744_v8, %v6356_v25  ;;  %v6358_v11 = vld [vmem:[#allocation15_spill] sm:$0xff]  ;;  %v5043_v28 = vpop.permute.xlu1 %1636 }
 0x2d1   :  { %v1619_v19 = vadd.f32 %v6357_v59, %v1607_v55  ;;  %v1620_v38 = vadd.f32 %v6358_v11, %v1608_v20  ;;  %v5037_v46 = vadd.f32 %v1745_v63, %v6359_v57  ;;  %v1338_v14 = vmul.f32 %v6349_v51, %v6316_v58  ;;  %v6360_v29 = vld [vmem:[#allocation79_spill] sm:$0xff]  ;;  %v6361_v59 = vld [vmem:[#allocation98_spill] sm:$0xff]  ;;  %v6362_v51 = vld [vmem:[#allocation108_spill] sm:$0xff] }
 0x2d2   :  { %1214 = vrot.lane.b32.xlu1 %v1203_v34, %s3111_s20  ;;  %v1190_v13 = vadd.f32 %v1186_v43, %v1178_v5  ;;  %v1343_v21 = vadd.f32 %v1339_v18, %v4918_v61  ;;  %v1478_v8 = vmul.f32 %v4950_v6, %v6344_v24  ;;  %v1480_v55 = vadd.f32 %v1476_v47, %v6360_v29  ;;  %v6363_v18 = vld [vmem:[#allocation87_spill] sm:$0xff]  ;;  %v6364_v34 = vld [vmem:[#allocation12_spill] sm:$0xff]  ;;  %v6365_v47 = vld [vmem:[#allocation74_spill] sm:$0xff] }
 0x2d3   :  { %v1483_v20 = vadd.f32 %v1479_v39, %v6361_v59  ;;  %v1628_v11 = vmul.f32 %v4866_v31, %v6305_v60  ;;  %v1350_v63 = vmul.f32 %v6353_v48, %v6268_v45  ;;  %v1493_v61 = vadd.f32 %v4939_v23, %v1481_v53  ;;  %v6366_v39 = vld [vmem:[#allocation29_spill] sm:$0xff]  ;;  %v5071_v53 = vld [vmem:[#allocation3 + $0x98] sm:$0xff] }
 0x2d4   :  { %v1202_v41 = vadd.f32 %v6362_v51, %v1190_v13  ;;  %v1355_v43 = vadd.f32 %v1351_v56, %v1343_v21  ;;  %v5056_v4 = vadd.f32 %v1746_v0, %v6363_v18  ;;  %v1500_v24 = vmul.f32 %v4924_v54, %v6364_v34  ;;  %6367 = vst [vmem:[#allocation73_spill] sm:$0xff] %v5071_v53  ;;  %v6368_v48 = vld [vmem:[#allocation65_spill] sm:$0xff]  ;;  %v5075_v56 = vpop.permute.xlu0 %2068  ;;  %v5080_v29 = vpop.permute.xlu1 %1776  ;;  %v5084_v51 = vld [vmem:[#allocation3 + $0x200] sm:$0xff] }
 0x2d5   :  { %v5061_v5 = vadd.f32 %v6365_v47, %v1609_v62  ;;  %v1622_v25 = vadd.f32 %v6366_v39, %v1610_v27  ;;  %v1501_v60 = vmul.f32 %v4924_v54, %v6268_v45  ;;  %v1342_v23 = vadd.f32 %v1338_v14, %v4906_v15  ;;  %v6369_v27 = vld [vmem:[#allocation86_spill] sm:$0xff] }
 0x2d6   :  { %1212 = vrot.lane.b32.xlu0 %v1202_v41, %s3111_s20  ;;  %1366 = vrot.lane.b32.xlu1 %v1355_v43, %s3116_s3  ;;  %v1640_v0 = vmul.f32 %v5043_v28, %v6316_v58  ;;  %v2023_v62 = vmul.f32 %v5071_v53, %v6368_v48  ;;  %v1482_v57 = vadd.f32 %v1478_v8, %v6369_v27  ;;  %v5088_v43 = vld [vmem:[#allocation3 + $0xa0] sm:$0xff] }
 0x2d7   :  { %v1627_v13 = vmul.f32 %v4866_v31, %v6351_v44  ;;  %v1632_v21 = vadd.f32 %v1628_v11, %v1620_v38  ;;  %v1354_v59 = vadd.f32 %v1350_v63, %v1342_v23  ;;  %v1505_v15 = vadd.f32 %v1501_v60, %v1493_v61  ;;  %6370 = vst [vmem:[#allocation100_spill] sm:$0xff] %v5088_v43  ;;  %v5094_v38 = vld [vmem:[#allocation3 + $0xb0] sm:$0xff]  ;;  %v6371_v63 = vld [vmem:[#allocation53_spill] sm:$0xff]  ;;  %v5238_v53 = vld [vmem:[#allocation3 + $0x100] sm:$0xff] }
 0x2d8   :  { %v1492_v14 = vadd.f32 %v4935_v26, %v1480_v55  ;;  %v1495_v58 = vadd.f32 %v4964_v42, %v1483_v20  ;;  %v1503_v41 = vmul.f32 %v5084_v51, %v4924_v54  ;;  %v2024_v8 = vmul.f32 %v5088_v43, %v6368_v48  ;;  %6399 = vst [vmem:[#allocation36_spill] sm:$0xff] %v5238_v53 }
 0x2d9   :  { %v2025_v44 = vmul.f32 %v4871_v2, %v6368_v48  ;;  %v2026_v26 = vmul.f32 %v5094_v38, %v6368_v48  ;;  %v1630_v42 = vmul.f32 %v4866_v31, %v5004_v9  ;;  %v1639_v55 = vmul.f32 %v5043_v28, %v4369_v17  ;;  %v6372_v48 = vld [vmem:[#allocation118_spill] sm:$0xff] }
 0x2da   :  { %1364 = vrot.lane.b32.xlu0 %v1354_v59, %s3116_s3  ;;  %v1644_v20 = vadd.f32 %v1640_v0, %v1632_v21  ;;  %1514 = vrot.lane.b32.xlu1 %v1505_v15, %s2969_s0  ;;  %v1502_v11 = vmul.f32 %v5021_v22, %v4924_v54  ;;  %v5107_v61 = vadd.f32 %v2023_v62, %v6371_v63  ;;  %v5114_v0 = vpop.permute.xlu1 %2056  ;;  %v6373_v54 = vld [vmem:[#allocation21_spill] sm:$0xff]  ;;  %v6374_v62 = vld [vmem:[#allocation123_spill] sm:$0xff] }
 0x2db   :  { %v1652_v18 = vmul.f32 %v5032_v12, %v6268_v45  ;;  %v1631_v47 = vadd.f32 %v1627_v13, %v1619_v19  ;;  %v1642_v39 = vmul.f32 %v4960_v40, %v5043_v28  ;;  %v1504_v60 = vadd.f32 %v1500_v24, %v1492_v14  ;;  %v5125_v45 = vpop.permute.xlu0 %1940  ;;  %v615_v24 = vld [vmem:[#allocation3 + $0x88] sm:$0xff] }
 0x2dc   :  { %v1507_v23 = vadd.f32 %v1503_v41, %v1495_v58  ;;  %v1494_v17 = vadd.f32 %v4958_v49, %v1482_v57  ;;  %v5117_v27 = vadd.f32 %v2024_v8, %v6372_v48  ;;  %v5120_v21 = vadd.f32 %v2025_v44, %v6373_v54  ;;  %v5131_v57 = vld [vmem:[#allocation3 + $0x70] sm:$0xff]  ;;  %v6376_v14 = vld [vmem:[#allocation77_spill] sm:$0xff]  ;;  %v2889_v8 = vld [vmem:[#allocation3 + $0x80] sm:$0xff] }
 0x2dd   :  { %v5123_v59 = vadd.f32 %v2026_v26, %v6374_v62  ;;  %v1629_v19 = vmul.f32 %v4950_v6, %v4866_v31  ;;  %v1634_v13 = vadd.f32 %v1630_v42, %v1622_v25  ;;  %v1643_v15 = vadd.f32 %v1639_v55, %v1631_v47  ;;  %6375 = vst [vmem:[#allocation82_spill] sm:$0xff] %v5131_v57  ;;  %v6381_v48 = vld [vmem:[#allocation10_spill] sm:$0xff]  ;;  %v6383_v62 = vld [vmem:[#allocation71_spill] sm:$0xff] }
 0x2de   :  { %1512 = vrot.lane.b32.xlu0 %v1504_v60, %s2969_s0  ;;  %1518 = vrot.lane.b32.xlu1 %v1507_v23, %s2969_s0  ;;  %v1656_v49 = vadd.f32 %v1652_v18, %v1644_v20  ;;  %v2163_v58 = vmul.f32 %v5131_v57, %v6376_v14  ;;  %v2164_v41 = vmul.f32 %v4860_v37, %v6376_v14  ;;  %v5143_v20 = vld [vmem:[#allocation3 + $0x158] sm:$0xff]  ;;  %v5149_v18 = vld [vmem:[#allocation3 + $0x160] sm:$0xff]  ;;  %v5159_v60 = vld [vmem:[#allocation3 + $0x170] sm:$0xff] }
 0x2df   :  { %v2165_v44 = vmul.f32 %v2889_v8, %v6376_v14  ;;  %v2166_v31 = vmul.f32 %v6376_v14, %v615_v24  ;;  %v1651_v25 = vmul.f32 %v5032_v12, %v6364_v34  ;;  %v1641_v26 = vmul.f32 %v5000_v35, %v5043_v28  ;;  %6377 = vst [vmem:[#allocation89_spill] sm:$0xff] %v5143_v20  ;;  %v6387_v14 = vld [vmem:[#allocation115_spill] sm:$0xff]  ;;  %v1953_v57 = vpop.permute.xlu0 %1952 }
 0x2e0   :  { %v1646_v42 = vadd.f32 %v1642_v39, %v1634_v13  ;;  %v1506_v55 = vadd.f32 %v1502_v11, %v1494_v17  ;;  %v5147_v63 = vmul.f32 %v5143_v20, %v4982_v7  ;;  %6378 = vst [vmem:[#allocation92_spill] sm:$0xff] %v5149_v18  ;;  %v5153_v47 = vmul.f32 %v5149_v18, %v4982_v7  ;;  %v5165_v11 = vpop.permute.xlu1 %2196 }
 0x2e1   :  { %v5157_v34 = vmul.f32 %v4927_v10, %v4982_v7  ;;  %6379 = vst [vmem:[#allocation11_spill] sm:$0xff] %v5159_v60  ;;  %v5163_v28 = vmul.f32 %v5159_v60, %v4982_v7  ;;  %6380 = vst [vmem:[#allocation109_spill] sm:$0xff] %v5165_v11  ;;  %v1654_v39 = vmul.f32 %v5084_v51, %v5032_v12  ;;  %v6385_v7 = vld [vmem:[#allocation81_spill] sm:$0xff] }
 0x2e2   :  { %v1633_v23 = vadd.f32 %v1629_v19, %v5061_v5  ;;  %1516 = vrot.lane.b32.xlu0 %v1506_v55, %s2969_s0  ;;  %1665 = vrot.lane.b32.xlu1 %v1656_v49, %s3117_s24  ;;  %v1655_v17 = vadd.f32 %v1651_v25, %v1643_v15  ;;  %v5173_v54 = vadd.f32 %v2163_v58, %v6381_v48  ;;  %v5198_v25 = vld [vmem:[#allocation3 + $0x130] sm:$0xff]  ;;  %v5218_v48 = vld [vmem:[#allocation3 + $0x1b8] sm:$0xff] }
 0x2e3   :  { %v5176_v24 = vadd.f32 %v2164_v41, %v6383_v62  ;;  %v5179_v13 = vadd.f32 %v2165_v44, %v6385_v7  ;;  %v5182_v8 = vadd.f32 %v2166_v31, %v6387_v14  ;;  %v1653_v5 = vmul.f32 %v5021_v22, %v5032_v12  ;;  %v5194_v41 = vld [vmem:[#allocation3 + $0x128] sm:$0xff]  ;;  %v6391_v44 = vld [vmem:[#allocation62_spill] sm:$0xff]  ;;  %6394 = vst [vmem:[#allocation117_spill] sm:$0xff] %v5218_v48  ;;  %v5224_v7 = vld [vmem:[#allocation3 + $0x1c0] sm:$0xff] }
 0x2e4   :  { %6382 = vst [vmem:[#allocation110_spill] sm:$0xff] %v5173_v54  ;;  %v5188_v19 = vmul.f32 %v5143_v20, %v5075_v56  ;;  %v1645_v15 = vadd.f32 %v1641_v26, %v1633_v23  ;;  %v1658_v49 = vadd.f32 %v1654_v39, %v1646_v42  ;;  %v5192_v58 = vmul.f32 %v5149_v18, %v5075_v56  ;;  %v5216_v23 = vpop.permute.xlu1 %1788  ;;  %v5255_v54 = vld [vmem:[#allocation3 + $0x1e8] sm:$0xff] }
 0x2e5   :  { %6384 = vst [vmem:[#allocation88_spill] sm:$0xff] %v5176_v24  ;;  %6386 = vst [vmem:[#allocation122_spill] sm:$0xff] %v5179_v13  ;;  %v1755_v31 = vmul.f32 %v5194_v41, %v6391_v44  ;;  %v1756_v12 = vmul.f32 %v5198_v25, %v6391_v44  ;;  %v1757_v55 = vmul.f32 %v4910_v30, %v6391_v44  ;;  %v5260_v30 = vld [vmem:[#allocation3 + $0x1f0] sm:$0xff] }
 0x2e6   :  { %6388 = vst [vmem:[#allocation94_spill] sm:$0xff] %v5182_v8  ;;  %6389 = vst [vmem:[#allocation31_spill] sm:$0xff] %v5188_v19  ;;  %v5206_v26 = vmul.f32 %v4927_v10, %v5075_v56  ;;  %v5210_v42 = vmul.f32 %v5159_v60, %v5075_v56  ;;  %v1758_v39 = vmul.f32 %v4943_v50, %v6391_v44  ;;  %1663 = vrot.lane.b32.xlu0 %v1655_v17, %s3117_s24  ;;  %v5234_v17 = vld [vmem:[#allocation3 + $0xf8] sm:$0xff]  ;;  %v5250_v19 = vpop.permute.xlu0 %2104 }
 0x2e7   :  { %6390 = vst [vmem:[#allocation39_spill] sm:$0xff] %v5192_v58  ;;  %1669 = vrot.lane.b32.xlu1 %v1658_v49, %s3117_s24  ;;  %v5222_v62 = vmul.f32 %v5218_v48, %v5125_v45  ;;  %6395 = vst [vmem:[#allocation43_spill] sm:$0xff] %v5224_v7  ;;  %v5228_v56 = vmul.f32 %v5224_v7, %v5125_v45  ;;  %v5232_v14 = vmul.f32 %v5000_v35, %v5125_v45  ;;  %v6398_v49 = vld [vmem:[#allocation66_spill] sm:$0xff] }
 0x2e8   :  { %6392 = vst [vmem:[#allocation14_spill] sm:$0xff] %v5206_v26  ;;  %6393 = vst [vmem:[#allocation113_spill] sm:$0xff] %v5210_v42  ;;  %v1895_v44 = vmul.f32 %v5234_v17, %v6398_v49  ;;  %v1896_v37 = vmul.f32 %v5238_v53, %v6398_v49  ;;  %v1897_v11 = vmul.f32 %v4833_v52, %v6398_v49 }
 0x2e9   :  { %6396 = vst [vmem:[#allocation101_spill] sm:$0xff] %v5232_v14  ;;  %6397 = vst [vmem:[#allocation27_spill] sm:$0xff] %v5234_v17  ;;  %v1898_v26 = vmul.f32 %v5012_v33, %v6398_v49  ;;  %v1657_v42 = vadd.f32 %v1653_v5, %v1645_v15  ;;  %v5248_v58 = vmul.f32 %v4960_v40, %v5125_v45  ;;  %v6405_v49 = vld [vmem:[#allocation45_spill] sm:$0xff] }
 0x2ea   :  { %v1759_v8 = vadd.f32 %v1755_v31, %v5027_v16  ;;  %v1760_v13 = vadd.f32 %v1756_v12, %v5030_v36  ;;  %v1761_v24 = vadd.f32 %v1757_v55, %v5037_v46  ;;  %v5258_v14 = vmul.f32 %v5255_v54, %v1953_v57  ;;  %v6404_v36 = vld [vmem:[#allocation57_spill] sm:$0xff]  ;;  %v1929_v55 = vpop.permute.xlu1 %1928 }
 0x2eb   :  { %6400 = vst [vmem:[#allocation106_spill] sm:$0xff] %v5248_v58  ;;  %v5263_v5 = vmul.f32 %v5260_v30, %v1953_v57  ;;  %v5266_v45 = vmul.f32 %v5021_v22, %v1953_v57  ;;  %v1762_v15 = vadd.f32 %v1758_v39, %v5056_v4  ;;  %1667 = vrot.lane.b32.xlu0 %v1657_v42, %s3117_s24  ;;  %v6406_v58 = vld [vmem:[#allocation67_spill] sm:$0xff] }
 0x2ec   :  { %6401 = vst [vmem:[#allocation119_spill] sm:$0xff] %v5258_v14  ;;  %v5271_v16 = vmul.f32 %v5084_v51, %v1953_v57  ;;  %v1899_v46 = vadd.f32 %v1895_v44, %v6404_v36  ;;  %v1767_v31 = vmul.f32 %v5143_v20, %v4908_v32  ;;  %v1768_v12 = vmul.f32 %v5149_v18, %v4908_v32  ;;  %v6412_v36 = vld [vmem:[#allocation49_spill] sm:$0xff] }
 0x2ed   :  { %6402 = vst [vmem:[#allocation33_spill] sm:$0xff] %v5263_v5  ;;  %6403 = vst [vmem:[#allocation28_spill] sm:$0xff] %v5266_v45  ;;  %v1900_v14 = vadd.f32 %v1896_v37, %v6405_v49  ;;  %v1901_v45 = vadd.f32 %v1897_v11, %v6406_v58  ;;  %v6407_v5 = vld [vmem:[#allocation128_spill] sm:$0xff]  ;;  %v5283_v42 = vmul.f32 %v5255_v54, %v5250_v19 }
 0x2ee   :  { %v1902_v4 = vadd.f32 %v1898_v26, %v6407_v5  ;;  %v5287_v57 = vmul.f32 %v5260_v30, %v5250_v19  ;;  %v5291_v39 = vmul.f32 %v5021_v22, %v5250_v19  ;;  %v1769_v44 = vmul.f32 %v4927_v10, %v4908_v32  ;;  %v6411_v11 = vld [vmem:[#allocation76_spill] sm:$0xff] }
 0x2ef   :  { %6408 = vst [vmem:[#allocation38_spill] sm:$0xff] %v5283_v42  ;;  %v1770_v37 = vmul.f32 %v5159_v60, %v4908_v32  ;;  %v5299_v58 = vmul.f32 %v5088_v43, %v6411_v11  ;;  %v5303_v26 = vmul.f32 %v4871_v2, %v6411_v11  ;;  %v5307_v5 = vmul.f32 %v5094_v38, %v6411_v11  ;;  %v6413_v10 = vld [vmem:[#allocation120_spill] sm:$0xff]  ;;  %v5319_v60 = vld [vmem:[#allocation3 + $0x188] sm:$0xff]  ;;  %v5323_v38 = vld [vmem:[#allocation3 + $0x190] sm:$0xff] }
 0x2f0   :  { %6409 = vst [vmem:[#allocation13_spill] sm:$0xff] %v5287_v57  ;;  %6410 = vst [vmem:[#allocation103_spill] sm:$0xff] %v5291_v39  ;;  %v2039_v49 = vadd.f32 %v6412_v36, %v5107_v61  ;;  %v1771_v20 = vadd.f32 %v1767_v31, %v1759_v8  ;;  %v1772_v39 = vadd.f32 %v1768_v12, %v1760_v13  ;;  %v6414_v8 = vld [vmem:[#allocation56_spill] sm:$0xff] }
 0x2f1   :  { %v5313_v32 = vadd.f32 %v6413_v10, %v5117_v27  ;;  %v5317_v43 = vadd.f32 %v4902_v3, %v5123_v59  ;;  %v1779_v2 = vmul.f32 %v5319_v60, %v5080_v29  ;;  %v1780_v61 = vmul.f32 %v5323_v38, %v5080_v29  ;;  %v5329_v10 = vpop.permute.xlu1 %2208  ;;  %v6416_v3 = vld [vmem:[#allocation17_spill] sm:$0xff] }
 0x2f2   :  { %v1911_v13 = vadd.f32 %v4976_v1, %v1899_v46  ;;  %v1912_v31 = vadd.f32 %v6414_v8, %v1900_v14  ;;  %6415 = vst [vmem:[#allocation41_spill] sm:$0xff] %v5329_v10  ;;  %v1773_v27 = vadd.f32 %v1769_v44, %v1761_v24  ;;  %v1774_v12 = vadd.f32 %v1770_v37, %v1762_v15  ;;  %v6417_v15 = vld [vmem:[#allocation99_spill] sm:$0xff]  ;;  %v6418_v44 = vld [vmem:[#allocation97_spill] sm:$0xff] }
 0x2f3   :  { %v2047_v59 = vmul.f32 %v5234_v17, %v6416_v3  ;;  %v1781_v36 = vmul.f32 %v4950_v6, %v5080_v29  ;;  %v2048_v18 = vmul.f32 %v5238_v53, %v6416_v3  ;;  %v2049_v42 = vmul.f32 %v4833_v52, %v6416_v3 }
 0x2f4   :  { %v1791_v1 = vmul.f32 %v5218_v48, %v5216_v23  ;;  %v1792_v14 = vmul.f32 %v5224_v7, %v5216_v23  ;;  %v1782_v24 = vmul.f32 %v5080_v29, %v5004_v9  ;;  %v1913_v46 = vadd.f32 %v6417_v15, %v1901_v45 }
 0x2f5   :  { %v1914_v37 = vadd.f32 %v6418_v44, %v1902_v4  ;;  %v1932_v8 = vmul.f32 %v5323_v38, %v1929_v55  ;;  %v1783_v17 = vadd.f32 %v1779_v2, %v1771_v20  ;;  %v1784_v57 = vadd.f32 %v1780_v61, %v1772_v39  ;;  %v1801_v45 = vpop.permute.xlu1 %1800 }
 0x2f6   :  { %v1923_v10 = vadd.f32 %v5147_v63, %v1911_v13  ;;  %v1924_v52 = vadd.f32 %v5153_v47, %v1912_v31  ;;  %v1785_v53 = vadd.f32 %v1781_v36, %v1773_v27  ;;  %v1793_v48 = vmul.f32 %v5000_v35, %v5216_v23 }
 0x2f7   :  { %v1794_v7 = vmul.f32 %v4960_v40, %v5216_v23  ;;  %v1931_v29 = vmul.f32 %v5319_v60, %v1929_v55  ;;  %v1795_v15 = vadd.f32 %v1791_v1, %v1783_v17  ;;  %v1796_v4 = vadd.f32 %v1792_v14, %v1784_v57 }
 0x2f8   :  { %v1803_v44 = vmul.f32 %v5255_v54, %v1801_v45  ;;  %v1804_v2 = vmul.f32 %v5260_v30, %v1801_v45  ;;  %v1786_v20 = vadd.f32 %v1782_v24, %v1774_v12  ;;  %v1933_v63 = vmul.f32 %v4950_v6, %v1929_v55 }
 0x2f9   :  { %v1934_v47 = vmul.f32 %v1929_v55, %v5004_v9  ;;  %v1936_v39 = vadd.f32 %v1932_v8, %v1924_v52  ;;  %v1805_v61 = vmul.f32 %v5021_v22, %v1801_v45  ;;  %v1806_v13 = vmul.f32 %v5084_v51, %v1801_v45  ;;  %v2081_v52 = vpop.permute.xlu1 %2080  ;;  %v633_v8 = vld [vmem:[#allocation3 + $0xb8] sm:$0xff] }
 0x2fa   :  { %v1808_v23 = vadd.f32 %v1804_v2, %v1796_v4  ;;  %v1807_v31 = vadd.f32 %v1803_v44, %v1795_v15  ;;  %v2050_v17 = vmul.f32 %v5012_v33, %v6416_v3  ;;  %v1925_v57 = vadd.f32 %v5157_v34, %v1913_v46  ;;  %v6420_v45 = vld [vmem:[#allocation83_spill] sm:$0xff] }
 0x2fb   :  { %v1926_v27 = vadd.f32 %v5163_v28, %v1914_v37  ;;  %v1935_v36 = vadd.f32 %v1931_v29, %v1923_v10  ;;  %v2059_v12 = vmul.f32 %v5194_v41, %v5114_v0  ;;  %v1797_v1 = vadd.f32 %v1793_v48, %v1785_v53  ;;  %v6419_v53 = vld [vmem:[#allocation125_spill] sm:$0xff] }
 0x2fc   :  { %v1798_v55 = vadd.f32 %v1794_v7, %v1786_v20  ;;  %1817 = vrot.lane.b32.xlu1 %v1808_v23, %s3118_s25  ;;  %1815 = vrot.lane.b32.xlu0 %v1807_v31, %s3118_s25  ;;  %v2051_v14 = vadd.f32 %v2047_v59, %v2039_v49  ;;  %v2060_v24 = vmul.f32 %v5198_v25, %v5114_v0  ;;  %v6427_v31 = vld [vmem:[#allocation122_spill] sm:$0xff] }
 0x2fd   :  { %v2062_v3 = vmul.f32 %v4943_v50, %v5114_v0  ;;  %v1937_v34 = vadd.f32 %v1933_v63, %v1925_v57  ;;  %v1938_v46 = vadd.f32 %v1934_v47, %v1926_v27  ;;  %v1809_v10 = vadd.f32 %v1805_v61, %v1797_v1  ;;  %v6423_v63 = vld [vmem:[#allocation101_spill] sm:$0xff]  ;;  %v6424_v47 = vld [vmem:[#allocation110_spill] sm:$0xff]  ;;  %v6425_v61 = vld [vmem:[#allocation88_spill] sm:$0xff] }
 0x2fe   :  { %v1810_v28 = vadd.f32 %v1806_v13, %v1798_v55  ;;  %v1948_v37 = vadd.f32 %v5228_v56, %v1936_v39  ;;  %v2041_v48 = vadd.f32 %v6419_v53, %v5120_v21  ;;  %v2052_v7 = vadd.f32 %v2048_v18, %v5313_v32  ;;  %v5384_v18 = vpop.permute.xlu1 %2220  ;;  %v6426_v13 = vld [vmem:[#allocation119_spill] sm:$0xff]  ;;  %v6428_v57 = vld [vmem:[#allocation94_spill] sm:$0xff] }
 0x2ff   :  { %v2054_v49 = vadd.f32 %v2050_v17, %v5317_v43  ;;  %v1947_v59 = vadd.f32 %v5222_v62, %v1935_v36  ;;  %v2178_v29 = vmul.f32 %v6411_v11, %v633_v8  ;;  %v2061_v15 = vmul.f32 %v6420_v45, %v5114_v0  ;;  %v6421_v62 = vld [vmem:[#allocation33_spill] sm:$0xff]  ;;  %v6422_v11 = vld [vmem:[#allocation106_spill] sm:$0xff]  ;;  %v6433_v8 = vld [vmem:[#allocation28_spill] sm:$0xff] }
 0x300   :  { %v2063_v4 = vadd.f32 %v2059_v12, %v2051_v14  ;;  %1821 = vrot.lane.b32.xlu1 %v1810_v28, %s3118_s25  ;;  %1819 = vrot.lane.b32.xlu0 %v1809_v10, %s3118_s25  ;;  %v5382_v56 = vmul.f32 %v5084_v51, %v5250_v19  ;;  %v2053_v44 = vadd.f32 %v2049_v42, %v2041_v48  ;;  %v6429_v12 = vld [vmem:[#allocation31_spill] sm:$0xff]  ;;  %v5401_v55 = vld [vmem:[#allocation3 + $0xd0] sm:$0xff] }
 0x301   :  { %v2064_v21 = vadd.f32 %v2060_v24, %v2052_v7  ;;  %v2066_v2 = vadd.f32 %v2062_v3, %v2054_v49  ;;  %v2083_v43 = vmul.f32 %v5319_v60, %v2081_v52  ;;  %v1960_v32 = vadd.f32 %v6421_v62, %v1948_v37  ;;  %v6431_v14 = vld [vmem:[#allocation39_spill] sm:$0xff]  ;;  %v6432_v3 = vld [vmem:[#allocation113_spill] sm:$0xff] }
 0x302   :  { %v1950_v20 = vadd.f32 %v6422_v11, %v1938_v46  ;;  %v1949_v0 = vadd.f32 %v6423_v63, %v1937_v34  ;;  %v2179_v39 = vadd.f32 %v5299_v58, %v6424_v47  ;;  %v2180_v19 = vadd.f32 %v5303_v26, %v6425_v61  ;;  %v6430_v58 = vld [vmem:[#allocation64_spill] sm:$0xff]  ;;  %v2093_v10 = vpop.permute.xlu1 %2092  ;;  %v6434_v7 = vld [vmem:[#allocation117_spill] sm:$0xff] }
 0x303   :  { %v2084_v42 = vmul.f32 %v5323_v38, %v2081_v52  ;;  %v1959_v23 = vadd.f32 %v6426_v13, %v1947_v59  ;;  %v2181_v17 = vadd.f32 %v5307_v5, %v6427_v31  ;;  %v2182_v27 = vadd.f32 %v2178_v29, %v6428_v57  ;;  %v6435_v59 = vld [vmem:[#allocation43_spill] sm:$0xff]  ;;  %v6440_v11 = vld [vmem:[#allocation36_spill] sm:$0xff]  ;;  %v6442_v57 = vld [vmem:[#allocation41_spill] sm:$0xff] }
 0x304   :  { %v2065_v36 = vadd.f32 %v2061_v15, %v2053_v44  ;;  %v2075_v1 = vadd.f32 %v6429_v12, %v2063_v4  ;;  %1969 = vrot.lane.b32.xlu1 %v1960_v32, %s3119_s26  ;;  %v2187_v26 = vmul.f32 %v5401_v55, %v6430_v58  ;;  %v2076_v24 = vadd.f32 %v6431_v14, %v2064_v21  ;;  %v6436_v4 = vld [vmem:[#allocation35_spill] sm:$0xff]  ;;  %v6437_v21 = vld [vmem:[#allocation61_spill] sm:$0xff]  ;;  %v6441_v13 = vld [vmem:[#allocation68_spill] sm:$0xff] }
 0x305   :  { %v2078_v34 = vadd.f32 %v6432_v3, %v2066_v2  ;;  %v2086_v46 = vmul.f32 %v2081_v52, %v5004_v9  ;;  %1967 = vrot.lane.b32.xlu0 %v1959_v23, %s3119_s26  ;;  %v2085_v5 = vmul.f32 %v4950_v6, %v2081_v52  ;;  %v1962_v37 = vadd.f32 %v5271_v16, %v1950_v20  ;;  %v6438_v52 = vld [vmem:[#allocation14_spill] sm:$0xff]  ;;  %v651_v16 = vld [vmem:[#allocation3 + $0xe8] sm:$0xff] }
 0x306   :  { %v2087_v28 = vadd.f32 %v2083_v43, %v2075_v1  ;;  %v1961_v53 = vadd.f32 %v6433_v8, %v1949_v0  ;;  %v2088_v48 = vadd.f32 %v2084_v42, %v2076_v24  ;;  %v2095_v49 = vmul.f32 %v6434_v7, %v2093_v10  ;;  %v6439_v32 = vld [vmem:[#allocation109_spill] sm:$0xff]  ;;  %v2233_v1 = vpop.permute.xlu1 %2232  ;;  %v6444_v3 = vld [vmem:[#allocation38_spill] sm:$0xff] }
 0x307   :  { %v2096_v29 = vmul.f32 %v6435_v59, %v2093_v10  ;;  %v2098_v15 = vmul.f32 %v4960_v40, %v2093_v10  ;;  %v2188_v44 = vmul.f32 %v6436_v4, %v6430_v58  ;;  %v2189_v2 = vmul.f32 %v6437_v21, %v6430_v58  ;;  %v6443_v14 = vld [vmem:[#allocation13_spill] sm:$0xff] }
 0x308   :  { %v2077_v43 = vadd.f32 %v6438_v52, %v2065_v36  ;;  %v2097_v62 = vmul.f32 %v5000_v35, %v2093_v10  ;;  %1973 = vrot.lane.b32.xlu1 %v1962_v37, %s3119_s26  ;;  %v2199_v20 = vmul.f32 %v6440_v11, %v6439_v32  ;;  %v2090_v63 = vadd.f32 %v2086_v46, %v2078_v34  ;;  %v669_v10 = vld [vmem:[#allocation3 + $0x118] sm:$0xff] }
 0x309   :  { %v2099_v0 = vadd.f32 %v2095_v49, %v2087_v28  ;;  %v2100_v47 = vadd.f32 %v2096_v29, %v2088_v48  ;;  %1971 = vrot.lane.b32.xlu0 %v1961_v53, %s3119_s26  ;;  %v2190_v61 = vmul.f32 %v6430_v58, %v651_v16  ;;  %v2191_v42 = vadd.f32 %v2187_v26, %v2179_v39  ;;  %v687_v48 = vld [vmem:[#allocation3 + $0x148] sm:$0xff]  ;;  %v705_v52 = vld [vmem:[#allocation3 + $0x178] sm:$0xff] }
 0x30a   :  { %v2200_v23 = vmul.f32 %v6441_v13, %v6439_v32  ;;  %v2089_v31 = vadd.f32 %v2085_v5, %v2077_v43  ;;  %v2211_v36 = vmul.f32 %v5198_v25, %v6442_v57  ;;  %v2102_v12 = vadd.f32 %v2098_v15, %v2090_v63  ;;  %v6446_v49 = vld [vmem:[#allocation93_spill] sm:$0xff]  ;;  %v6447_v16 = vld [vmem:[#allocation103_spill] sm:$0xff] }
 0x30b   :  { %v2112_v24 = vadd.f32 %v6443_v14, %v2100_v47  ;;  %v2111_v34 = vadd.f32 %v6444_v3, %v2099_v0  ;;  %v2192_v46 = vadd.f32 %v2188_v44, %v2180_v19  ;;  %v2193_v28 = vadd.f32 %v2189_v2, %v2181_v17  ;;  %v6445_v19 = vld [vmem:[#allocation92_spill] sm:$0xff]  ;;  %v6448_v0 = vld [vmem:[#allocation11_spill] sm:$0xff] }
 0x30c   :  { %v2212_v58 = vmul.f32 %v6420_v45, %v6442_v57  ;;  %v2101_v39 = vadd.f32 %v2097_v62, %v2089_v31  ;;  %v2201_v26 = vmul.f32 %v5012_v33, %v6439_v32  ;;  %v2202_v5 = vmul.f32 %v6439_v32, %v669_v10  ;;  %v2245_v62 = vpop.permute.xlu1 %2244 }
 0x30d   :  { %v2203_v37 = vadd.f32 %v2199_v20, %v2191_v42  ;;  %2121 = vrot.lane.b32.xlu1 %v2112_v24, %s3120_s27  ;;  %2119 = vrot.lane.b32.xlu0 %v2111_v34, %s3120_s27  ;;  %v2194_v8 = vadd.f32 %v2190_v61, %v2182_v27  ;;  %v2204_v53 = vadd.f32 %v2200_v23, %v2192_v46  ;;  %v741_v34 = vld [vmem:[#allocation3 + $0x1d8] sm:$0xff] }
 0x30e   :  { %v2223_v17 = vmul.f32 %v6445_v19, %v5384_v18  ;;  %v2224_v29 = vmul.f32 %v6446_v49, %v5384_v18  ;;  %v2213_v15 = vmul.f32 %v4943_v50, %v6442_v57  ;;  %v2214_v33 = vmul.f32 %v6442_v57, %v687_v48  ;;  %v759_v48 = vld [vmem:[#allocation3 + $0x208] sm:$0xff] }
 0x30f   :  { %v2215_v44 = vadd.f32 %v2211_v36, %v2203_v37  ;;  %v2114_v21 = vadd.f32 %v5382_v56, %v2102_v12  ;;  %v2216_v2 = vadd.f32 %v2212_v58, %v2204_v53  ;;  %v2235_v27 = vmul.f32 %v5323_v38, %v2233_v1  ;;  %v723_v56 = vld [vmem:[#allocation3 + $0x1a8] sm:$0xff] }
 0x310   :  { %v2236_v43 = vmul.f32 %v4950_v6, %v2233_v1  ;;  %v2113_v32 = vadd.f32 %v6447_v16, %v2101_v39  ;;  %v2205_v20 = vadd.f32 %v2201_v26, %v2193_v28  ;;  %v2206_v63 = vadd.f32 %v2202_v5, %v2194_v8  ;;  %v6453_v16 = vld [vmem:[#allocation84_spill] sm:$0xff] }
 0x311   :  { %v2225_v47 = vmul.f32 %v6448_v0, %v5384_v18  ;;  %v2226_v50 = vmul.f32 %v5384_v18, %v705_v52  ;;  %2125 = vrot.lane.b32.xlu1 %v2114_v21, %s3120_s27  ;;  %v2227_v61 = vadd.f32 %v2223_v17, %v2215_v44  ;;  %v2228_v42 = vadd.f32 %v2224_v29, %v2216_v2  ;;  %v6449_v21 = vld [vmem:[#allocation30_spill] sm:$0xff]  ;;  %v6450_v2 = vld [vmem:[#allocation127_spill] sm:$0xff]  ;;  %v6454_v0 = vld [vmem:[#allocation20_spill] sm:$0xff] }
 0x312   :  { %v2247_v23 = vmul.f32 %v6435_v59, %v2245_v62  ;;  %v2248_v31 = vmul.f32 %v5000_v35, %v2245_v62  ;;  %2123 = vrot.lane.b32.xlu0 %v2113_v32, %s3120_s27  ;;  %v2217_v57 = vadd.f32 %v2213_v15, %v2205_v20  ;;  %v2218_v36 = vadd.f32 %v2214_v33, %v2206_v63  ;;  %v2257_v58 = vpop.permute.xlu1 %2256 }
 0x313   :  { %v2237_v12 = vmul.f32 %v2233_v1, %v5004_v9  ;;  %v2238_v14 = vmul.f32 %v2233_v1, %v723_v56  ;;  %v2239_v24 = vadd.f32 %v2235_v27, %v2227_v61  ;;  %v2240_v3 = vadd.f32 %v2236_v43, %v2228_v42  ;;  %v2904_v27 = vld [vmem:[#allocation3 + $0x18] sm:$0xff]  ;;  %v5471_v61 = vpop.permute.xlu0 %904  ;;  %v6456_v56 = vld [vmem:[#allocation32_spill] sm:$0xff] }
 0x314   :  { %v2229_v46 = vadd.f32 %v2225_v47, %v2217_v57  ;;  %v2230_v28 = vadd.f32 %v2226_v50, %v2218_v36  ;;  %v2249_v18 = vmul.f32 %v4960_v40, %v2245_v62  ;;  %v2250_v10 = vmul.f32 %v2245_v62, %v741_v34  ;;  %v6452_v62 = vld [vmem:[#allocation18_spill] sm:$0xff]  ;;  %v6455_v47 = vld [vmem:[#allocation116_spill] sm:$0xff] }
 0x315   :  { %v2251_v39 = vadd.f32 %v2247_v23, %v2239_v24  ;;  %v2252_v26 = vadd.f32 %v2248_v31, %v2240_v3  ;;  %v2259_v5 = vmul.f32 %v5260_v30, %v2257_v58  ;;  %v2260_v37 = vmul.f32 %v5021_v22, %v2257_v58  ;;  %v6457_v57 = vld [vmem:[#allocation22_spill] sm:$0xff]  ;;  %v6458_v3 = vld [vmem:[#allocation23_spill] sm:$0xff] }
 0x316   :  { %v2241_v8 = vadd.f32 %v2237_v12, %v2229_v46  ;;  %v2242_v53 = vadd.f32 %v2238_v14, %v2230_v28  ;;  %v2261_v9 = vmul.f32 %v5084_v51, %v2257_v58  ;;  %v2262_v1 = vmul.f32 %v2257_v58, %v759_v48  ;;  %v6451_v51 = vld [vmem:[#allocation16_spill] sm:$0xff]  ;;  %v5467_v20 = vpop.permute.xlu1 %906  ;;  %v6459_v28 = vld [vmem:[#allocation34_spill] sm:$0xff] }
 0x317   :  { %v2264_v17 = vadd.f32 %v2260_v37, %v2252_v26  ;;  %v2263_v29 = vadd.f32 %v2259_v5, %v2251_v39  ;;  %v605_v52 = vmul.f32 %v6450_v2, %v6449_v21  ;;  %v591_v43 = vmul.f32 %v2904_v27, %v6451_v51  ;;  %v5477_v12 = vpop.permute.xlu0 %1058  ;;  %v6460_v58 = vld [vmem:[#allocation24_spill] sm:$0xff]  ;;  %v6461_v5 = vld [vmem:[#allocation25_spill] sm:$0xff] }
 0x318   :  { %v2253_v15 = vadd.f32 %v2249_v18, %v2241_v8  ;;  %v2254_v33 = vadd.f32 %v2250_v10, %v2242_v53  ;;  %v623_v32 = vmul.f32 %v6453_v16, %v6452_v62  ;;  %v641_v50 = vmul.f32 %v6455_v47, %v6454_v0  ;;  %v6462_v53 = vld [vmem:[#allocation37_spill] sm:$0xff]  ;;  %v2905_v47 = vld [vmem:[#allocation3 + $0x38] sm:$0xff] }
 0x319   :  { %2273 = vrot.lane.b32.xlu1 %v2264_v17, %s2971_s17  ;;  %2271 = vrot.lane.b32.xlu0 %v2263_v29, %s2971_s17  ;;  %v609_v63 = vadd.f32 %v605_v52, %v591_v43  ;;  %v659_v23 = vmul.f32 %v6436_v4, %v6456_v56  ;;  %v677_v36 = vmul.f32 %v6441_v13, %v6457_v57 }
 0x31a   :  { %v2266_v40 = vadd.f32 %v2262_v1, %v2254_v33  ;;  %v2265_v44 = vadd.f32 %v2261_v9, %v2253_v15  ;;  %v5479_v14 = vpop.permute.xlu1 %1056  ;;  %v695_v34 = vmul.f32 %v6420_v45, %v6458_v3  ;;  %v713_v18 = vmul.f32 %v6446_v49, %v6459_v28 }
 0x31b   :  { %v627_v42 = vadd.f32 %v623_v32, %v609_v63  ;;  %v731_v4 = vmul.f32 %v4950_v6, %v6460_v58  ;;  %v5487_v39 = vpop.permute.xlu0 %1208  ;;  %v749_v37 = vmul.f32 %v5000_v35, %v6461_v5  ;;  %v767_v45 = vmul.f32 %v5021_v22, %v6462_v53 }
 0x31d   :  { %2277 = vrot.lane.b32.xlu1 %v2266_v40, %s2971_s17  ;;  %2275 = vrot.lane.b32.xlu0 %v2265_v44, %s2971_s17  ;;  %v645_v31 = vadd.f32 %v641_v50, %v627_v42  ;;  %v603_v50 = vmul.f32 %v2905_v47, %v6449_v21  ;;  %v2906_v42 = vld [vmem:[#allocation3 + $0x8] sm:$0xff]  ;;  %s3121_s17 = smov 108  }
 0x31e   :  { %v5489_v26 = vpop.permute.xlu1 %1210 }
 0x31f   :  { %v663_v24 = vadd.f32 %v659_v23, %v645_v31  ;;  %v589_v23 = vmul.f32 %v2906_v42, %v6451_v51  ;;  %v2907_v31 = vld [vmem:[#allocation3 + $0x68] sm:$0xff] }
 0x320   :  { %v2910_v42 = vld [vmem:[#allocation3 + $0xc8] sm:$0xff] }
 0x321   :  { %v681_v46 = vadd.f32 %v677_v36, %v663_v24  ;;  %v621_v36 = vmul.f32 %v2907_v31, %v6452_v62  ;;  %v657_v31 = vmul.f32 %v2910_v42, %v6456_v56 }
 0x323   :  { %v699_v10 = vadd.f32 %v695_v34, %v681_v46  ;;  %v6467_v46 = vld [vmem:[#allocation85_spill] sm:$0xff] }
 0x325   :  { %v717_v13 = vadd.f32 %v713_v18, %v699_v10  ;;  %v604_v18 = vmul.f32 %v6467_v46, %v6449_v21  ;;  %v607_v10 = vadd.f32 %v603_v50, %v589_v23  ;;  %v2911_v50 = vld [vmem:[#allocation3 + $0x150] sm:$0xff] }
 0x326   :  { %v710_v23 = vmul.f32 %v2911_v50, %v6459_v28 }
 0x327   :  { %v735_v8 = vadd.f32 %v731_v4, %v717_v13  ;;  %v6468_v4 = vld [vmem:[#allocation73_spill] sm:$0xff]  ;;  %v625_v47 = vadd.f32 %v621_v36, %v607_v10  ;;  %v2912_v10 = vld [vmem:[#allocation3 + $0x180] sm:$0xff] }
 0x328   :  { %v639_v13 = vmul.f32 %v6468_v4, %v6454_v0  ;;  %v6470_v4 = vld [vmem:[#allocation100_spill] sm:$0xff] }
 0x329   :  { %v753_v49 = vadd.f32 %v749_v37, %v735_v8  ;;  %v2908_v37 = vld [vmem:[#allocation3 + $0x120] sm:$0xff] }
 0x32a   :  { %v692_v8 = vmul.f32 %v2908_v37, %v6458_v3  ;;  %v640_v37 = vmul.f32 %v6470_v4, %v6454_v0  ;;  %v676_v4 = vmul.f32 %v6440_v11, %v6457_v57 }
 0x32b   :  { %v771_v1 = vadd.f32 %v767_v45, %v753_v49  ;;  %v2909_v45 = vld [vmem:[#allocation3 + $0x10] sm:$0xff] }
 0x32c   :  { %v590_v49 = vmul.f32 %v2909_v45, %v6451_v51  ;;  %v6471_v51 = vld [vmem:[#allocation27_spill] sm:$0xff] }
 0x32d   :  { %v675_v45 = vmul.f32 %v6471_v51, %v6457_v57 }
 0x32e   :  { %v608_v46 = vadd.f32 %v604_v18, %v590_v49  ;;  %v693_v18 = vmul.f32 %v5194_v41, %v6458_v3 }
 0x32f   :  { %v5497_v9 = vpop.permute.xlu0 %1360 }
 0x330   :  { %v5495_v48 = vpop.permute.xlu1 %1362 }
 0x333   :  { %v5501_v6 = vpop.permute.xlu0 %908 }
 0x334   :  { %v5499_v17 = vpop.permute.xlu1 %910 }
 0x335   :  { %v923_v29 = vadd.f32 %v5499_v17, %v771_v1  ;;  %v6469_v1 = vld [vmem:[#allocation82_spill] sm:$0xff] }
 0x338   :  { %v5509_v33 = vpop.permute.xlu1 %1060 }
 0x339   :  { %v5504_v15 = vpop.permute.xlu0 %1062 }
 0x33a   :  { %v5507_v35 = vadd.f32 %v5504_v15, %v923_v29  ;;  %v622_v29 = vmul.f32 %v6469_v1, %v6452_v62  ;;  %v6472_v62 = vld [vmem:[#allocation95_spill] sm:$0xff]  ;;  %v728_v1 = vmul.f32 %v2912_v10, %v6460_v58 }
 0x33b   :  { %v696_v36 = vadd.f32 %v692_v8, %v6472_v62 }
 0x33c   :  { %6463 = vst [vmem:[#allocation102_spill] sm:$0xff] %v5507_v35  ;;  %v626_v42 = vadd.f32 %v622_v29, %v608_v46  ;;  %v6473_v46 = vld [vmem:[#allocation89_spill] sm:$0xff] }
 0x33e   :  { %v644_v8 = vadd.f32 %v640_v37, %v626_v42  ;;  %v729_v37 = vmul.f32 %v5319_v60, %v6460_v58  ;;  %v765_v42 = vmul.f32 %v5255_v54, %v6462_v53  ;;  %v914_v54 = vsel %vm912_vm2, %v5467_v20, %v5501_v6 }
 0x344   :  { %v5511_v22 = vpop.permute.xlu1 %1214 }
 0x348   :  { %v5513_v40 = vpop.permute.xlu0 %1212  ;;  %v5515_v44 = vpop.permute.xlu1 %1366 }
 0x34c   :  { %v5517_v2 = vpop.permute.xlu0 %1364  ;;  %v5519_v52 = vpop.permute.xlu1 %1514 }
 0x350   :  { %v5521_v27 = vpop.permute.xlu0 %1512  ;;  %v5523_v43 = vpop.permute.xlu1 %1518 }
 0x351   :  { %6464 = vst [vmem:[#allocation48_spill] sm:$0xff] %v5523_v43  ;;  %v658_v43 = vmul.f32 %v5401_v55, %v6456_v56  ;;  %v711_v55 = vmul.f32 %v6473_v46, %v6459_v28 }
 0x354   :  { %v5525_v16 = vpop.permute.xlu0 %1516  ;;  %v5527_v32 = vpop.permute.xlu1 %1665 }
 0x358   :  { %v5529_v63 = vpop.permute.xlu0 %1663 }
 0x359   :  { %v5534_v24 = vpop.permute.xlu1 %1669 }
 0x35a   :  { %6465 = vst [vmem:[#allocation121_spill] sm:$0xff] %v5534_v24  ;;  %v643_v24 = vadd.f32 %v639_v13, %v625_v47  ;;  %v714_v13 = vadd.f32 %v710_v23, %v696_v36  ;;  %v2913_v47 = vld [vmem:[#allocation3 + $0x1b0] sm:$0xff]  ;;  %v694_v23 = vmul.f32 %v5198_v25, %v6458_v3  ;;  %v913_v25 = vsel %vm912_vm2, %v5471_v61, %v5467_v20 }
 0x35b   :  { %v746_v50 = vmul.f32 %v2913_v47, %v6461_v5  ;;  %v730_v3 = vmul.f32 %v5323_v38, %v6460_v58  ;;  %v1217_v38 = vsel %vm1216_vm4, %v5487_v39, %v5489_v26  ;;  %v915_v20 = vsel %vm912_vm2, %v5501_v6, %v5499_v17 }
 0x35c   :  { %v732_v56 = vadd.f32 %v728_v1, %v714_v13  ;;  %v1370_v17 = vsel %vm1368_vm5, %v5495_v48, %v5517_v2 }
 0x35d   :  { %v5536_v34 = vpop.permute.xlu0 %1667 }
 0x35e   :  { %6466 = vst [vmem:[#allocation40_spill] sm:$0xff] %v5536_v34  ;;  %v661_v34 = vadd.f32 %v657_v31, %v643_v24  ;;  %v2914_v24 = vld [vmem:[#allocation3 + $0x1e0] sm:$0xff]  ;;  %v662_v31 = vadd.f32 %v658_v43, %v644_v8  ;;  %v750_v11 = vadd.f32 %v746_v50, %v732_v56  ;;  %v747_v43 = vmul.f32 %v6434_v7, %v6461_v5 }
 0x35f   :  { %v764_v41 = vmul.f32 %v2914_v24, %v6462_v53  ;;  %v766_v50 = vmul.f32 %v5260_v30, %v6462_v53  ;;  %v1218_v30 = vsel %vm1216_vm4, %v5489_v26, %v5513_v40  ;;  %v1520_v53 = vsel %vm309_vm8, %v5521_v27, %v5519_v52 }
 0x360   :  { %v679_v29 = vadd.f32 %v675_v45, %v661_v34  ;;  %v680_v34 = vadd.f32 %v676_v4, %v662_v31  ;;  %v712_v45 = vmul.f32 %v6445_v19, %v6459_v28  ;;  %v1065_v19 = vsel %vm1064_vm3, %v5479_v14, %v5477_v12 }
 0x361   :  { %v768_v10 = vadd.f32 %v764_v41, %v750_v11  ;;  %v1067_v24 = vsel %vm1064_vm3, %v5509_v33, %v5504_v15  ;;  %v1672_v26 = vsel %vm1671_vm6, %v5529_v63, %v5527_v32  ;;  %v1219_v31 = vsel %vm1216_vm4, %v5513_v40, %v5511_v22 }
 0x362   :  { %v697_v51 = vadd.f32 %v693_v18, %v679_v29  ;;  %v698_v60 = vadd.f32 %v694_v23, %v680_v34  ;;  %v748_v18 = vmul.f32 %v6435_v59, %v6461_v5  ;;  %v1369_v59 = vsel %vm1368_vm5, %v5497_v9, %v5495_v48 }
 0x363   :  { %v920_v7 = vadd.f32 %v913_v25, %v768_v10  ;;  %v1066_v5 = vsel %vm1064_vm3, %v5477_v12, %v5509_v33  ;;  %v1521_v15 = vsel %vm309_vm8, %v5519_v52, %v5525_v16  ;;  %v1371_v63 = vsel %vm1368_vm5, %v5517_v2, %v5515_v44 }
 0x364   :  { %v715_v36 = vadd.f32 %v711_v55, %v697_v51  ;;  %v716_v28 = vadd.f32 %v712_v45, %v698_v60 }
 0x365   :  { %v1072_v14 = vadd.f32 %v1065_v19, %v920_v7 }
 0x366   :  { %v733_v1 = vadd.f32 %v729_v37, %v715_v36  ;;  %v734_v58 = vadd.f32 %v730_v3, %v716_v28  ;;  %v6474_v37 = vld [vmem:[#allocation40_spill] sm:$0xff] }
 0x367   :  { %v1224_v4 = vadd.f32 %v1217_v38, %v1072_v14  ;;  %v1673_v40 = vsel %vm1671_vm6, %v5527_v32, %v6474_v37 }
 0x368   :  { %v751_v61 = vadd.f32 %v747_v43, %v733_v1  ;;  %v752_v39 = vadd.f32 %v748_v18, %v734_v58  ;;  %v6475_v43 = vld [vmem:[#allocation48_spill] sm:$0xff]  ;;  %v6476_v1 = vld [vmem:[#allocation121_spill] sm:$0xff] }
 0x369   :  { %v1376_v9 = vadd.f32 %v1369_v59, %v1224_v4  ;;  %v1522_v10 = vsel %vm309_vm8, %v5525_v16, %v6475_v43  ;;  %vm2340_vm8 = vcmask 261120  }
 0x36a   :  { %v769_v8 = vadd.f32 %v765_v42, %v751_v61  ;;  %v770_v46 = vadd.f32 %v766_v50, %v752_v39 }
 0x36b   :  { %v1527_v41 = vadd.f32 %v1520_v53, %v1376_v9  ;;  %v6477_v53 = vld [vmem:[#allocation102_spill] sm:$0xff] }
 0x36c   :  { %v921_v29 = vadd.f32 %v914_v54, %v769_v8  ;;  %v922_v6 = vadd.f32 %v915_v20, %v770_v46  ;;  %v1227_v9 = vadd.f32 %v5511_v22, %v6477_v53  ;;  %v2525_v53 = vld [vmem:[#allocation4 + $0x28] sm:$0xff] }
 0x36d   :  { %v1679_v51 = vadd.f32 %v1672_v26, %v1527_v41 }
 0x36e   :  { %v5547_v35 = vpop.permute.xlu1 %1817  ;;  %v5549_v21 = vpop.permute.xlu0 %1815  ;;  %v1073_v55 = vadd.f32 %v1066_v5, %v921_v29  ;;  %v1074_v33 = vadd.f32 %v1067_v24, %v922_v6  ;;  %v1379_v46 = vadd.f32 %v5515_v44, %v1227_v9  ;;  %v2362_v44 = vld [vmem:[%s5726_s5] sm:$0xff] }
 0x36f   :  { %v1824_v48 = vsel %vm1823_vm7, %v5549_v21, %v5547_v35 }
 0x370   :  { %v1225_v27 = vadd.f32 %v1218_v30, %v1073_v55  ;;  %v1226_v52 = vadd.f32 %v1219_v31, %v1074_v33  ;;  %v1831_v45 = vadd.f32 %v1824_v48, %v1679_v51  ;;  %v1530_v55 = vadd.f32 %v6475_v43, %v1379_v46  ;;  %v2436_v46 = vld [vmem:[#allocation4 + $0x18] sm:$0xff] }
 0x372   :  { %v5562_v49 = vpop.permute.xlu1 %1821  ;;  %v5564_v0 = vpop.permute.xlu0 %1819  ;;  %v1377_v23 = vadd.f32 %v1370_v17, %v1225_v27  ;;  %v1378_v60 = vadd.f32 %v1371_v63, %v1226_v52 }
 0x373   :  { %v1825_v2 = vsel %vm1823_vm7, %v5547_v35, %v5564_v0  ;;  %v1826_v35 = vsel %vm1823_vm7, %v5564_v0, %v5562_v49 }
 0x374   :  { %v1528_v34 = vadd.f32 %v1521_v15, %v1377_v23  ;;  %v1529_v19 = vadd.f32 %v1522_v10, %v1378_v60 }
 0x376   :  { %v5576_v62 = vpop.permute.xlu1 %1969  ;;  %v1680_v32 = vadd.f32 %v1673_v40, %v1528_v34 }
 0x377   :  { %v1968_v57 = vpop.permute.xlu0 %1967 }
 0x378   :  { %v1976_v11 = vsel %vm1975_vm9, %v1968_v57, %v5576_v62  ;;  %v1674_v57 = vsel %vm1671_vm6, %v6474_v37, %v6476_v1  ;;  %v1832_v7 = vadd.f32 %v1825_v2, %v1680_v32 }
 0x379   :  { %v1983_v3 = vadd.f32 %v1976_v11, %v1831_v45  ;;  %v1681_v54 = vadd.f32 %v1674_v57, %v1529_v19 }
 0x37a   :  { %v5594_v13 = vpop.permute.xlu1 %1973 }
 0x37b   :  { %v5596_v47 = vpop.permute.xlu0 %1971  ;;  %v1833_v50 = vadd.f32 %v1826_v35, %v1681_v54 }
 0x37c   :  { %v1977_v42 = vsel %vm1975_vm9, %v5576_v62, %v5596_v47  ;;  %v1978_v62 = vsel %vm1975_vm9, %v5596_v47, %v5594_v13 }
 0x37d   :  { %v1984_v14 = vadd.f32 %v1977_v42, %v1832_v7  ;;  %v1985_v39 = vadd.f32 %v1978_v62, %v1833_v50 }
 0x37f   :  { %v2122_v12 = vpop.permute.xlu1 %2121  ;;  %v2120_v56 = vpop.permute.xlu0 %2119 }
 0x380   :  { %v2128_v25 = vsel %vm2127_vm11, %v2120_v56, %v2122_v12 }
 0x381   :  { %v2135_v16 = vadd.f32 %v2128_v25, %v1983_v3 }
 0x383   :  { %v2126_v36 = vpop.permute.xlu1 %2125 }
 0x384   :  { %v2124_v21 = vpop.permute.xlu0 %2123 }
 0x385   :  { %v2129_v61 = vsel %vm2127_vm11, %v2122_v12, %v2124_v21  ;;  %v2130_v5 = vsel %vm2127_vm11, %v2124_v21, %v2126_v36  ;;  %v1682_v12 = vadd.f32 %v6476_v1, %v1530_v55 }
 0x386   :  { %v2136_v8 = vadd.f32 %v2129_v61, %v1984_v14  ;;  %v2137_v30 = vadd.f32 %v2130_v5, %v1985_v39  ;;  %v2862_v61 = vld [vmem:[%s5725_s4] sm:$0xff]  }
 0x387   :  { %v1834_v56 = vadd.f32 %v5562_v49, %v1682_v12  ;;  %v2452_v49 = vld [vmem:[%s5726_s5 + $0x8] sm:$0xff] }
 0x389   :  { %v1986_v22 = vadd.f32 %v5594_v13, %v1834_v56 }
 0x38b   :  { %v2274_v28 = vpop.permute.xlu1 %2273  ;;  %v2272_v18 = vpop.permute.xlu0 %2271  ;;  %v2138_v24 = vadd.f32 %v2126_v36, %v1986_v22 }
 0x38c   :  { %v2279_v38 = vsel %vm371_vm10, %v2272_v18, %v2274_v28  ;;  %v2861_v18 = vld [vmem:[%s5725_s4] sm:$0xff]   ;;  %s3133_s4 = smov [#allocation7]  }
 0x38d   :  { %v5665_v58 = vadd.f32 %v2279_v38, %v2135_v16  ;;  %s2546_s19 = sshll.u32 %s3133_s4, 4  ;;  %s2547_s19 = int_to_ptr.vmem [resolvable:$true] %s2546_s19 }
 0x38e   :  { %s2937_s20 = scalar_lea.vmem %s2547_s19, 1024  ;;  %p2942_p9 = scmp.lt.s32.totalorder %s2547_s19, %s2547_s19 }
 0x38f   :  { %v2278_v59 = vpop.permute.xlu1 %2277  ;;  %2294 = vrot.lane.b32.xlu1 %v5665_v58, %s3121_s17  ;;  %2291 = vrot.lane.b32.xlu0 %v5665_v58, %s2978_s21  ;;  %v2276_v0 = vpop.permute.xlu0 %2275  ;;  %s3125_s21 = smov 28   ;;  %p2938_p8 = scmp.ne.s32.totalorder %s2547_s19, %s2937_s20 }
 0x390   :  { %v2280_v4 = vsel %vm371_vm10, %v2274_v28, %v2276_v0  ;;  %v2281_v20 = vsel %vm371_vm10, %v2276_v0, %v2278_v59  ;;  %v2289_v17 = vadd.f32 %v2278_v59, %v2138_v24  ;;  %vm2343_vm10 = vcmask 523264   ;;  %v2434_v59 = vld [vmem:[#allocation4 + $0x8] sm:$0xff]  ;;  %p2943_p10 = scmp.lt.s32.totalorder %s2937_s20, %s2937_s20 }
 0x391   :  { %v2287_v29 = vadd.f32 %v2280_v4, %v2136_v8  ;;  %v2288_v47 = vadd.f32 %v2281_v20, %v2137_v30  ;;  %v2524_v4 = vld [vmem:[#allocation4 + $0x20] sm:$0xff] }
 0x392   :  { %p2944_p11 = por %p2943_p10, %p2942_p9 }
 0x393   :  { %2297 = vrot.lane.b32.xlu1 %v5665_v58, %s3122_s28  ;;  %2316 = vrot.lane.b32.xlu0 %v2287_v29, %s3123_s29 }
 0x394   :  { %p2945_p12 = pnand %p2944_p11, %p2938_p8 }
 0x397   :  { %2300 = vrot.lane.b32.xlu1 %v5665_v58, %s3124_s30  ;;  %2320 = vrot.lane.b32.xlu0 %v2288_v47, %s3125_s21 }
 0x39b   :  { %2323 = vrot.lane.b32.xlu0 %v2288_v47, %s3126_s9  ;;  %2313 = vrot.lane.b32.xlu1 %v2287_v29, %s3119_s26 }
 0x39f   :  { %2326 = vrot.lane.b32.xlu0 %v2288_v47, %s3127_s10  ;;  %2304 = vrot.lane.b32.xlu1 %v2287_v29, %s3128_s13 }
 0x3a3   :  { %2329 = vrot.lane.b32.xlu0 %v2288_v47, %s2969_s0  ;;  %2307 = vrot.lane.b32.xlu1 %v2287_v29, %s3129_s14 }
 0x3a7   :  { %2332 = vrot.lane.b32.xlu0 %v2288_v47, %s3130_s15  ;;  %2310 = vrot.lane.b32.xlu1 %v2287_v29, %s3131_s16  ;;  %v2435_v29 = vld [vmem:[#allocation4 + $0x10] sm:$0xff] }
 0x3ab   :  { %2336 = vrot.lane.b32.xlu0 %v2289_v17, %s3132_s11  ;;  %2366 = vperm.xlu1 %2859, %v2362_v44  }
 0x3af   :  { %2455 = vperm.xlu1 %2859, %v2362_v44   ;;  %2371 = vperm.xlu0 %2860, %v2452_v49   ;;  %v2526_v44 = vld [vmem:[#allocation4 + $0x30] sm:$0xff] }
 0x3b3   :  { %2460 = vperm.xlu1 %2859, %v2452_v49  }
 0x401   :  { %v2295_v13 = vpop.permute.xlu1 %2294  ;;  %v2292_v26 = vpop.permute.xlu0 %2291 }
 0x402   :  { %v2339_v51 = vsel %vm52_vm1, %v5665_v58, %v2292_v26  ;;  %v2433_v58 = vld [vmem:[#allocation4] sm:$0xff] }
 0x403   :  { %v2341_v37 = vsel %vm2340_vm8, %v2339_v51, %v2295_v13 }
 0x405   :  { %v2298_v6 = vpop.permute.xlu1 %2297  ;;  %v2317_v27 = vpop.permute.xlu0 %2316 }
 0x406   :  { %v2342_v34 = vsel %vm1975_vm9, %v2341_v37, %v2298_v6 }
 0x409   :  { %v2301_v41 = vpop.permute.xlu1 %2300  ;;  %v2321_v31 = vpop.permute.xlu0 %2320 }
 0x40a   :  { %v2344_v45 = vsel %vm2343_vm10, %v2342_v34, %v2301_v41 }
 0x40d   :  { %v2314_v15 = vpop.permute.xlu1 %2313  ;;  %v2324_v48 = vpop.permute.xlu0 %2323 }
 0x40e   :  { %v2351_v63 = vsel %vm52_vm1, %v2314_v15, %v2317_v27  ;;  %vm2383_vm1 = vcmask 1041408   ;;  %v2527_v27 = vld [vmem:[#allocation4 + $0x38] sm:$0xff] }
 0x40f   :  { %v2352_v40 = vsel %vm2340_vm8, %v2351_v63, %v2321_v31 }
 0x410   :  { %v2353_v36 = vsel %vm1975_vm9, %v2352_v40, %v2324_v48 }
 0x411   :  { %v2305_v33 = vpop.permute.xlu1 %2304  ;;  %v2327_v23 = vpop.permute.xlu0 %2326 }
 0x412   :  { %v2346_v21 = vsel %vm2345_vm12, %v2344_v45, %v2305_v33  ;;  %v2354_v60 = vsel %vm2343_vm10, %v2353_v36, %v2327_v23 }
 0x415   :  { %v2308_v11 = vpop.permute.xlu1 %2307  ;;  %v2330_v52 = vpop.permute.xlu0 %2329 }
 0x416   :  { %v2348_v43 = vsel %vm2347_vm13, %v2346_v21, %v2308_v11  ;;  %v2355_v3 = vsel %vm2345_vm12, %v2354_v60, %v2330_v52 }
 0x419   :  { %v2311_v10 = vpop.permute.xlu1 %2310  ;;  %v2333_v2 = vpop.permute.xlu0 %2332 }
 0x41a   :  { %v2350_v25 = vsel %vm2349_vm14, %v2348_v43, %v2311_v10  ;;  %v2356_v1 = vsel %vm2347_vm13, %v2355_v3, %v2333_v2 }
 0x41b   :  { %v2360_v32 = vpack.c.bf16 %v2350_v25, %v2350_v25 }
 0x41d   :  { %v2337_v57 = vpop.permute.xlu0 %2336  ;;  %v2470_v19 = vrot.slane %v2360_v32, 2  ;;  %v2385_v28 = vsel %vm2383_vm1, %v2360_v32, 0 }
 0x41e   :  { %v2357_v42 = vsel %vm2349_vm14, %v2356_v1, %v2337_v57 }
 0x41f   :  { %v2361_v7 = vpack.c.bf16 %v2357_v42, %v2357_v42  ;;  %v2476_v35 = vsel %vm2383_vm1, %v2470_v19, 0 }
 0x421   :  { %v2471_v16 = vrot.slane %v2361_v7, 2  ;;  %2561 = vmatprep.subr.msk.bf16.mxu0 %vm2383_vm1, %v2361_v7 }
 0x422   :  { %2391 = vmatpush1.bf16.msra.mxu0 %v2385_v28 }
 0x423   :  { %2564 = vmatprep.subr.msk.bf16.mxu1 %vm2383_vm1, %v2471_v16 }
 0x424   :  { %2482 = vmatpush1.bf16.msra.mxu1 %v2476_v35 }
 0x425   :  { %2562 = vmatmul.mubr.msk.bf16.vlgmr.msra.gmra.mrb[4].mxu0 %vm2379_vm15, %v2861_v18 }
 0x427   :  { %2565 = vmatmul.mubr.msk.bf16.vlgmr.msra.gmra.mrb[4].mxu1 %vm2379_vm15, %v2862_v61 }
 0x42a   :  { %v2367_v38 = vpop.permute.xlu1 %2366 }
 0x42e   :  { %v2456_v54 = vpop.permute.xlu1 %2455  ;;  %v2372_v62 = vpop.permute.xlu0 %2371 }
 0x432   :  { %v2461_v12 = vpop.permute.xlu1 %2460 }
 0x4f8   :  { %v2424_v14 = vpop.f32.mrb[4].mxu0 }
 0x4f9   :  { %v2425_v50 = vadd.f32 %v2424_v14, %v2367_v38  ;;  %v2426_v8 = vpop.f32.mrb[5].mxu0 }
 0x4fa   :  { %v2427_v0 = vadd.f32 %v2426_v8, %v2367_v38  ;;  %v2515_v5 = vpop.f32.mrb[4].mxu1  ;;  %v2428_v39 = vpop.f32.mrb[6].mxu0 }
 0x4fb   :  { %v2437_v20 = vadd.f32 %v2433_v58, %v2425_v50  ;;  %v2516_v30 = vadd.f32 %v2515_v5, %v2456_v54  ;;  %v2517_v47 = vpop.f32.mrb[5].mxu1  ;;  %v2430_v9 = vpop.f32.mrb[7].mxu0  ;;  %v2429_v55 = vadd.f32 %v2428_v39, %v2372_v62 }
 0x4fc   :  { %v2438_v56 = vadd.f32 %v2434_v59, %v2427_v0  ;;  %v2518_v22 = vadd.f32 %v2517_v47, %v2456_v54  ;;  %v2519_v24 = vpop.f32.mrb[6].mxu1  ;;  %v2431_v17 = vadd.f32 %v2430_v9, %v2372_v62 }
 0x4fd   :  { %v2441_v49 = vmax.f32 %v2437_v20, 0.0  ;;  %v2528_v13 = vadd.f32 %v2524_v4, %v2516_v30  ;;  %v2520_v26 = vadd.f32 %v2519_v24, %v2461_v12  ;;  %v2521_v6 = vpop.f32.mrb[7].mxu1  ;;  %v2439_v41 = vadd.f32 %v2435_v29, %v2429_v55 }
 0x4fe   :  { %v2442_v31 = vmax.f32 %v2438_v56, 0.0  ;;  %v2529_v15 = vadd.f32 %v2525_v53, %v2518_v22  ;;  %v2522_v48 = vadd.f32 %v2521_v6, %v2461_v12  ;;  %v2440_v33 = vadd.f32 %v2436_v46, %v2431_v17 }
 0x4ff   :  { %2445 = vst [vmem:[#allocation7] sm:$0xff] %v2441_v49  ;;  %v2532_v23 = vmax.f32 %v2528_v13, 0.0  ;;  %v2530_v51 = vadd.f32 %v2526_v44, %v2520_v26  ;;  %v2443_v63 = vmax.f32 %v2439_v41, 0.0 }
 0x500   :  { %2446 = vst [vmem:[#allocation7 + $0x8] sm:$0xff] %v2442_v31  ;;  %v2533_v37 = vmax.f32 %v2529_v15, 0.0  ;;  %v2531_v40 = vadd.f32 %v2527_v27, %v2522_v48  ;;  %v2444_v11 = vmax.f32 %v2440_v33, 0.0 }
 0x501   :  { %2537 = vst [vmem:[#allocation7 + $0x20] sm:$0xff] %v2532_v23  ;;  %v2534_v52 = vmax.f32 %v2530_v51, 0.0  ;;  %2447 = vst [vmem:[#allocation7 + $0x10] sm:$0xff] %v2443_v63 }
 0x502   :  { %2538 = vst [vmem:[#allocation7 + $0x28] sm:$0xff] %v2533_v37  ;;  %v2535_v34 = vmax.f32 %v2531_v40, 0.0  ;;  %2448 = vst [vmem:[#allocation7 + $0x18] sm:$0xff] %v2444_v11 }
 0x503   :  { %2539 = vst [vmem:[#allocation7 + $0x30] sm:$0xff] %v2534_v52 }
 0x504   :  { %2540 = vst [vmem:[#allocation7 + $0x38] sm:$0xff] %v2535_v34 }
 0x505   :  { %2948 = shalt.err (!%p2945_p12)
}
 0x506   :  { %s2949_s25 = scalar_lea.hbm %s5727_s6, 1024 }
 0x507   :  { %p2950_p13 = scmp.ne.s32.totalorder %s5727_s6, %s2949_s25  ;;  %p2953_p0 = scmp.lt.u32.totalorder %s2949_s25, %s5727_s6 }
 0x509   :  { %p2955_p1 = pnand %p2953_p0, %p2950_p13 }
 0x50b   :  { %2958 = shalt.err (!%p2955_p1)
}
 0x50c   :  { %2552 = dma.vmem_to_hbm [thread:$0]  %s2547_s19, 1024, %s5727_s6, [#allocation6], %s2964_s7, %s2964_s7, %s2965_s8  }
 0x50d   :  { %2961 = dma.done.wait [#allocation6], 1024  }
 0x50e   :  { %2962 = vsyncadd [#allocation6], 4294966272 }
 0x50f   :  { %2556 = vsyncpa [#allocation5], 1 }
 0x510   :  { %2557 = vsyncpa [#allocation6], 1 }

</bundles_post_ra>
